<compile_context>
chip_gen: v7x
topology: tpu7x:2x2x1
jax: 0.10.0
libtpu: 0.0.40
codegen_flags: <defaults>
</compile_context>

<pallas_src>
from functools import partial

import jax
import jax.numpy as jnp
from jax.experimental import pallas as pl
from jax.experimental.pallas import tpu as pltpu


def _fused_attn_kernel(x_ref, wq_ref, wkv_ref, wout_ref, bout_ref,
                       o_ref, ctx_ref, *, heads, dim_head, scale, tq):
    """One (batch, query-tile) step of fused QKV + attention + output projection.

    x_ref    : (1, C, N)        channels-last-in-sublanes, spatial N in lanes
    wq_ref   : (hidden, C)      query projection rows of to_qkv weight
    wkv_ref  : (2*hidden, C)    key/value projection rows of to_qkv weight
    wout_ref : (C, hidden)      to_out weight
    bout_ref : (C, 1)           to_out bias (broadcast over lanes)
    o_ref    : (1, C, TQ)       output tile (lane-dense along N)
    ctx_ref  : (hidden, TQ)     VMEM scratch, head-major context accumulator
    """
    hidden = heads * dim_head
    n_full = x_ref.shape[-1]

    x = x_ref[0]                                                    # (C, N)

    # Query tile of x (same layout). Avoid dynamic slicing when there's one tile.
    if tq == n_full:
        xq = x                                                      # (C, TQ)
    else:
        qi = pl.program_id(1)
        start = pl.multiple_of(qi * tq, tq)
        xq = x_ref[0, :, pl.ds(start, tq)]                          # (C, TQ)

    # Fused 1x1-conv projections as channel-contraction matmuls (no bias in to_qkv).
    kv = jnp.dot(wkv_ref[...], x, preferred_element_type=jnp.float32)        # (2*hidden, N)
    q_all = jnp.dot(wq_ref[...], xq, preferred_element_type=jnp.float32) * scale  # (hidden, TQ)

    # Per-head attention; heads is small -> static unroll.
    for h in range(heads):
        q = q_all[h * dim_head:(h + 1) * dim_head]                     # (d, TQ)
        k = kv[h * dim_head:(h + 1) * dim_head]                        # (d, N)
        v = kv[hidden + h * dim_head:hidden + (h + 1) * dim_head]      # (d, N)

        # simT[j, i] = sum_d k[d, j] * q[d, i]  (keys in sublanes, queries in lanes)
        simT = jnp.dot(k.T, q, preferred_element_type=jnp.float32)     # (N, TQ)
        m = jnp.max(simT, axis=0, keepdims=True)                       # (1, TQ)
        p = jnp.exp(simT - m)                                          # (N, TQ)
        l = jnp.sum(p, axis=0, keepdims=True)                          # (1, TQ)

        # ctx[d, i] = sum_j v[d, j] * p[j, i]; normalize with EUP reciprocal on the
        # small (d, TQ) result instead of dividing the (N, TQ) probability matrix.
        ctx = jnp.dot(v, p, preferred_element_type=jnp.float32)        # (d, TQ)
        ctx_ref[h * dim_head:(h + 1) * dim_head, :] = (
            ctx * pl.reciprocal(l, approx=True))

    # Fused to_out 1x1 conv + bias; single lane-dense (C, TQ) store.
    o_ref[0] = (jnp.dot(wout_ref[...], ctx_ref[...],
                        preferred_element_type=jnp.float32)
                + bout_ref[...]).astype(o_ref.dtype)


def attention_forward(x, w_qkv, w_out, b_out, heads=4, dim_head=32):
    """x: (B, C, H, W) float32 (NCHW, like PyTorch).  Returns (B, C, H, W)."""
    B, C, H, W = x.shape
    N = H * W
    hidden = heads * dim_head
    scale = float(dim_head) ** (-0.5)

    # NCHW -> (B, C, N): a *free* reshape (no transpose); spatial n = x*W + y
    # matches the PyTorch '(x y)' convention.
    x_flat = x.reshape(B, C, N)

    # Query-tile size along the lane (N) axis; full N when small, otherwise a
    # 128-multiple tile so VMEM stays flat and v7x gets >1 parallel grid point.
    if N <= 512:
        tq = N
    else:
        tq = next((t for t in (512, 256, 128) if N % t == 0), N)
    nq = N // tq
    # TODO(synk): for very large N (e.g. 64x64 feature maps) add KV tiling with
    # online softmax instead of the monolithic (N, TQ) probability tile.

    # chunk(3, dim=1) on the to_qkv output channels: [q | k | v], head-major inside.
    w_q = w_qkv[:hidden]            # (hidden, C)
    w_kv = w_qkv[hidden:]           # (2*hidden, C)
    b_col = b_out.reshape(C, 1)     # broadcast over lanes inside the kernel

    out_flat = pl.pallas_call(
        partial(_fused_attn_kernel, heads=heads, dim_head=dim_head,
                scale=scale, tq=tq),
        out_shape=jax.ShapeDtypeStruct((B, C, N), jnp.float32),
        grid=(B, nq),
        in_specs=[
            pl.BlockSpec((1, C, N), lambda b, qi: (b, 0, 0)),
            pl.BlockSpec((hidden, C), lambda b, qi: (0, 0)),
            pl.BlockSpec((2 * hidden, C), lambda b, qi: (0, 0)),
            pl.BlockSpec((C, hidden), lambda b, qi: (0, 0)),
            pl.BlockSpec((C, 1), lambda b, qi: (0, 0)),
        ],
        out_specs=pl.BlockSpec((1, C, tq), lambda b, qi: (b, 0, qi)),
        scratch_shapes=[pltpu.VMEM((hidden, tq), jnp.float32)],
        compiler_params=pltpu.CompilerParams(
            dimension_semantics=("parallel", "parallel")),
    )(x_flat, w_q, w_kv, w_out, b_col)

    # (B, C, N) -> NCHW: free reshape.
    return out_flat.reshape(B, C, H, W)


def attention_reference(x, w_qkv, w_out, b_out, heads, dim_head):
    """Pure-JAX reference mirroring the PyTorch module semantics."""
    B, C, H, W = x.shape
    N = H * W
    hidden = heads * dim_head
    scale = float(dim_head) ** (-0.5)
    qkv = jnp.einsum('bchw,oc->bohw', x, w_qkv)             # 1x1 conv, no bias
    q, k, v = jnp.split(qkv, 3, axis=1)
    q, k, v = (t.reshape(B, heads, dim_head, N) for t in (q, k, v))
    q = q * scale
    sim = jnp.einsum('bhdi,bhdj->bhij', q, k)
    attn = jax.nn.softmax(sim, axis=-1)
    out = jnp.einsum('bhij,bhdj->bhid', attn, v)            # (B, h, N, d)
    out = jnp.transpose(out, (0, 1, 3, 2)).reshape(B, hidden, H, W)
    out = jnp.einsum('bchw,oc->bohw', out, w_out) + b_out.reshape(1, C, 1, 1)
    return out


if __name__ == "__main__":
    B, C, H, W = 2, 4, 16, 16
    heads, dim_head = 4, 32
    hidden = heads * dim_head

    key = jax.random.PRNGKey(0)
    k1, k2, k3, k4 = jax.random.split(key, 4)
    x = jax.random.normal(k1, (B, C, H, W), jnp.float32)
    # nn.Conv2d(dim, hidden*3, 1, bias=False).weight -> (3*hidden, C, 1, 1) squeezed
    w_qkv = jax.random.normal(k2, (3 * hidden, C), jnp.float32) * 0.1
    # nn.Conv2d(hidden, dim, 1).weight -> (C, hidden, 1, 1) squeezed, plus bias (C,)
    w_out = jax.random.normal(k3, (C, hidden), jnp.float32) * 0.1
    b_out = jax.random.normal(k4, (C,), jnp.float32) * 0.1

    out = attention_forward(x, w_qkv, w_out, b_out, heads, dim_head)
    out = jax.block_until_ready(out)

    ref = attention_reference(x, w_qkv, w_out, b_out, heads, dim_head)
    assert out.shape == (B, C, H, W)
    err = float(jnp.max(jnp.abs(out - ref)))
    assert jnp.allclose(out, ref, atol=2e-3, rtol=2e-3), err
    print("KERNEL_OK")
</pallas_src>

<mosaic_0001>
module attributes {stable_mosaic.version = 11 : i64} {
  func.func @_fused_attn_kernel(%arg0: i32, %arg1: i32, %arg2: memref<1x4x256xf32, #tpu.memory_space<vmem>>, %arg3: memref<128x4xf32, #tpu.memory_space<vmem>>, %arg4: memref<256x4xf32, #tpu.memory_space<vmem>>, %arg5: memref<4x128xf32, #tpu.memory_space<vmem>>, %arg6: memref<4x1xf32, #tpu.memory_space<vmem>>, %arg7: memref<1x4x256xf32, #tpu.memory_space<vmem>>, %arg8: memref<128x256xf32, #tpu.memory_space<vmem>>) attributes {dimension_semantics = [#tpu.dimension_semantics<parallel>, #tpu.dimension_semantics<parallel>], iteration_bounds = array<i64: 2, 1>, scalar_prefetch = 0 : i64, scratch_operands = 1 : i64, tpu.core_type = #tpu.core_type<tc>, window_params = [{transform_indices = @transform_0, window_bounds = array<i64: 1, 4, 256>}, {pipeline_mode = #tpu.pipeline_mode<synchronous>, transform_indices = @transform_1, window_bounds = array<i64: 128, 4>}, {pipeline_mode = #tpu.pipeline_mode<synchronous>, transform_indices = @transform_2, window_bounds = array<i64: 256, 4>}, {pipeline_mode = #tpu.pipeline_mode<synchronous>, transform_indices = @transform_3, window_bounds = array<i64: 4, 128>}, {pipeline_mode = #tpu.pipeline_mode<synchronous>, transform_indices = @transform_4, window_bounds = array<i64: 4, 1>}, {transform_indices = @transform_5, window_bounds = array<i64: 1, 4, 256>}]} {
    %c0 = arith.constant 0 : index
    %c0_0 = arith.constant 0 : index
    %c0_1 = arith.constant 0 : index
    %0 = vector.load %arg2[%c0, %c0_0, %c0_1] : memref<1x4x256xf32, #tpu.memory_space<vmem>>, vector<1x4x256xf32>
    %1 = vector.shape_cast %0 : vector<1x4x256xf32> to vector<4x256xf32>
    %c0_2 = arith.constant 0 : index
    %c0_3 = arith.constant 0 : index
    %2 = vector.load %arg4[%c0_2, %c0_3] : memref<256x4xf32, #tpu.memory_space<vmem>>, vector<256x4xf32>
    %cst = arith.constant dense<0.000000e+00> : vector<256x256xf32>
    %3 = tpu.matmul %2, %1, %cst {dimension_numbers = #tpu.dot_dimension_numbers<[1], [0], [0], [1], [0, 0, 1, 1], [], []>} : vector<256x4xf32>, vector<4x256xf32>, vector<256x256xf32> -> vector<256x256xf32>
    %c0_4 = arith.constant 0 : index
    %c0_5 = arith.constant 0 : index
    %4 = vector.load %arg3[%c0_4, %c0_5] : memref<128x4xf32, #tpu.memory_space<vmem>>, vector<128x4xf32>
    %cst_6 = arith.constant dense<0.000000e+00> : vector<128x256xf32>
    %5 = tpu.matmul %4, %1, %cst_6 {dimension_numbers = #tpu.dot_dimension_numbers<[1], [0], [0], [1], [0, 0, 1, 1], [], []>} : vector<128x4xf32>, vector<4x256xf32>, vector<128x256xf32> -> vector<128x256xf32>
    %cst_7 = arith.constant 0.176776692 : f32
    %6 = vector.broadcast %cst_7 : f32 to vector<128x256xf32>
    %7 = arith.mulf %5, %6 : vector<128x256xf32>
    %8 = vector.extract_strided_slice %7 {offsets = [0, 0], sizes = [32, 256], strides = [1, 1]} : vector<128x256xf32> to vector<32x256xf32>
    %9 = vector.extract_strided_slice %3 {offsets = [0, 0], sizes = [32, 256], strides = [1, 1]} : vector<256x256xf32> to vector<32x256xf32>
    %10 = vector.extract_strided_slice %3 {offsets = [128, 0], sizes = [32, 256], strides = [1, 1]} : vector<256x256xf32> to vector<32x256xf32>
    %11 = tpu.transpose %9, [1, 0] : vector<32x256xf32> -> vector<256x32xf32>
    %cst_8 = arith.constant dense<0.000000e+00> : vector<256x256xf32>
    %12 = tpu.matmul %11, %8, %cst_8 {dimension_numbers = #tpu.dot_dimension_numbers<[1], [0], [0], [1], [0, 0, 1, 1], [], []>} : vector<256x32xf32>, vector<32x256xf32>, vector<256x256xf32> -> vector<256x256xf32>
    %cst_9 = arith.constant dense<0xFF800000> : vector<256xf32>
    %13 = vector.multi_reduction <maximumf>, %12, %cst_9 [0] : vector<256x256xf32> to vector<256xf32>
    %14 = vector.shape_cast %13 : vector<256xf32> to vector<1x256xf32>
    %15 = vector.broadcast %14 : vector<1x256xf32> to vector<256x256xf32>
    %16 = arith.subf %12, %15 : vector<256x256xf32>
    %17 = math.exp %16 : vector<256x256xf32>
    %cst_10 = arith.constant dense<0.000000e+00> : vector<256xf32>
    %18 = vector.multi_reduction <add>, %17, %cst_10 [0] : vector<256x256xf32> to vector<256xf32>
    %19 = vector.shape_cast %18 : vector<256xf32> to vector<1x256xf32>
    %cst_11 = arith.constant dense<0.000000e+00> : vector<32x256xf32>
    %20 = tpu.matmul %10, %17, %cst_11 {dimension_numbers = #tpu.dot_dimension_numbers<[1], [0], [0], [1], [0, 0, 1, 1], [], []>} : vector<32x256xf32>, vector<256x256xf32>, vector<32x256xf32> -> vector<32x256xf32>
    %21 = tpu.reciprocal %19 {approx = true} : vector<1x256xf32> -> vector<1x256xf32>
    %22 = vector.broadcast %21 : vector<1x256xf32> to vector<32x256xf32>
    %23 = arith.mulf %20, %22 : vector<32x256xf32>
    %c0_12 = arith.constant 0 : index
    %c0_13 = arith.constant 0 : index
    %24 = vector.load %arg8[%c0_12, %c0_13] : memref<128x256xf32, #tpu.memory_space<vmem>>, vector<32x256xf32>
    tpu.vector_store %arg8[%c0_12, %c0_13], %23 {strides = array<i32>} : memref<128x256xf32, #tpu.memory_space<vmem>>, vector<32x256xf32>,
    %25 = vector.extract_strided_slice %7 {offsets = [32, 0], sizes = [32, 256], strides = [1, 1]} : vector<128x256xf32> to vector<32x256xf32>
    %26 = vector.extract_strided_slice %3 {offsets = [32, 0], sizes = [32, 256], strides = [1, 1]} : vector<256x256xf32> to vector<32x256xf32>
    %27 = vector.extract_strided_slice %3 {offsets = [160, 0], sizes = [32, 256], strides = [1, 1]} : vector<256x256xf32> to vector<32x256xf32>
    %28 = tpu.transpose %26, [1, 0] : vector<32x256xf32> -> vector<256x32xf32>
    %cst_14 = arith.constant dense<0.000000e+00> : vector<256x256xf32>
    %29 = tpu.matmul %28, %25, %cst_14 {dimension_numbers = #tpu.dot_dimension_numbers<[1], [0], [0], [1], [0, 0, 1, 1], [], []>} : vector<256x32xf32>, vector<32x256xf32>, vector<256x256xf32> -> vector<256x256xf32>
    %cst_15 = arith.constant dense<0xFF800000> : vector<256xf32>
    %30 = vector.multi_reduction <maximumf>, %29, %cst_15 [0] : vector<256x256xf32> to vector<256xf32>
    %31 = vector.shape_cast %30 : vector<256xf32> to vector<1x256xf32>
    %32 = vector.broadcast %31 : vector<1x256xf32> to vector<256x256xf32>
    %33 = arith.subf %29, %32 : vector<256x256xf32>
    %34 = math.exp %33 : vector<256x256xf32>
    %cst_16 = arith.constant dense<0.000000e+00> : vector<256xf32>
    %35 = vector.multi_reduction <add>, %34, %cst_16 [0] : vector<256x256xf32> to vector<256xf32>
    %36 = vector.shape_cast %35 : vector<256xf32> to vector<1x256xf32>
    %cst_17 = arith.constant dense<0.000000e+00> : vector<32x256xf32>
    %37 = tpu.matmul %27, %34, %cst_17 {dimension_numbers = #tpu.dot_dimension_numbers<[1], [0], [0], [1], [0, 0, 1, 1], [], []>} : vector<32x256xf32>, vector<256x256xf32>, vector<32x256xf32> -> vector<32x256xf32>
    %38 = tpu.reciprocal %36 {approx = true} : vector<1x256xf32> -> vector<1x256xf32>
    %39 = vector.broadcast %38 : vector<1x256xf32> to vector<32x256xf32>
    %40 = arith.mulf %37, %39 : vector<32x256xf32>
    %c32 = arith.constant 32 : index
    %c0_18 = arith.constant 0 : index
    %41 = vector.load %arg8[%c32, %c0_18] : memref<128x256xf32, #tpu.memory_space<vmem>>, vector<32x256xf32>
    tpu.vector_store %arg8[%c32, %c0_18], %40 {strides = array<i32>} : memref<128x256xf32, #tpu.memory_space<vmem>>, vector<32x256xf32>,
    %42 = vector.extract_strided_slice %7 {offsets = [64, 0], sizes = [32, 256], strides = [1, 1]} : vector<128x256xf32> to vector<32x256xf32>
    %43 = vector.extract_strided_slice %3 {offsets = [64, 0], sizes = [32, 256], strides = [1, 1]} : vector<256x256xf32> to vector<32x256xf32>
    %44 = vector.extract_strided_slice %3 {offsets = [192, 0], sizes = [32, 256], strides = [1, 1]} : vector<256x256xf32> to vector<32x256xf32>
    %45 = tpu.transpose %43, [1, 0] : vector<32x256xf32> -> vector<256x32xf32>
    %cst_19 = arith.constant dense<0.000000e+00> : vector<256x256xf32>
    %46 = tpu.matmul %45, %42, %cst_19 {dimension_numbers = #tpu.dot_dimension_numbers<[1], [0], [0], [1], [0, 0, 1, 1], [], []>} : vector<256x32xf32>, vector<32x256xf32>, vector<256x256xf32> -> vector<256x256xf32>
    %cst_20 = arith.constant dense<0xFF800000> : vector<256xf32>
    %47 = vector.multi_reduction <maximumf>, %46, %cst_20 [0] : vector<256x256xf32> to vector<256xf32>
    %48 = vector.shape_cast %47 : vector<256xf32> to vector<1x256xf32>
    %49 = vector.broadcast %48 : vector<1x256xf32> to vector<256x256xf32>
    %50 = arith.subf %46, %49 : vector<256x256xf32>
    %51 = math.exp %50 : vector<256x256xf32>
    %cst_21 = arith.constant dense<0.000000e+00> : vector<256xf32>
    %52 = vector.multi_reduction <add>, %51, %cst_21 [0] : vector<256x256xf32> to vector<256xf32>
    %53 = vector.shape_cast %52 : vector<256xf32> to vector<1x256xf32>
    %cst_22 = arith.constant dense<0.000000e+00> : vector<32x256xf32>
    %54 = tpu.matmul %44, %51, %cst_22 {dimension_numbers = #tpu.dot_dimension_numbers<[1], [0], [0], [1], [0, 0, 1, 1], [], []>} : vector<32x256xf32>, vector<256x256xf32>, vector<32x256xf32> -> vector<32x256xf32>
    %55 = tpu.reciprocal %53 {approx = true} : vector<1x256xf32> -> vector<1x256xf32>
    %56 = vector.broadcast %55 : vector<1x256xf32> to vector<32x256xf32>
    %57 = arith.mulf %54, %56 : vector<32x256xf32>
    %c64 = arith.constant 64 : index
    %c0_23 = arith.constant 0 : index
    %58 = vector.load %arg8[%c64, %c0_23] : memref<128x256xf32, #tpu.memory_space<vmem>>, vector<32x256xf32>
    tpu.vector_store %arg8[%c64, %c0_23], %57 {strides = array<i32>} : memref<128x256xf32, #tpu.memory_space<vmem>>, vector<32x256xf32>,
    %59 = vector.extract_strided_slice %7 {offsets = [96, 0], sizes = [32, 256], strides = [1, 1]} : vector<128x256xf32> to vector<32x256xf32>
    %60 = vector.extract_strided_slice %3 {offsets = [96, 0], sizes = [32, 256], strides = [1, 1]} : vector<256x256xf32> to vector<32x256xf32>
    %61 = vector.extract_strided_slice %3 {offsets = [224, 0], sizes = [32, 256], strides = [1, 1]} : vector<256x256xf32> to vector<32x256xf32>
    %62 = tpu.transpose %60, [1, 0] : vector<32x256xf32> -> vector<256x32xf32>
    %cst_24 = arith.constant dense<0.000000e+00> : vector<256x256xf32>
    %63 = tpu.matmul %62, %59, %cst_24 {dimension_numbers = #tpu.dot_dimension_numbers<[1], [0], [0], [1], [0, 0, 1, 1], [], []>} : vector<256x32xf32>, vector<32x256xf32>, vector<256x256xf32> -> vector<256x256xf32>
    %cst_25 = arith.constant dense<0xFF800000> : vector<256xf32>
    %64 = vector.multi_reduction <maximumf>, %63, %cst_25 [0] : vector<256x256xf32> to vector<256xf32>
    %65 = vector.shape_cast %64 : vector<256xf32> to vector<1x256xf32>
    %66 = vector.broadcast %65 : vector<1x256xf32> to vector<256x256xf32>
    %67 = arith.subf %63, %66 : vector<256x256xf32>
    %68 = math.exp %67 : vector<256x256xf32>
    %cst_26 = arith.constant dense<0.000000e+00> : vector<256xf32>
    %69 = vector.multi_reduction <add>, %68, %cst_26 [0] : vector<256x256xf32> to vector<256xf32>
    %70 = vector.shape_cast %69 : vector<256xf32> to vector<1x256xf32>
    %cst_27 = arith.constant dense<0.000000e+00> : vector<32x256xf32>
    %71 = tpu.matmul %61, %68, %cst_27 {dimension_numbers = #tpu.dot_dimension_numbers<[1], [0], [0], [1], [0, 0, 1, 1], [], []>} : vector<32x256xf32>, vector<256x256xf32>, vector<32x256xf32> -> vector<32x256xf32>
    %72 = tpu.reciprocal %70 {approx = true} : vector<1x256xf32> -> vector<1x256xf32>
    %73 = vector.broadcast %72 : vector<1x256xf32> to vector<32x256xf32>
    %74 = arith.mulf %71, %73 : vector<32x256xf32>
    %c96 = arith.constant 96 : index
    %c0_28 = arith.constant 0 : index
    %75 = vector.load %arg8[%c96, %c0_28] : memref<128x256xf32, #tpu.memory_space<vmem>>, vector<32x256xf32>
    tpu.vector_store %arg8[%c96, %c0_28], %74 {strides = array<i32>} : memref<128x256xf32, #tpu.memory_space<vmem>>, vector<32x256xf32>,
    %c0_29 = arith.constant 0 : index
    %c0_30 = arith.constant 0 : index
    %76 = vector.load %arg5[%c0_29, %c0_30] : memref<4x128xf32, #tpu.memory_space<vmem>>, vector<4x128xf32>
    %c0_31 = arith.constant 0 : index
    %c0_32 = arith.constant 0 : index
    %77 = vector.load %arg8[%c0_31, %c0_32] : memref<128x256xf32, #tpu.memory_space<vmem>>, vector<128x256xf32>
    %cst_33 = arith.constant dense<0.000000e+00> : vector<4x256xf32>
    %78 = tpu.matmul %76, %77, %cst_33 {dimension_numbers = #tpu.dot_dimension_numbers<[1], [0], [0], [1], [0, 0, 1, 1], [], []>} : vector<4x128xf32>, vector<128x256xf32>, vector<4x256xf32> -> vector<4x256xf32>
    %c0_34 = arith.constant 0 : index
    %c0_35 = arith.constant 0 : index
    %79 = vector.load %arg6[%c0_34, %c0_35] : memref<4x1xf32, #tpu.memory_space<vmem>>, vector<4x1xf32>
    %80 = vector.broadcast %79 : vector<4x1xf32> to vector<4x256xf32>
    %81 = arith.addf %78, %80 : vector<4x256xf32>
    %c0_36 = arith.constant 0 : index
    %c0_37 = arith.constant 0 : index
    %c0_38 = arith.constant 0 : index
    %82 = vector.load %arg7[%c0_36, %c0_37, %c0_38] : memref<1x4x256xf32, #tpu.memory_space<vmem>>, vector<1x4x256xf32>
    %83 = vector.shape_cast %82 : vector<1x4x256xf32> to vector<4x256xf32>
    %84 = vector.shape_cast %81 : vector<4x256xf32> to vector<1x4x256xf32>
    tpu.vector_store %arg7[%c0_36, %c0_37, %c0_38], %84 {strides = array<i32>} : memref<1x4x256xf32, #tpu.memory_space<vmem>>, vector<1x4x256xf32>,
    return
  }
  func.func @transform_0(%arg0: i32, %arg1: i32) -> (i32, i32, i32) {
    %c0_i32 = arith.constant 0 : i32
    %c0_i32_0 = arith.constant 0 : i32
    %c0_i32_1 = arith.constant 0 : i32
    return %arg0, %c0_i32, %c0_i32_0 : i32, i32, i32
  }
  func.func @transform_1(%arg0: i32, %arg1: i32) -> (i32, i32) {
    %c0_i32 = arith.constant 0 : i32
    %c0_i32_0 = arith.constant 0 : i32
    %c0_i32_1 = arith.constant 0 : i32
    return %c0_i32, %c0_i32_0 : i32, i32
  }
  func.func @transform_2(%arg0: i32, %arg1: i32) -> (i32, i32) {
    %c0_i32 = arith.constant 0 : i32
    %c0_i32_0 = arith.constant 0 : i32
    %c0_i32_1 = arith.constant 0 : i32
    return %c0_i32, %c0_i32_0 : i32, i32
  }
  func.func @transform_3(%arg0: i32, %arg1: i32) -> (i32, i32) {
    %c0_i32 = arith.constant 0 : i32
    %c0_i32_0 = arith.constant 0 : i32
    %c0_i32_1 = arith.constant 0 : i32
    return %c0_i32, %c0_i32_0 : i32, i32
  }
  func.func @transform_4(%arg0: i32, %arg1: i32) -> (i32, i32) {
    %c0_i32 = arith.constant 0 : i32
    %c0_i32_0 = arith.constant 0 : i32
    %c0_i32_1 = arith.constant 0 : i32
    return %c0_i32, %c0_i32_0 : i32, i32
  }
  func.func @transform_5(%arg0: i32, %arg1: i32) -> (i32, i32, i32) {
    %c0_i32 = arith.constant 0 : i32
    %c0_i32_0 = arith.constant 0 : i32
    return %arg0, %c0_i32, %arg1 : i32, i32, i32
  }
}

</mosaic_0001>

<bundles_post_ra>
// kernel: tpu_custom_call.1
= control target key start
LH: loop header
LB: loop body
LE: loop exit
PB: predicated region body
PF: predicated region fallthrough
CT: control target
= control target key end

     0   :  { %10 = vsyncpa [#allocation4], 0  ;;  %s9242_s0 = inlined_call_operand.vmem [shape: f32[2,4,256], index: 0, kind: input, shape index: {}]   ;;  %s9243_s1 = inlined_call_operand.vmem [shape: f32[128,4], index: 1, kind: input, shape index: {}]   ;;  %s9244_s2 = inlined_call_operand.vmem [shape: f32[256,4], index: 2, kind: input, shape index: {}]   ;;  %s9245_s3 = inlined_call_operand.vmem [shape: f32[4,128], index: 3, kind: input, shape index: {}]   ;;  %s9246_s4 = inlined_call_operand.vmem [shape: f32[4,1], index: 4, kind: input, shape index: {}]   ;;  %s9247_s5 = inlined_call_operand.hbm [shape: f32[2,4,256], index: 5, kind: output, shape index: {}]  }
   0x1   :  { %12 = vsyncpa [#allocation4 + $0x1], 0  ;;  %s5765_s18 = smov 0   ;;  %s5767_s19 = smov 0  }
   0x2   :  { %s5769_s20 = smov 0   ;;  %s5771_s21 = smov 0  }
   0x3   :  { %s5773_s22 = smov 0   ;;  %s5775_s23 = smov 0  }
   0x4 LB: > { %s4548_s24 = sadd.s32 4294967295, %s5730_s23   ;;  %s4549_s25 = sadd.s32 4294967294, %s5730_s23   ;;  %s5730_s23 = sphi %s5775_s23, %s18_s23   ;;  %s5726_s22 = sphi %s5773_s22, %s10062_s22   ;;  %s5722_s21 = sphi %s5771_s21, %s10061_s21   ;;  %s5718_s20 = sphi %s5769_s20, %s10060_s20   ;;  %s5714_s19 = sphi %s5767_s19, %s10059_s19   ;;  %s5710_s18 = sphi %s5765_s18, %s10058_s18  }
   0x5   : > { %s30_s26 = sadd.s32 1, %s5726_s22  ;;  %s149_s27 = sadd.s32 1, %s5718_s20 }
   0x6   : > { %p32_p0 = scmp.ge.s32.totalorder %s30_s26, 2  ;;  %p159_p1 = scmp.ne.s32.totalorder %s5718_s20, %s5714_s19 }
   0x7   : > { %p160_p2 = scmp.eq.s32.totalorder %s4548_s24, 1  ;;  %p165_p3 = scmp.ne.s32.totalorder %s5714_s19, %s5710_s18 }
   0x8   : > { %s10064_s26 = smov (%p32_p0, %s30_s26), 0  ;;  %p166_p5 = scmp.eq.s32.totalorder %s4549_s25, 1 }
   0x9   : > { %p5805_p4 = por %p160_p2, %p159_p1  ;;  %s144_s29 = ssub.s32 %s5726_s22, %s10064_s26 }
   0xa   : > { %p4552_p6 = scmp.ge.s32.totalorder %s5730_s23, 1  ;;  %p147_p7 = scmp.eq.s32.totalorder %s144_s29, 0 }
   0xb   : > { %p5812_p8 = por %p166_p5, %p165_p3  ;;  %p204_p9 = scmp.lt.s32.totalorder %s5730_s23, 3 }
   0xc   : > { %s5818_s6 = scalar_select %p147_p7, %s5718_s20, %s149_s27  }
   0xd   : > { %p205_p10 = pnand %p4552_p6, %p204_p9 }
   0xf   : > { %208 = sbr.rel (%p205_p10) target bundleno = 2778 (0xada), region = 40 }
  0x16   : > { %p232_p11 = scmp.lt.s32.totalorder %s5722_s21, 1  ;;  %v9248_v0 = vmov 0.0   ;;  %vm370_vm0 = vcmask 1043456   ;;  %v239_v3 = vld [vmem:[%s9244_s2] sm:$0xff]  ;;  %vm273_vm1 = vcmask 31744   ;;  %v266_v4 = vld [vmem:[%s9244_s2 + $0xd8] sm:$0xff] }
  0x17   : > { %439 = vmatprep.mubr.f32.mxu0 %v9248_v0  ;;  %601 = vmatprep.mubr.f32.mxu1 %v9248_v0  ;;  %v240_v5 = vld [vmem:[%s9244_s2 + $0x8] sm:$0xff]  ;;  %v267_v6 = vld [vmem:[%s9244_s2 + $0xe0] sm:$0xff]  ;;  %v241_v7 = vld [vmem:[%s9244_s2 + $0x10] sm:$0xff]  ;;  %vm953_vm2 = vcmask 261120   ;;  %s4742_s9 = sshll.u32 %s5722_s21, 7 }
  0x18   : > { %s233_s7 = scalar_select %p232_p11, %s5722_s21, 1  ;;  %v268_v8 = vld [vmem:[%s9244_s2 + $0xe8] sm:$0xff]  ;;  %v242_v9 = vld [vmem:[%s9244_s2 + $0x18] sm:$0xff]  ;;  %v269_v10 = vld [vmem:[%s9244_s2 + $0xf0] sm:$0xff] }
  0x19   : > { %v270_v11 = vld [vmem:[%s9244_s2 + $0xf8] sm:$0xff]  ;;  %v632_v12 = vld [vmem:[%s9243_s1] sm:$0xff]  ;;  %v633_v13 = vld [vmem:[%s9243_s1 + $0x8] sm:$0xff]  ;;  %s9195_s14 = scalar_lea.hbm %s9247_s5, %s4742_s9  ;;  %s5734_s21 = smov [#allocation3]  }
  0x1a   : > { %s4741_s8 = sshll.u32 %s233_s7, 3  ;;  %v634_v14 = vld [vmem:[%s9243_s1 + $0x10] sm:$0xff]  ;;  %v635_v15 = vld [vmem:[%s9243_s1 + $0x18] sm:$0xff]  ;;  %v636_v16 = vld [vmem:[%s9243_s1 + $0x20] sm:$0xff]  ;;  %s229_s7 = sand.u32 1, %s5714_s19  }
  0x1b   : > { %s236_s11 = scalar_lea.vmem %s9242_s0, %s4741_s8  ;;  %v637_v17 = vld [vmem:[%s9243_s1 + $0x28] sm:$0xff]  ;;  %v638_v18 = vld [vmem:[%s9243_s1 + $0x30] sm:$0xff]  ;;  %v639_v19 = vld [vmem:[%s9243_s1 + $0x38] sm:$0xff]  ;;  %s4553_s8 = sshll.u32 %s229_s7, 3 }
  0x1c   : > { %v238_v1 = vld [vmem:[%s236_s11] sm:$0xff]  ;;  %v641_v21 = vld [vmem:[%s9243_s1 + $0x48] sm:$0xff]  ;;  %v642_v22 = vld [vmem:[%s9243_s1 + $0x50] sm:$0xff]  ;;  %s231_s10 = scalar_lea.vmem [#allocation3], %s4553_s8  ;;  %s4462_s15 = scalar_lea.sflag [#allocation4], %s229_s7 }
  0x1d   : > { %v272_v2 = vcombine.high %v238_v1, %v238_v1  ;;  %v640_v20 = vld [vmem:[%s9243_s1 + $0x40] sm:$0xff]  ;;  %v643_v23 = vld [vmem:[%s9243_s1 + $0x58] sm:$0xff]  ;;  %v645_v25 = vld [vmem:[%s9243_s1 + $0x68] sm:$0xff]  ;;  %s4478_s11 = sshll.u32 %s231_s10, 4  ;;  %s5656_s17 = sshll.u32 %s5734_s21, 4  ;;  %s9197_s11 = int_to_ptr.vmem [resolvable:$true] %s4478_s11  ;;  %s5657_s17 = int_to_ptr.vmem [resolvable:$false] %s5656_s17 }
  0x1e   : > { %v644_v24 = vld [vmem:[%s9243_s1 + $0x60] sm:$0xff]  ;;  %v646_v26 = vld [vmem:[%s9243_s1 + $0x70] sm:$0xff]  ;;  %v647_v27 = vld [vmem:[%s9243_s1 + $0x78] sm:$0xff]  ;;  %s5652_s16 = scalar_lea.vmem %s9197_s11, 128  ;;  %s5658_s24 = scalar_lea.vmem %s5657_s17, 256 }
  0x1f   : > { %4556 = vmatprep.subr.msk.mxu0 %vm370_vm0, %v272_v2  ;;  %5063 = vmatprep.subr.msk.mxu1 %vm370_vm0, %v272_v2  ;;  %p5653_p12 = scmp.ne.s32.totalorder %s9197_s11, %s5652_s16  ;;  %p5659_p1 = scmp.lt.s32.totalorder %s9197_s11, %s5657_s17 }
  0x20   : > { %4557 = vmatpush1.msk.msra.mxu0 %vm370_vm0, %v238_v1  ;;  %5064 = vmatpush1.msk.msra.mxu1 %vm370_vm0, %v238_v1  ;;  %p5660_p2 = scmp.lt.s32.totalorder %s5658_s24, %s5652_s16 }
  0x21   : > { %4558 = vmatmul.mubr.msk.f32.vlgmr.msra.gmra.mrb[0].mxu0 %vm273_vm1, %v239_v3  ;;  %4585 = vmatmul.mubr.msk.f32.vlgmr.msra.gmra.mrb[0].mxu1 %vm273_vm1, %v266_v4  ;;  %v243_v3 = vld [vmem:[%s9244_s2 + $0x20] sm:$0xff]  ;;  %v244_v4 = vld [vmem:[%s9244_s2 + $0x28] sm:$0xff]  ;;  %p5654_p13 = pnand %p5653_p12, %p5805_p4 }
  0x22   : > { %445 = vmatprep.mubr.f32.mxu0 %v9248_v0  ;;  %607 = vmatprep.mubr.f32.mxu1 %v9248_v0  ;;  %p5661_p3 = por %p5660_p2, %p5659_p1 }
  0x23   : > { %4590 = vmatprep.subr.msk.mxu1 %vm370_vm0, %v272_v2  ;;  %p5655_p0 = pneg %p5654_p13 }
  0x24   : > { %4591 = vmatpush1.msk.msra.mxu1 %vm370_vm0, %v238_v1 }
  0x25   : > { %4559 = vmatmul.mubr.msk.f32.gmra.mrb[2].mxu0 %vm273_vm1, %v240_v5  ;;  %4586 = vmatmul.mubr.msk.f32.gmra.mrb[2].mxu1 %vm273_vm1, %v267_v6  ;;  %v245_v5 = vld [vmem:[%s9244_s2 + $0x30] sm:$0xff]  ;;  %v246_v6 = vld [vmem:[%s9244_s2 + $0x38] sm:$0xff]  ;;  %p5662_p5 = pnand %p5661_p3, %p5655_p0 }
  0x26   : > { %451 = vmatprep.mubr.f32.mxu0 %v9248_v0  ;;  %613 = vmatprep.mubr.f32.mxu1 %v9248_v0 }
  0x29   : > { %4560 = vmatmul.mubr.msk.f32.gmra.mrb[4].mxu0 %vm273_vm1, %v241_v7  ;;  %4587 = vmatmul.mubr.msk.f32.gmra.mrb[4].mxu1 %vm273_vm1, %v268_v8  ;;  %v247_v7 = vld [vmem:[%s9244_s2 + $0x40] sm:$0xff] }
  0x2a   : > { %457 = vmatprep.mubr.f32.mxu0 %v9248_v0  ;;  %619 = vmatprep.mubr.f32.mxu1 %v9248_v0 }
  0x2d   : > { %4561 = vmatmul.mubr.msk.f32.gmra.mrb[6].mxu0 %vm273_vm1, %v242_v9  ;;  %4588 = vmatmul.mubr.msk.f32.gmra.mrb[6].mxu1 %vm273_vm1, %v269_v10 }
  0x2e   : > { %625 = vmatprep.mubr.f32.mxu1 %v9248_v0  ;;  %463 = vmatprep.mubr.f32.mxu0 %v9248_v0 }
  0x31   : > { %4589 = vmatmul.mubr.msk.f32.gmra.mrb[8].mxu1 %vm273_vm1, %v270_v11  ;;  %4562 = vmatmul.mubr.msk.f32.gmra.mrb[8].mxu0 %vm273_vm1, %v243_v3  ;;  %v248_v11 = vld [vmem:[%s9244_s2 + $0x48] sm:$0xff] }
  0x32   : > { %760 = vmatprep.mubr.f32.mxu1 %v9248_v0  ;;  %469 = vmatprep.mubr.f32.mxu0 %v9248_v0 }
  0x35   : > { %4592 = vmatmul.mubr.msk.f32.vlgmr.msra.gmra.mrb[10].mxu1 %vm273_vm1, %v632_v12  ;;  %4563 = vmatmul.mubr.msk.f32.gmra.mrb[10].mxu0 %vm273_vm1, %v244_v4 }
  0x36   : > { %766 = vmatprep.mubr.f32.mxu1 %v9248_v0  ;;  %475 = vmatprep.mubr.f32.mxu0 %v9248_v0 }
  0x39   : > { %4593 = vmatmul.mubr.msk.f32.gmra.mrb[12].mxu1 %vm273_vm1, %v633_v13  ;;  %4564 = vmatmul.mubr.msk.f32.gmra.mrb[12].mxu0 %vm273_vm1, %v245_v5 }
  0x3a   : > { %772 = vmatprep.mubr.f32.mxu1 %v9248_v0  ;;  %481 = vmatprep.mubr.f32.mxu0 %v9248_v0 }
  0x3d   : > { %4594 = vmatmul.mubr.msk.f32.gmra.mrb[14].mxu1 %vm273_vm1, %v634_v14  ;;  %4565 = vmatmul.mubr.msk.f32.gmra.mrb[14].mxu0 %vm273_vm1, %v246_v6 }
  0x3e   : > { %778 = vmatprep.mubr.f32.mxu1 %v9248_v0  ;;  %487 = vmatprep.mubr.f32.mxu0 %v9248_v0 }
  0x41   : > { %4595 = vmatmul.mubr.msk.f32.gmra.mrb[16].mxu1 %vm273_vm1, %v635_v15  ;;  %4566 = vmatmul.mubr.msk.f32.gmra.mrb[16].mxu0 %vm273_vm1, %v247_v7 }
  0x42   : > { %784 = vmatprep.mubr.f32.mxu1 %v9248_v0  ;;  %493 = vmatprep.mubr.f32.mxu0 %v9248_v0 }
  0x45   : > { %4596 = vmatmul.mubr.msk.f32.gmra.mrb[18].mxu1 %vm273_vm1, %v636_v16  ;;  %4567 = vmatmul.mubr.msk.f32.gmra.mrb[18].mxu0 %vm273_vm1, %v248_v11 }
  0x46   : > { %790 = vmatprep.mubr.f32.mxu1 %v9248_v0  ;;  %499 = vmatprep.mubr.f32.mxu0 %v9248_v0 }
  0x49   : > { %4597 = vmatmul.mubr.msk.f32.gmra.mrb[20].mxu1 %vm273_vm1, %v637_v17 }
  0x4a   : > { %796 = vmatprep.mubr.f32.mxu1 %v9248_v0 }
  0x4d   : > { %4598 = vmatmul.mubr.msk.f32.gmra.mrb[22].mxu1 %vm273_vm1, %v638_v18 }
  0x4e   : > { %802 = vmatprep.mubr.f32.mxu1 %v9248_v0 }
  0x51   : > { %4599 = vmatmul.mubr.msk.f32.gmra.mrb[24].mxu1 %vm273_vm1, %v639_v19 }
  0x52   : > { %808 = vmatprep.mubr.f32.mxu1 %v9248_v0 }
  0x55   : > { %4600 = vmatmul.mubr.msk.f32.gmra.mrb[26].mxu1 %vm273_vm1, %v640_v20 }
  0x56   : > { %814 = vmatprep.mubr.f32.mxu1 %v9248_v0 }
  0x59   : > { %4601 = vmatmul.mubr.msk.f32.gmra.mrb[28].mxu1 %vm273_vm1, %v641_v21 }
  0x5a   : > { %820 = vmatprep.mubr.f32.mxu1 %v9248_v0 }
  0x5d   : > { %4602 = vmatmul.mubr.msk.f32.gmra.mrb[30].mxu1 %vm273_vm1, %v642_v22  ;;  %v249_v22 = vld [vmem:[%s9244_s2 + $0x50] sm:$0xff] }
  0x5e   : > { %826 = vmatprep.mubr.f32.mxu1 %v9248_v0  ;;  %4568 = vmatmul.mubr.msk.f32.gmra.mrb[20].mxu0 %vm273_vm1, %v249_v22 }
  0x5f   : > { %505 = vmatprep.mubr.f32.mxu0 %v9248_v0 }
  0x61   : > { %4603 = vmatmul.mubr.msk.f32.gmra.mrb[32].mxu1 %vm273_vm1, %v643_v23 }
  0x62   : > { %832 = vmatprep.mubr.f32.mxu1 %v9248_v0 }
  0x65   : > { %4604 = vmatmul.mubr.msk.f32.gmra.mrb[34].mxu1 %vm273_vm1, %v644_v24 }
  0x66   : > { %838 = vmatprep.mubr.f32.mxu1 %v9248_v0 }
  0x69   : > { %4605 = vmatmul.mubr.msk.f32.gmra.mrb[36].mxu1 %vm273_vm1, %v645_v25 }
  0x6a   : > { %844 = vmatprep.mubr.f32.mxu1 %v9248_v0 }
  0x6d   : > { %4606 = vmatmul.mubr.msk.f32.gmra.mrb[38].mxu1 %vm273_vm1, %v646_v26 }
  0x6e   : > { %850 = vmatprep.mubr.f32.mxu1 %v9248_v0 }
  0x71   : > { %4607 = vmatmul.mubr.msk.f32.gmra.mrb[40].mxu1 %vm273_vm1, %v647_v27 }
  0x72   : > { %1114 = vmatprep.mubr.f32.mxu1 %v9248_v0 }
  0xf4   : > { %v441_v28 = vpop.f32.mrb[0].mxu0  ;;  %v5958_v29 = vpop.f32.mrb[0].mxu1 }
  0xf5   : > { %9469 = vst [vmem:[#allocation6_spill] sm:$0xff] %v5958_v29  ;;  %889 = vxpose.xlu0.b32.start [1/4] (short) %v441_v28, 128  ;;  %v443_v30 = vpop.f32.mrb[1].mxu0  ;;  %v5960_v31 = vpop.f32.mrb[1].mxu1 }
  0xf6   : > { %9470 = vst [vmem:[#allocation7_spill] sm:$0xff] %v5960_v31  ;;  %921 = vxpose.xlu1.b32.start [1/4] (short) %v443_v30, 128 }
  0xf8   : > { %v447_v32 = vpop.f32.mrb[2].mxu0  ;;  %v5962_v33 = vpop.f32.mrb[2].mxu1 }
  0xf9   : > { %9471 = vst [vmem:[#allocation8_spill] sm:$0xff] %v5962_v33  ;;  %890 = vxpose.xlu0.b32.cont [2/4] (short) %v447_v32, 128  ;;  %v449_v34 = vpop.f32.mrb[3].mxu0  ;;  %v5964_v35 = vpop.f32.mrb[3].mxu1 }
  0xfa   : > { %9472 = vst [vmem:[#allocation9_spill] sm:$0xff] %v5964_v35  ;;  %922 = vxpose.xlu1.b32.cont [2/4] (short) %v449_v34, 128 }
  0xfc   : > { %v453_v36 = vpop.f32.mrb[4].mxu0  ;;  %v5966_v37 = vpop.f32.mrb[4].mxu1 }
  0xfd   : > { %9473 = vst [vmem:[#allocation10_spill] sm:$0xff] %v5966_v37  ;;  %891 = vxpose.xlu0.b32.cont [3/4] (short) %v453_v36, 128  ;;  %v455_v38 = vpop.f32.mrb[5].mxu0  ;;  %v5968_v39 = vpop.f32.mrb[5].mxu1 }
  0xfe   : > { %9474 = vst [vmem:[#allocation11_spill] sm:$0xff] %v5968_v39  ;;  %923 = vxpose.xlu1.b32.cont [3/4] (short) %v455_v38, 128 }
 0x100   : > { %v459_v40 = vpop.f32.mrb[6].mxu0  ;;  %v5970_v41 = vpop.f32.mrb[6].mxu1 }
 0x101   : > { %9475 = vst [vmem:[#allocation12_spill] sm:$0xff] %v5970_v41  ;;  %892 = vxpose.xlu0.b32.end [4/4] (short) %v459_v40, 128  ;;  %v461_v42 = vpop.f32.mrb[7].mxu0  ;;  %v5972_v43 = vpop.f32.mrb[7].mxu1  ;;  %v250_v40 = vld [vmem:[%s9244_s2 + $0x58] sm:$0xff] }
 0x102   : > { %9476 = vst [vmem:[#allocation13_spill] sm:$0xff] %v5972_v43  ;;  %924 = vxpose.xlu1.b32.end [4/4] (short) %v461_v42, 128  ;;  %4569 = vmatmul.mubr.msk.f32.gmra.mrb[22].mxu0 %vm273_vm1, %v250_v40 }
 0x103   : > { %511 = vmatprep.mubr.f32.mxu0 %v9248_v0 }
 0x104   : > { %v5974_v44 = vpop.f32.mrb[8].mxu1 }
 0x105   : > { %9477 = vst [vmem:[#allocation14_spill] sm:$0xff] %v5974_v44  ;;  %v5976_v45 = vpop.f32.mrb[9].mxu1 }
 0x106   : > { %9478 = vst [vmem:[#allocation15_spill] sm:$0xff] %v5976_v45 }
 0x108   : > { %v762_v46 = vpop.f32.mrb[10].mxu1 }
 0x109   : > { %v764_v47 = vpop.f32.mrb[11].mxu1  ;;  %v857_v48 = vmul.f32 0.17677669, %v762_v46 }
 0x10a   : > { %v858_v49 = vmul.f32 0.17677669, %v764_v47 }
 0x10c   : > { %v768_v50 = vpop.f32.mrb[12].mxu1 }
 0x10d   : > { %v859_v51 = vmul.f32 0.17677669, %v768_v50  ;;  %v770_v52 = vpop.f32.mrb[13].mxu1 }
 0x10e   : > { %v860_v53 = vmul.f32 0.17677669, %v770_v52 }
 0x10f   : > { %v4745_v54 = vpack.c.bf16 %v859_v51, %v857_v48 }
 0x110   : > { %v4743_v55 = vpack.c.bf16 %v860_v53, %v858_v49  ;;  %v774_v56 = vpop.f32.mrb[14].mxu1 }
 0x111   : > { %v776_v57 = vpop.f32.mrb[15].mxu1  ;;  %v861_v58 = vmul.f32 0.17677669, %v774_v56 }
 0x112   : > { %4744 = vmatprep.subr.bf16.mxu1 %v4743_v55  ;;  %v862_v59 = vmul.f32 0.17677669, %v776_v57 }
 0x113   : > { %4746 = vmatpush1.bf16.msra.mxu1 %v4745_v54 }
 0x114   : > { %v780_v60 = vpop.f32.mrb[16].mxu1 }
 0x115   : > { %v863_v61 = vmul.f32 0.17677669, %v780_v60  ;;  %v782_v62 = vpop.f32.mrb[17].mxu1 }
 0x116   : > { %v864_v63 = vmul.f32 0.17677669, %v782_v62 }
 0x117   : > { %v4749_v1 = vpack.c.bf16 %v863_v61, %v861_v58 }
 0x118   : > { %v4747_v2 = vpack.c.bf16 %v864_v63, %v862_v59  ;;  %v786_v8 = vpop.f32.mrb[18].mxu1  ;;  %v251_v59 = vld [vmem:[%s9244_s2 + $0x60] sm:$0xff] }
 0x119   : > { %v6002_v9 = vmul.f32 0.17677669, %v786_v8  ;;  %v788_v10 = vpop.f32.mrb[19].mxu1  ;;  %4570 = vmatmul.mubr.msk.f32.gmra.mrb[24].mxu0 %vm273_vm1, %v251_v59  ;;  %v252_v8 = vld [vmem:[%s9244_s2 + $0x68] sm:$0xff] }
 0x11a   : > { %4748 = vmatprep.subr.bf16.mxu1 %v4747_v2  ;;  %v6008_v12 = vmul.f32 0.17677669, %v788_v10  ;;  %517 = vmatprep.mubr.f32.mxu0 %v9248_v0 }
 0x11b   : > { %4750 = vmatpush1.bf16.msra.mxu1 %v4749_v1  ;;  %9479 = vst [vmem:[#allocation16_spill] sm:$0xff] %v6002_v9 }
 0x11c   : > { %9480 = vst [vmem:[#allocation17_spill] sm:$0xff] %v6008_v12  ;;  %v792_v13 = vpop.f32.mrb[20].mxu1 }
 0x11d   : > { %v6010_v15 = vmul.f32 0.17677669, %v792_v13  ;;  %v794_v16 = vpop.f32.mrb[21].mxu1  ;;  %4571 = vmatmul.mubr.msk.f32.gmra.mrb[26].mxu0 %vm273_vm1, %v252_v8 }
 0x11e   : > { %v6013_v17 = vmul.f32 0.17677669, %v794_v16  ;;  %523 = vmatprep.mubr.f32.mxu0 %v9248_v0 }
 0x11f   : > { %9481 = vst [vmem:[#allocation18_spill] sm:$0xff] %v6010_v15 }
 0x120   : > { %9482 = vst [vmem:[#allocation19_spill] sm:$0xff] %v6013_v17  ;;  %v798_v18 = vpop.f32.mrb[22].mxu1 }
 0x121   : > { %v6019_v20 = vmul.f32 0.17677669, %v798_v18  ;;  %v800_v21 = vpop.f32.mrb[23].mxu1 }
 0x122   : > { %v6027_v24 = vmul.f32 0.17677669, %v800_v21 }
 0x123   : > { %9483 = vst [vmem:[#allocation20_spill] sm:$0xff] %v6019_v20 }
 0x124   : > { %9484 = vst [vmem:[#allocation21_spill] sm:$0xff] %v6027_v24  ;;  %v804_v25 = vpop.f32.mrb[24].mxu1 }
 0x125   : > { %v6029_v27 = vmul.f32 0.17677669, %v804_v25  ;;  %v806_v28 = vpop.f32.mrb[25].mxu1 }
 0x126   : > { %v6032_v30 = vmul.f32 0.17677669, %v806_v28 }
 0x127   : > { %9485 = vst [vmem:[#allocation22_spill] sm:$0xff] %v6029_v27 }
 0x128   : > { %9486 = vst [vmem:[#allocation23_spill] sm:$0xff] %v6032_v30  ;;  %v810_v32 = vpop.f32.mrb[26].mxu1 }
 0x129   : > { %v6038_v36 = vmul.f32 0.17677669, %v810_v32  ;;  %v812_v38 = vpop.f32.mrb[27].mxu1  ;;  %v253_v32 = vld [vmem:[%s9244_s2 + $0x70] sm:$0xff] }
 0x12a   : > { %v6046_v46 = vmul.f32 0.17677669, %v812_v38  ;;  %4572 = vmatmul.mubr.msk.f32.gmra.mrb[28].mxu0 %vm273_vm1, %v253_v32 }
 0x12b   : > { %9487 = vst [vmem:[#allocation24_spill] sm:$0xff] %v6038_v36  ;;  %529 = vmatprep.mubr.f32.mxu0 %v9248_v0 }
 0x12c   : > { %9488 = vst [vmem:[#allocation25_spill] sm:$0xff] %v6046_v46  ;;  %v816_v47 = vpop.f32.mrb[28].mxu1 }
 0x12d   : > { %v6048_v49 = vmul.f32 0.17677669, %v816_v47  ;;  %v818_v50 = vpop.f32.mrb[29].mxu1 }
 0x12e   : > { %v6051_v51 = vmul.f32 0.17677669, %v818_v50 }
 0x12f   : > { %9489 = vst [vmem:[#allocation26_spill] sm:$0xff] %v6048_v49 }
 0x130   : > { %9490 = vst [vmem:[#allocation27_spill] sm:$0xff] %v6051_v51  ;;  %v822_v52 = vpop.f32.mrb[30].mxu1 }
 0x131   : > { %v6057_v54 = vmul.f32 0.17677669, %v822_v52  ;;  %v824_v55 = vpop.f32.mrb[31].mxu1 }
 0x132   : > { %v6061_v57 = vmul.f32 0.17677669, %v824_v55 }
 0x133   : > { %9491 = vst [vmem:[#allocation28_spill] sm:$0xff] %v6057_v54 }
 0x134   : > { %9492 = vst [vmem:[#allocation29_spill] sm:$0xff] %v6061_v57  ;;  %v828_v58 = vpop.f32.mrb[32].mxu1 }
 0x135   : > { %v6067_v61 = vmul.f32 0.17677669, %v828_v58  ;;  %v830_v62 = vpop.f32.mrb[33].mxu1 }
 0x136   : > { %v6070_v63 = vmul.f32 0.17677669, %v830_v62 }
 0x137   : > { %9493 = vst [vmem:[#allocation30_spill] sm:$0xff] %v6067_v61 }
 0x138   : > { %9494 = vst [vmem:[#allocation31_spill] sm:$0xff] %v6070_v63  ;;  %v834_v1 = vpop.f32.mrb[34].mxu1 }
 0x139   : > { %v6075_v3 = vmul.f32 0.17677669, %v834_v1  ;;  %v836_v4 = vpop.f32.mrb[35].mxu1 }
 0x13a   : > { %v6080_v6 = vmul.f32 0.17677669, %v836_v4 }
 0x13b   : > { %9495 = vst [vmem:[#allocation32_spill] sm:$0xff] %v6075_v3 }
 0x13c   : > { %9496 = vst [vmem:[#allocation33_spill] sm:$0xff] %v6080_v6  ;;  %v840_v7 = vpop.f32.mrb[36].mxu1 }
 0x13d   : > { %v6086_v11 = vmul.f32 0.17677669, %v840_v7  ;;  %v842_v13 = vpop.f32.mrb[37].mxu1 }
 0x13f   : > { %9497 = vst [vmem:[#allocation34_spill] sm:$0xff] %v6086_v11 }
 0x140   : > { %v846_v16 = vpop.f32.mrb[38].mxu1 }
 0x141   : > { %v6094_v21 = vmul.f32 0.17677669, %v846_v16  ;;  %v848_v22 = vpop.f32.mrb[39].mxu1 }
 0x143   : > { %9499 = vst [vmem:[#allocation36_spill] sm:$0xff] %v6094_v21 }
 0x144   : > { %v852_v28 = vpop.f32.mrb[40].mxu1 }
 0x145   : > { %v6105_v40 = vmul.f32 0.17677669, %v852_v28  ;;  %v854_v47 = vpop.f32.mrb[41].mxu1 }
 0x147   : > { %9501 = vst [vmem:[#allocation38_spill] sm:$0xff] %v6105_v40 }
 0x175   : > { %v905_v14 = vpop.trf.xlu0 }
 0x176   : > { %4608 = vmatmul.mubr.msk.f32.vlgmr.msra.gmra.mrb[42].mxu1 %vm953_vm2, %v905_v14  ;;  %v6089_v14 = vmul.f32 0.17677669, %v842_v13 }
 0x177   : > { %1120 = vmatprep.mubr.f32.mxu1 %v9248_v0 }
 0x178   : > { %9498 = vst [vmem:[#allocation35_spill] sm:$0xff] %v6089_v14 }
 0x179   : > { %v906_v26 = vpop.trf.xlu0 }
 0x17a   : > { %4609 = vmatmul.mubr.msk.f32.gmra.mrb[44].mxu1 %vm953_vm2, %v906_v26  ;;  %v6099_v26 = vmul.f32 0.17677669, %v848_v22 }
 0x17b   : > { %1126 = vmatprep.mubr.f32.mxu1 %v9248_v0 }
 0x17c   : > { %9500 = vst [vmem:[#allocation37_spill] sm:$0xff] %v6099_v26 }
 0x17d   : > { %v907_v48 = vpop.trf.xlu0 }
 0x17e   : > { %4610 = vmatmul.mubr.msk.f32.gmra.mrb[46].mxu1 %vm953_vm2, %v907_v48  ;;  %v6108_v48 = vmul.f32 0.17677669, %v854_v47 }
 0x17f   : > { %1132 = vmatprep.mubr.f32.mxu1 %v9248_v0 }
 0x180   : > { %9502 = vst [vmem:[#allocation39_spill] sm:$0xff] %v6108_v48 }
 0x181   : > { %v908_v60 = vpop.trf.xlu0 }
 0x182   : > { %4611 = vmatmul.mubr.msk.f32.gmra.mrb[48].mxu1 %vm953_vm2, %v908_v60  ;;  %v937_v60 = vpop.trf.xlu1 }
 0x183   : > { %1138 = vmatprep.mubr.f32.mxu1 %v9248_v0 }
 0x185   : > { %v909_v10 = vpop.trf.xlu0 }
 0x186   : > { %4612 = vmatmul.mubr.msk.f32.gmra.mrb[50].mxu1 %vm953_vm2, %v909_v10  ;;  %v938_v1 = vpop.trf.xlu1 }
 0x187   : > { %1144 = vmatprep.mubr.f32.mxu1 %v9248_v0 }
 0x189   : > { %v910_v38 = vpop.trf.xlu0 }
 0x18a   : > { %4613 = vmatmul.mubr.msk.f32.gmra.mrb[52].mxu1 %vm953_vm2, %v910_v38  ;;  %v939_v8 = vpop.trf.xlu1 }
 0x18b   : > { %1150 = vmatprep.mubr.f32.mxu1 %v9248_v0 }
 0x18d   : > { %v911_v55 = vpop.trf.xlu0 }
 0x18e   : > { %4614 = vmatmul.mubr.msk.f32.gmra.mrb[54].mxu1 %vm953_vm2, %v911_v55  ;;  %v940_v13 = vpop.trf.xlu1 }
 0x18f   : > { %1156 = vmatprep.mubr.f32.mxu1 %v9248_v0 }
 0x191   : > { %v912_v58 = vpop.trf.xlu0 }
 0x192   : > { %4615 = vmatmul.mubr.msk.f32.gmra.mrb[56].mxu1 %vm953_vm2, %v912_v58  ;;  %v941_v28 = vpop.trf.xlu1 }
 0x193   : > { %1162 = vmatprep.mubr.f32.mxu1 %v9248_v0 }
 0x195   : > { %v913_v59 = vpop.trf.xlu0 }
 0x196   : > { %4616 = vmatmul.mubr.msk.f32.gmra.mrb[58].mxu1 %vm953_vm2, %v913_v59  ;;  %v942_v38 = vpop.trf.xlu1  ;;  %v254_v59 = vld [vmem:[%s9244_s2 + $0x78] sm:$0xff] }
 0x197   : > { %1168 = vmatprep.mubr.f32.mxu1 %v9248_v0  ;;  %4573 = vmatmul.mubr.msk.f32.gmra.mrb[30].mxu0 %vm273_vm1, %v254_v59 }
 0x198   : > { %535 = vmatprep.mubr.f32.mxu0 %v9248_v0 }
 0x199   : > { %v914_v62 = vpop.trf.xlu0 }
 0x19a   : > { %4617 = vmatmul.mubr.msk.f32.gmra.mrb[60].mxu1 %vm953_vm2, %v914_v62  ;;  %v943_v47 = vpop.trf.xlu1  ;;  %v255_v62 = vld [vmem:[%s9244_s2 + $0x80] sm:$0xff] }
 0x19b   : > { %1174 = vmatprep.mubr.f32.mxu1 %v9248_v0  ;;  %4574 = vmatmul.mubr.msk.f32.gmra.mrb[32].mxu0 %vm273_vm1, %v255_v62 }
 0x19c   : > { %541 = vmatprep.mubr.f32.mxu0 %v9248_v0 }
 0x19d   : > { %v915_v4 = vpop.trf.xlu0 }
 0x19e   : > { %4618 = vmatmul.mubr.msk.f32.gmra.mrb[62].mxu1 %vm953_vm2, %v915_v4  ;;  %v944_v55 = vpop.trf.xlu1  ;;  %v256_v4 = vld [vmem:[%s9244_s2 + $0x88] sm:$0xff] }
 0x19f   : > { %1180 = vmatprep.mubr.f32.mxu1 %v9248_v0  ;;  %4575 = vmatmul.mubr.msk.f32.gmra.mrb[34].mxu0 %vm273_vm1, %v256_v4 }
 0x1a0   : > { %547 = vmatprep.mubr.f32.mxu0 %v9248_v0 }
 0x1a1   : > { %v916_v7 = vpop.trf.xlu0 }
 0x1a2   : > { %4619 = vmatmul.mubr.msk.f32.gmra.mrb[64].mxu1 %vm953_vm2, %v916_v7  ;;  %v945_v58 = vpop.trf.xlu1 }
 0x1a3   : > { %1186 = vmatprep.mubr.f32.mxu1 %v9248_v0 }
 0x1a5   : > { %v917_v10 = vpop.trf.xlu0 }
 0x1a6   : > { %4620 = vmatmul.mubr.msk.f32.gmra.mrb[66].mxu1 %vm953_vm2, %v917_v10  ;;  %v258_v10 = vld [vmem:[%s9244_s2 + $0x98] sm:$0xff] }
 0x1a7   : > { %1192 = vmatprep.mubr.f32.mxu1 %v9248_v0 }
 0x1a9   : > { %v918_v16 = vpop.trf.xlu0 }
 0x1aa   : > { %4621 = vmatmul.mubr.msk.f32.gmra.mrb[68].mxu1 %vm953_vm2, %v918_v16 }
 0x1ab   : > { %1198 = vmatprep.mubr.f32.mxu1 %v9248_v0 }
 0x1ad   : > { %v919_v22 = vpop.trf.xlu0 }
 0x1ae   : > { %4622 = vmatmul.mubr.msk.f32.gmra.mrb[70].mxu1 %vm953_vm2, %v919_v22 }
 0x1af   : > { %1204 = vmatprep.mubr.f32.mxu1 %v9248_v0 }
 0x1b1   : > { %v920_v32 = vpop.trf.xlu0 }
 0x1b2   : > { %4623 = vmatmul.mubr.msk.f32.gmra.mrb[72].mxu1 %vm953_vm2, %v920_v32  ;;  %v465_v32 = vpop.f32.mrb[8].mxu0 }
 0x1b3   : > { %1210 = vmatprep.mubr.f32.mxu1 %v9248_v0  ;;  %1754 = vxpose.xlu0.b32.start [1/4] (short) %v465_v32, 128 }
 0x1b6   : > { %4624 = vmatmul.mubr.msk.f32.gmra.mrb[74].mxu1 %vm953_vm2, %v937_v60  ;;  %v946_v60 = vpop.trf.xlu1 }
 0x1b7   : > { %1216 = vmatprep.mubr.f32.mxu1 %v9248_v0 }
 0x1ba   : > { %4625 = vmatmul.mubr.msk.f32.gmra.mrb[76].mxu1 %vm953_vm2, %v938_v1  ;;  %v947_v1 = vpop.trf.xlu1 }
 0x1bb   : > { %1222 = vmatprep.mubr.f32.mxu1 %v9248_v0 }
 0x1be   : > { %4626 = vmatmul.mubr.msk.f32.gmra.mrb[78].mxu1 %vm953_vm2, %v939_v8  ;;  %v948_v7 = vpop.trf.xlu1  ;;  %v257_v8 = vld [vmem:[%s9244_s2 + $0x90] sm:$0xff] }
 0x1bf   : > { %1228 = vmatprep.mubr.f32.mxu1 %v9248_v0  ;;  %4576 = vmatmul.mubr.msk.f32.gmra.mrb[36].mxu0 %vm273_vm1, %v257_v8 }
 0x1c0   : > { %553 = vmatprep.mubr.f32.mxu0 %v9248_v0 }
 0x1c2   : > { %4627 = vmatmul.mubr.msk.f32.gmra.mrb[80].mxu1 %vm953_vm2, %v940_v13  ;;  %v949_v13 = vpop.trf.xlu1 }
 0x1c3   : > { %1234 = vmatprep.mubr.f32.mxu1 %v9248_v0  ;;  %4577 = vmatmul.mubr.msk.f32.gmra.mrb[38].mxu0 %vm273_vm1, %v258_v10 }
 0x1c4   : > { %559 = vmatprep.mubr.f32.mxu0 %v9248_v0 }
 0x1c6   : > { %4628 = vmatmul.mubr.msk.f32.gmra.mrb[82].mxu1 %vm953_vm2, %v941_v28  ;;  %v950_v16 = vpop.trf.xlu1 }
 0x1c7   : > { %1240 = vmatprep.mubr.f32.mxu1 %v9248_v0 }
 0x1ca   : > { %4629 = vmatmul.mubr.msk.f32.gmra.mrb[84].mxu1 %vm953_vm2, %v942_v38  ;;  %v951_v22 = vpop.trf.xlu1  ;;  %v467_v38 = vpop.f32.mrb[9].mxu0 }
 0x1cb   : > { %1246 = vmatprep.mubr.f32.mxu1 %v9248_v0  ;;  %1786 = vxpose.xlu1.b32.start [1/4] (short) %v467_v38, 128 }
 0x1ce   : > { %4630 = vmatmul.mubr.msk.f32.gmra.mrb[86].mxu1 %vm953_vm2, %v943_v47  ;;  %v952_v28 = vpop.trf.xlu1  ;;  %v471_v47 = vpop.f32.mrb[10].mxu0 }
 0x1cf   : > { %1252 = vmatprep.mubr.f32.mxu1 %v9248_v0  ;;  %1755 = vxpose.xlu0.b32.cont [2/4] (short) %v471_v47, 128 }
 0x1d2   : > { %4631 = vmatmul.mubr.msk.f32.gmra.mrb[88].mxu1 %vm953_vm2, %v944_v55  ;;  %v473_v55 = vpop.f32.mrb[11].mxu0 }
 0x1d3   : > { %1258 = vmatprep.mubr.f32.mxu1 %v9248_v0  ;;  %1787 = vxpose.xlu1.b32.cont [2/4] (short) %v473_v55, 128 }
 0x1d6   : > { %4632 = vmatmul.mubr.msk.f32.gmra.mrb[90].mxu1 %vm953_vm2, %v945_v58  ;;  %v477_v58 = vpop.f32.mrb[12].mxu0 }
 0x1d7   : > { %1264 = vmatprep.mubr.f32.mxu1 %v9248_v0  ;;  %v479_v59 = vpop.f32.mrb[13].mxu0  ;;  %1756 = vxpose.xlu0.b32.cont [3/4] (short) %v477_v58, 128 }
 0x1d8   : > { %1788 = vxpose.xlu1.b32.cont [3/4] (short) %v479_v59, 128 }
 0x1da   : > { %4633 = vmatmul.mubr.msk.f32.gmra.mrb[92].mxu1 %vm953_vm2, %v946_v60  ;;  %v483_v60 = vpop.f32.mrb[14].mxu0 }
 0x1db   : > { %1270 = vmatprep.mubr.f32.mxu1 %v9248_v0  ;;  %v485_v62 = vpop.f32.mrb[15].mxu0  ;;  %1757 = vxpose.xlu0.b32.end [4/4] (short) %v483_v60, 128 }
 0x1dc   : > { %1789 = vxpose.xlu1.b32.end [4/4] (short) %v485_v62, 128  ;;  %v489_v63 = vpop.f32.mrb[16].mxu0 }
 0x1dd   : > { %v491_v36 = vpop.f32.mrb[17].mxu0 }
 0x1de   : > { %4634 = vmatmul.mubr.msk.f32.gmra.mrb[94].mxu1 %vm953_vm2, %v947_v1  ;;  %v495_v46 = vpop.f32.mrb[18].mxu0 }
 0x1df   : > { %1276 = vmatprep.mubr.f32.mxu1 %v9248_v0  ;;  %v497_v51 = vpop.f32.mrb[19].mxu0 }
 0x1e0   : > { %v501_v27 = vpop.f32.mrb[20].mxu0 }
 0x1e2   : > { %4635 = vmatmul.mubr.msk.f32.gmra.mrb[96].mxu1 %vm953_vm2, %v948_v7 }
 0x1e3   : > { %1282 = vmatprep.mubr.f32.mxu1 %v9248_v0 }
 0x1e6   : > { %4636 = vmatmul.mubr.msk.f32.gmra.mrb[98].mxu1 %vm953_vm2, %v949_v13 }
 0x1e7   : > { %1288 = vmatprep.mubr.f32.mxu1 %v9248_v0 }
 0x1ea   : > { %4637 = vmatmul.mubr.msk.f32.gmra.mrb[100].mxu1 %vm953_vm2, %v950_v16 }
 0x1eb   : > { %1294 = vmatprep.mubr.f32.mxu1 %v9248_v0 }
 0x1ee   : > { %4638 = vmatmul.mubr.msk.f32.gmra.mrb[102].mxu1 %vm953_vm2, %v951_v22 }
 0x1ef   : > { %1300 = vmatprep.mubr.f32.mxu1 %v9248_v0 }
 0x1f2   : > { %4639 = vmatmul.mubr.msk.f32.gmra.mrb[104].mxu1 %vm953_vm2, %v952_v28 }
 0x20c   : > { %2618 = vxpose.xlu0.b32.start [1/4] (short) %v489_v63, 128 }
 0x20d   : > { %2650 = vxpose.xlu1.b32.start [1/4] (short) %v491_v36, 128  ;;  %v503_v36 = vpop.f32.mrb[21].mxu0 }
 0x20e   : > { %v507_v30 = vpop.f32.mrb[22].mxu0 }
 0x210   : > { %2619 = vxpose.xlu0.b32.cont [2/4] (short) %v495_v46, 128 }
 0x211   : > { %2651 = vxpose.xlu1.b32.cont [2/4] (short) %v497_v51, 128  ;;  %v509_v51 = vpop.f32.mrb[23].mxu0 }
 0x214   : > { %2620 = vxpose.xlu0.b32.cont [3/4] (short) %v501_v27, 128 }
 0x215   : > { %2652 = vxpose.xlu1.b32.cont [3/4] (short) %v503_v36, 128 }
 0x218   : > { %2621 = vxpose.xlu0.b32.end [4/4] (short) %v507_v30, 128 }
 0x219   : > { %2653 = vxpose.xlu1.b32.end [4/4] (short) %v509_v51, 128 }
 0x249   : > { %v6193_v1 = vpop.f32.mrb[42].mxu1 }
 0x24a   : > { %v6195_v4 = vpop.f32.mrb[43].mxu1 }
 0x24d   : > { %v6197_v7 = vpop.f32.mrb[44].mxu1 }
 0x24e   : > { %v6199_v8 = vpop.f32.mrb[45].mxu1 }
 0x251   : > { %v6201_v10 = vpop.f32.mrb[46].mxu1 }
 0x252   : > { %v1307_v13 = vmax.f32 %v6193_v1, %v6201_v10  ;;  %v6205_v16 = vpop.f32.mrb[47].mxu1 }
 0x253   : > { %v1344_v22 = vmax.f32 %v6195_v4, %v6205_v16 }
 0x255   : > { %v6209_v28 = vpop.f32.mrb[48].mxu1 }
 0x256   : > { %v1308_v32 = vmax.f32 %v6197_v7, %v6209_v28  ;;  %v6213_v38 = vpop.f32.mrb[49].mxu1 }
 0x257   : > { %v1345_v47 = vmax.f32 %v6199_v8, %v6213_v38 }
 0x259   : > { %v6217_v55 = vpop.f32.mrb[50].mxu1 }
 0x25a   : > { %v1309_v58 = vmax.f32 %v1307_v13, %v6217_v55  ;;  %v6220_v59 = vpop.f32.mrb[51].mxu1 }
 0x25b   : > { %v1346_v60 = vmax.f32 %v1344_v22, %v6220_v59 }
 0x25d   : > { %v6223_v62 = vpop.f32.mrb[52].mxu1 }
 0x25e   : > { %v1310_v50 = vmax.f32 %v1308_v32, %v6223_v62  ;;  %v6226_v52 = vpop.f32.mrb[53].mxu1 }
 0x25f   : > { %v1347_v18 = vmax.f32 %v1345_v47, %v6226_v52 }
 0x261   : > { %v6229_v25 = vpop.f32.mrb[54].mxu1 }
 0x262   : > { %v1311_v2 = vmax.f32 %v1309_v58, %v6229_v25  ;;  %v6232_v5 = vpop.f32.mrb[55].mxu1 }
 0x263   : > { %v1348_v13 = vmax.f32 %v1346_v60, %v6232_v5 }
 0x265   : > { %v6235_v53 = vpop.f32.mrb[56].mxu1 }
 0x266   : > { %v1312_v22 = vmax.f32 %v1310_v50, %v6235_v53  ;;  %v6238_v56 = vpop.f32.mrb[57].mxu1 }
 0x267   : > { %v1349_v32 = vmax.f32 %v1347_v18, %v6238_v56 }
 0x269   : > { %v6241_v34 = vpop.f32.mrb[58].mxu1 }
 0x26a   : > { %v1313_v47 = vmax.f32 %v1311_v2, %v6241_v34  ;;  %v6244_v42 = vpop.f32.mrb[59].mxu1 }
 0x26b   : > { %v1350_v58 = vmax.f32 %v1348_v13, %v6244_v42 }
 0x26d   : > { %v6247_v19 = vpop.f32.mrb[60].mxu1 }
 0x26e   : > { %v1314_v60 = vmax.f32 %v1312_v22, %v6247_v19  ;;  %v6250_v23 = vpop.f32.mrb[61].mxu1 }
 0x26f   : > { %v1351_v50 = vmax.f32 %v1349_v32, %v6250_v23 }
 0x271   : > { %v6253_v0 = vpop.f32.mrb[62].mxu1 }
 0x272   : > { %v1315_v18 = vmax.f32 %v1313_v47, %v6253_v0  ;;  %v6256_v44 = vpop.f32.mrb[63].mxu1 }
 0x273   : > { %v1352_v2 = vmax.f32 %v1350_v58, %v6256_v44 }
 0x275   : > { %v6259_v45 = vpop.f32.mrb[64].mxu1 }
 0x276   : > { %v1316_v13 = vmax.f32 %v1314_v60, %v6259_v45  ;;  %v6262_v41 = vpop.f32.mrb[65].mxu1 }
 0x277   : > { %v1353_v22 = vmax.f32 %v1351_v50, %v6262_v41 }
 0x279   : > { %v6265_v43 = vpop.f32.mrb[66].mxu1 }
 0x27a   : > { %v1317_v32 = vmax.f32 %v1315_v18, %v6265_v43  ;;  %v6268_v37 = vpop.f32.mrb[67].mxu1 }
 0x27b   : > { %v1354_v47 = vmax.f32 %v1352_v2, %v6268_v37 }
 0x27d   : > { %v6271_v39 = vpop.f32.mrb[68].mxu1 }
 0x27e   : > { %v1318_v58 = vmax.f32 %v1316_v13, %v6271_v39  ;;  %v6274_v33 = vpop.f32.mrb[69].mxu1 }
 0x27f   : > { %9503 = vst [vmem:[#allocation40_spill] sm:$0xff] %v6274_v33  ;;  %v1355_v60 = vmax.f32 %v1353_v22, %v6274_v33 }
 0x281   : > { %v6277_v29 = vpop.f32.mrb[70].mxu1 }
 0x282   : > { %v1319_v50 = vmax.f32 %v1317_v32, %v6277_v29  ;;  %v6280_v31 = vpop.f32.mrb[71].mxu1 }
 0x283   : > { %9504 = vst [vmem:[#allocation41_spill] sm:$0xff] %v6280_v31  ;;  %v1356_v18 = vmax.f32 %v1354_v47, %v6280_v31 }
 0x285   : > { %v6283_v21 = vpop.f32.mrb[72].mxu1 }
 0x286   : > { %v1320_v2 = vmax.f32 %v1318_v58, %v6283_v21  ;;  %v6286_v40 = vpop.f32.mrb[73].mxu1 }
 0x287   : > { %9505 = vst [vmem:[#allocation42_spill] sm:$0xff] %v6286_v40  ;;  %v1357_v13 = vmax.f32 %v1355_v60, %v6286_v40 }
 0x289   : > { %v6289_v26 = vpop.f32.mrb[74].mxu1 }
 0x28a   : > { %v1321_v22 = vmax.f32 %v1319_v50, %v6289_v26  ;;  %v6292_v48 = vpop.f32.mrb[75].mxu1 }
 0x28b   : > { %9506 = vst [vmem:[#allocation43_spill] sm:$0xff] %v6292_v48  ;;  %v1358_v32 = vmax.f32 %v1356_v18, %v6292_v48 }
 0x28d   : > { %v6295_v3 = vpop.f32.mrb[76].mxu1 }
 0x28e   : > { %v1322_v47 = vmax.f32 %v1320_v2, %v6295_v3  ;;  %v6298_v11 = vpop.f32.mrb[77].mxu1 }
 0x28f   : > { %9507 = vst [vmem:[#allocation44_spill] sm:$0xff] %v6298_v11  ;;  %v1359_v58 = vmax.f32 %v1357_v13, %v6298_v11 }
 0x291   : > { %v6301_v6 = vpop.f32.mrb[78].mxu1 }
 0x292   : > { %v1323_v60 = vmax.f32 %v1321_v22, %v6301_v6  ;;  %v6304_v14 = vpop.f32.mrb[79].mxu1 }
 0x293   : > { %9508 = vst [vmem:[#allocation45_spill] sm:$0xff] %v6304_v14  ;;  %v1360_v50 = vmax.f32 %v1358_v32, %v6304_v14 }
 0x295   : > { %v6307_v35 = vpop.f32.mrb[80].mxu1 }
 0x296   : > { %v1324_v18 = vmax.f32 %v1322_v47, %v6307_v35  ;;  %v6310_v54 = vpop.f32.mrb[81].mxu1 }
 0x297   : > { %9509 = vst [vmem:[#allocation46_spill] sm:$0xff] %v6310_v54  ;;  %v1361_v2 = vmax.f32 %v1359_v58, %v6310_v54 }
 0x299   : > { %v6313_v61 = vpop.f32.mrb[82].mxu1 }
 0x29a   : > { %v1325_v13 = vmax.f32 %v1323_v60, %v6313_v61  ;;  %v6316_v57 = vpop.f32.mrb[83].mxu1 }
 0x29b   : > { %9510 = vst [vmem:[#allocation47_spill] sm:$0xff] %v6316_v57  ;;  %v1362_v22 = vmax.f32 %v1360_v50, %v6316_v57 }
 0x29d   : > { %v6319_v32 = vpop.f32.mrb[84].mxu1 }
 0x29e   : > { %v1326_v47 = vmax.f32 %v1324_v18, %v6319_v32  ;;  %v6322_v49 = vpop.f32.mrb[85].mxu1 }
 0x29f   : > { %9511 = vst [vmem:[#allocation48_spill] sm:$0xff] %v6322_v49  ;;  %v1363_v58 = vmax.f32 %v1361_v2, %v6322_v49 }
 0x2a1   : > { %v6325_v60 = vpop.f32.mrb[86].mxu1 }
 0x2a2   : > { %v1327_v50 = vmax.f32 %v1325_v13, %v6325_v60  ;;  %v6328_v20 = vpop.f32.mrb[87].mxu1 }
 0x2a3   : > { %9512 = vst [vmem:[#allocation49_spill] sm:$0xff] %v6328_v20  ;;  %v1364_v63 = vmax.f32 %v1362_v22, %v6328_v20 }
 0x2a5   : > { %v6331_v18 = vpop.f32.mrb[88].mxu1 }
 0x2a6   : > { %v1328_v2 = vmax.f32 %v1326_v47, %v6331_v18  ;;  %v6334_v24 = vpop.f32.mrb[89].mxu1 }
 0x2a7   : > { %9513 = vst [vmem:[#allocation50_spill] sm:$0xff] %v6334_v24  ;;  %v1365_v46 = vmax.f32 %v1363_v58, %v6334_v24 }
 0x2a9   : > { %v6337_v13 = vpop.f32.mrb[90].mxu1 }
 0x2aa   : > { %v1329_v22 = vmax.f32 %v1327_v50, %v6337_v13  ;;  %v6340_v9 = vpop.f32.mrb[91].mxu1 }
 0x2ab   : > { %9514 = vst [vmem:[#allocation51_spill] sm:$0xff] %v6340_v9  ;;  %v1366_v27 = vmax.f32 %v1364_v63, %v6340_v9 }
 0x2ad   : > { %v6343_v15 = vpop.f32.mrb[92].mxu1 }
 0x2ae   : > { %v1330_v47 = vmax.f32 %v1328_v2, %v6343_v15  ;;  %v6346_v36 = vpop.f32.mrb[93].mxu1 }
 0x2af   : > { %9515 = vst [vmem:[#allocation52_spill] sm:$0xff] %v6346_v36  ;;  %v1367_v58 = vmax.f32 %v1365_v46, %v6346_v36 }
 0x2b1   : > { %v6349_v12 = vpop.f32.mrb[94].mxu1 }
 0x2b2   : > { %v1331_v30 = vmax.f32 %v1329_v22, %v6349_v12  ;;  %v6352_v17 = vpop.f32.mrb[95].mxu1 }
 0x2b3   : > { %9516 = vst [vmem:[#allocation53_spill] sm:$0xff] %v6352_v17  ;;  %v1368_v50 = vmax.f32 %v1366_v27, %v6352_v17 }
 0x2b5   : > { %v6355_v51 = vpop.f32.mrb[96].mxu1 }
 0x2b6   : > { %9517 = vst [vmem:[#allocation54_spill] sm:$0xff] %v6355_v51  ;;  %v1332_v63 = vmax.f32 %v1330_v47, %v6355_v51  ;;  %v6358_v9 = vpop.f32.mrb[97].mxu1 }
 0x2b7   : > { %9518 = vst [vmem:[#allocation55_spill] sm:$0xff] %v6358_v9  ;;  %v1369_v2 = vmax.f32 %v1367_v58, %v6358_v9 }
 0x2b9   : > { %v6361_v24 = vpop.f32.mrb[98].mxu1 }
 0x2ba   : > { %v1333_v46 = vmax.f32 %v1331_v30, %v6361_v24  ;;  %v6364_v36 = vpop.f32.mrb[99].mxu1 }
 0x2bb   : > { %9519 = vst [vmem:[#allocation56_spill] sm:$0xff] %v6364_v36  ;;  %v1370_v22 = vmax.f32 %v1368_v50, %v6364_v36 }
 0x2bd   : > { %v6367_v20 = vpop.f32.mrb[100].mxu1 }
 0x2be   : > { %v1334_v27 = vmax.f32 %v1332_v63, %v6367_v20  ;;  %v6370_v17 = vpop.f32.mrb[101].mxu1 }
 0x2bf   : > { %9520 = vst [vmem:[#allocation57_spill] sm:$0xff] %v6370_v17  ;;  %v1371_v47 = vmax.f32 %v1369_v2, %v6370_v17 }
 0x2c1   : > { %v6373_v49 = vpop.f32.mrb[102].mxu1 }
 0x2c2   : > { %v1335_v58 = vmax.f32 %v1333_v46, %v6373_v49  ;;  %v6376_v9 = vpop.f32.mrb[103].mxu1  ;;  %v259_v46 = vld [vmem:[%s9244_s2 + $0xa0] sm:$0xff] }
 0x2c3   : > { %9521 = vst [vmem:[#allocation58_spill] sm:$0xff] %v6376_v9  ;;  %v1372_v30 = vmax.f32 %v1370_v22, %v6376_v9  ;;  %4578 = vmatmul.mubr.msk.f32.gmra.mrb[40].mxu0 %vm273_vm1, %v259_v46 }
 0x2c5   : > { %v6379_v57 = vpop.f32.mrb[104].mxu1 }
 0x2c6   : > { %v1336_v50 = vmax.f32 %v1334_v27, %v6379_v57  ;;  %v6382_v36 = vpop.f32.mrb[105].mxu1  ;;  %v9523_v27 = vmov 0.0  }
 0x2c7   : > { %9522 = vst [vmem:[#allocation59_spill] sm:$0xff] %v6382_v36  ;;  %v1373_v63 = vmax.f32 %v1371_v47, %v6382_v36  ;;  %565 = vmatprep.mubr.f32.mxu0 %v9523_v27  ;;  %v260_v47 = vld [vmem:[%s9244_s2 + $0xa8] sm:$0xff] }
 0x2c8   : > { %v1337_v54 = vmax.f32 %v1335_v58, %v1336_v50  ;;  %4579 = vmatmul.mubr.msk.f32.gmra.mrb[42].mxu0 %vm273_vm1, %v260_v47 }
 0x2c9   : > { %v1374_v14 = vmax.f32 %v1372_v30, %v1373_v63  ;;  %571 = vmatprep.mubr.f32.mxu0 %v9523_v27 }
 0x2ca   : > { %v1338_v11 = vrot.slane %v1337_v54, 4 }
 0x2cb   : > { %v1375_v2 = vrot.slane %v1374_v14, 4 }
 0x2cc   : > { %v1339_v17 = vmax.f32 %v1337_v54, %v1338_v11 }
 0x2cd   : > { %v1376_v48 = vmax.f32 %v1374_v14, %v1375_v2 }
 0x2ce   : > { %v1340_v40 = vrot.slane %v1339_v17, 2 }
 0x2cf   : > { %v1377_v22 = vrot.slane %v1376_v48, 2 }
 0x2d0   : > { %v1341_v9 = vmax.f32 %v1339_v17, %v1340_v40 }
 0x2d1   : > { %v1378_v31 = vmax.f32 %v1376_v48, %v1377_v22 }
 0x2d2   : > { %v1342_v33 = vrot.slane %v1341_v9, 1 }
 0x2d3   : > { %v1379_v58 = vrot.slane %v1378_v31, 1 }
 0x2d4   : > { %v6394_v54 = vmax.f32 %v1341_v9, %v1342_v33  ;;  %v261_v33 = vld [vmem:[%s9244_s2 + $0xb0] sm:$0xff]  ;;  %v513_v9 = vpop.f32.mrb[24].mxu0 }
 0x2d5   : > { %v6397_v11 = vmax.f32 %v1378_v31, %v1379_v58  ;;  %4580 = vmatmul.mubr.msk.f32.gmra.mrb[44].mxu0 %vm273_vm1, %v261_v33  ;;  %3482 = vxpose.xlu0.b32.start [1/4] (short) %v513_v9, 128  ;;  %v9545_v33 = vld [vmem:[#allocation55_spill] sm:$0xff] }
 0x2d6   : > { %v1381_v17 = vsub.f32 %v6193_v1, %v6394_v54  ;;  %v1383_v14 = vsub.f32 %v6197_v7, %v6394_v54  ;;  %v1385_v40 = vsub.f32 %v6201_v10, %v6394_v54  ;;  %v1387_v48 = vsub.f32 %v6209_v28, %v6394_v54  ;;  %v515_v28 = vpop.f32.mrb[25].mxu0  ;;  %577 = vmatprep.mubr.f32.mxu0 %v9523_v27 }
 0x2d7   : > { %v1389_v31 = vsub.f32 %v6217_v55, %v6394_v54  ;;  %v1391_v1 = vsub.f32 %v6223_v62, %v6394_v54  ;;  %v1393_v7 = vsub.f32 %v6229_v25, %v6394_v54  ;;  %v1395_v10 = vsub.f32 %v6235_v53, %v6394_v54  ;;  %v262_v53 = vld [vmem:[%s9244_s2 + $0xb8] sm:$0xff]  ;;  %v519_v25 = vpop.f32.mrb[26].mxu0  ;;  %3514 = vxpose.xlu1.b32.start [1/4] (short) %v515_v28, 128 }
 0x2d8   : > { %v1397_v30 = vsub.f32 %v6241_v34, %v6394_v54  ;;  %v1399_v50 = vsub.f32 %v6247_v19, %v6394_v54  ;;  %v1401_v55 = vsub.f32 %v6253_v0, %v6394_v54  ;;  %v1403_v62 = vsub.f32 %v6259_v45, %v6394_v54  ;;  %v521_v45 = vpop.f32.mrb[27].mxu0 }
 0x2d9   : > { %v1405_v63 = vsub.f32 %v6265_v43, %v6394_v54  ;;  %v1407_v34 = vsub.f32 %v6271_v39, %v6394_v54  ;;  %v1409_v19 = vsub.f32 %v6277_v29, %v6394_v54  ;;  %v1411_v0 = vsub.f32 %v6283_v21, %v6394_v54  ;;  %v525_v22 = vpop.f32.mrb[28].mxu0  ;;  %4581 = vmatmul.mubr.msk.f32.gmra.mrb[46].mxu0 %vm273_vm1, %v262_v53 }
 0x2da   : > { %v1413_v2 = vsub.f32 %v6289_v26, %v6394_v54  ;;  %v1415_v46 = vsub.f32 %v6295_v3, %v6394_v54  ;;  %v1417_v43 = vsub.f32 %v6301_v6, %v6394_v54  ;;  %v1419_v39 = vsub.f32 %v6307_v35, %v6394_v54  ;;  %v527_v6 = vpop.f32.mrb[29].mxu0  ;;  %583 = vmatprep.mubr.f32.mxu0 %v9523_v27  ;;  %v9540_v35 = vld [vmem:[#allocation49_spill] sm:$0xff] }
 0x2db   : > { %v1421_v29 = vsub.f32 %v6313_v61, %v6394_v54  ;;  %v1423_v21 = vsub.f32 %v6319_v32, %v6394_v54  ;;  %v1425_v26 = vsub.f32 %v6325_v60, %v6394_v54  ;;  %v1427_v3 = vsub.f32 %v6331_v18, %v6394_v54  ;;  %v263_v60 = vld [vmem:[%s9244_s2 + $0xc0] sm:$0xff]  ;;  %v531_v18 = vpop.f32.mrb[30].mxu0  ;;  %3483 = vxpose.xlu0.b32.cont [2/4] (short) %v519_v25, 128 }
 0x2dc   : > { %v533_v53 = vpop.f32.mrb[31].mxu0  ;;  %v1445_v32 = vmul.f32 1.442695, %v1381_v17  ;;  %v1449_v61 = vmul.f32 1.442695, %v1383_v14  ;;  %3515 = vxpose.xlu1.b32.cont [2/4] (short) %v521_v45, 128  ;;  %v264_v17 = vld [vmem:[%s9244_s2 + $0xc8] sm:$0xff] }
 0x2dd   : > { %v1453_v47 = vmul.f32 1.442695, %v1385_v40  ;;  %v1457_v51 = vmul.f32 1.442695, %v1387_v48  ;;  %4582 = vmatmul.mubr.msk.f32.gmra.mrb[48].mxu0 %vm273_vm1, %v263_v60  ;;  %v1461_v9 = vmul.f32 1.442695, %v1389_v31 }
 0x2de   : > { %5124 = vpow2.f32 %v1445_v32  ;;  %589 = vmatprep.mubr.f32.mxu0 %v9523_v27  ;;  %v1465_v14 = vmul.f32 1.442695, %v1391_v1  ;;  %v1469_v40 = vmul.f32 1.442695, %v1393_v7  ;;  %v265_v48 = vld [vmem:[%s9244_s2 + $0xd0] sm:$0xff] }
 0x2df   : > { %5126 = vpow2.f32 %v1449_v61  ;;  %3484 = vxpose.xlu0.b32.cont [3/4] (short) %v525_v22, 128  ;;  %v1473_v25 = vmul.f32 1.442695, %v1395_v10  ;;  %v1477_v45 = vmul.f32 1.442695, %v1397_v30  ;;  %v1481_v31 = vmul.f32 1.442695, %v1399_v50 }
 0x2e0   : > { %5128 = vpow2.f32 %v1453_v47  ;;  %3516 = vxpose.xlu1.b32.cont [3/4] (short) %v527_v6, 128  ;;  %v1485_v32 = vmul.f32 1.442695, %v1401_v55  ;;  %v1489_v60 = vmul.f32 1.442695, %v1403_v62  ;;  %v1493_v58 = vmul.f32 1.442695, %v1405_v63 }
 0x2e1   : > { %5130 = vpow2.f32 %v1457_v51  ;;  %4583 = vmatmul.mubr.msk.f32.gmra.mrb[50].mxu0 %vm273_vm1, %v264_v17  ;;  %v1497_v1 = vmul.f32 1.442695, %v1407_v34  ;;  %v1501_v7 = vmul.f32 1.442695, %v1409_v19  ;;  %v1505_v22 = vmul.f32 1.442695, %v1411_v0 }
 0x2e2   : > { %5132 = vpow2.f32 %v1461_v9  ;;  %595 = vmatprep.mubr.f32.mxu0 %v9523_v27  ;;  %v1509_v6 = vmul.f32 1.442695, %v1413_v2  ;;  %v1513_v47 = vmul.f32 1.442695, %v1415_v46  ;;  %v6490_v51 = vmul.f32 1.442695, %v1417_v43 }
 0x2e3   : > { %5134 = vpow2.f32 %v1465_v14  ;;  %3485 = vxpose.xlu0.b32.end [4/4] (short) %v531_v18, 128  ;;  %v6492_v10 = vmul.f32 1.442695, %v1419_v39  ;;  %v6494_v30 = vmul.f32 1.442695, %v1421_v29  ;;  %v6496_v50 = vmul.f32 1.442695, %v1423_v21 }
 0x2e4   : > { %5136 = vpow2.f32 %v1469_v40  ;;  %3517 = vxpose.xlu1.b32.end [4/4] (short) %v533_v53, 128  ;;  %v6499_v55 = vmul.f32 1.442695, %v1425_v26  ;;  %v6501_v62 = vmul.f32 1.442695, %v1427_v3  ;;  %v6505_v34 = vpop.f32.mrb[32].mxu0  ;;  %v9531_v9 = vld [vmem:[#allocation43_spill] sm:$0xff] }
 0x2e5   : > { %5138 = vpow2.f32 %v1473_v25  ;;  %4584 = vmatmul.mubr.msk.f32.gmra.mrb[52].mxu0 %vm273_vm1, %v265_v48  ;;  %9524 = vst [vmem:[#allocation60_spill] sm:$0xff] %v6505_v34  ;;  %v539_v46 = vpop.f32.mrb[33].mxu0  ;;  %v9527_v48 = vld [vmem:[#allocation40_spill] sm:$0xff]  ;;  %v9536_v18 = vld [vmem:[#allocation46_spill] sm:$0xff]  ;;  %v9537_v0 = vld [vmem:[#allocation47_spill] sm:$0xff] }
 0x2e6   : > { %5140 = vpow2.f32 %v1477_v45  ;;  %1711 = vmatprep.mubr.f32.mxu0 %v539_v46  ;;  %v6521_v26 = vpop.f32.mrb[34].mxu0  ;;  %v9530_v46 = vld [vmem:[#allocation42_spill] sm:$0xff]  ;;  %v9533_v21 = vld [vmem:[#allocation44_spill] sm:$0xff]  ;;  %v9542_v19 = vld [vmem:[#allocation51_spill] sm:$0xff] }
 0x2e7   : > { %5142 = vpow2.f32 %v1481_v31  ;;  %9525 = vst [vmem:[#allocation61_spill] sm:$0xff] %v6521_v26  ;;  %v6531_v53 = vpop.f32.mrb[35].mxu0 }
 0x2e8   : > { %v6513_v43 = vpop.eup %5124  ;;  %5144 = vpow2.f32 %v1485_v32  ;;  %9526 = vst [vmem:[#allocation62_spill] sm:$0xff] %v6531_v53  ;;  %v6541_v45 = vpop.f32.mrb[36].mxu0  ;;  %v9529_v32 = vld [vmem:[#allocation41_spill] sm:$0xff]  ;;  %v9550_v53 = vsub.f32 %v6343_v15, %v6394_v54 }
 0x2e9   : > { %v6523_v3 = vpop.eup %5126  ;;  %5146 = vpow2.f32 %v1489_v60  ;;  %9528 = vst [vmem:[#allocation40_spill] sm:$0xff] %v6541_v45  ;;  %v6551_v61 = vpop.f32.mrb[37].mxu0 }
 0x2ea   : > { %v6533_v17 = vpop.eup %5128  ;;  %5148 = vpow2.f32 %v1493_v58  ;;  %v1573_v14 = vadd.f32 %v6523_v3, %v6513_v43  ;;  %9532 = vst [vmem:[#allocation41_spill] sm:$0xff] %v6551_v61  ;;  %v6560_v60 = vpop.f32.mrb[38].mxu0  ;;  %v9549_v61 = vsub.f32 %v6337_v13, %v6394_v54  ;;  %v1545_v27 = vmul.f32 1.442695, %v9550_v53 }
 0x2eb   : > { %v6543_v31 = vpop.eup %5130  ;;  %5150 = vpow2.f32 %v1497_v1  ;;  %v9534_v1 = vld [vmem:[#allocation45_spill] sm:$0xff]  ;;  %9535 = vst [vmem:[#allocation42_spill] sm:$0xff] %v6560_v60  ;;  %v6570_v63 = vpop.f32.mrb[39].mxu0 }
 0x2ec   : > { %v6553_v40 = vpop.eup %5132  ;;  %5152 = vpow2.f32 %v1501_v7  ;;  %v1574_v25 = vadd.f32 %v6533_v17, %v1573_v14  ;;  %v9538_v7 = vld [vmem:[#allocation48_spill] sm:$0xff]  ;;  %9539 = vst [vmem:[#allocation43_spill] sm:$0xff] %v6570_v63  ;;  %v9544_v63 = vld [vmem:[#allocation53_spill] sm:$0xff]  ;;  %v1541_v28 = vmul.f32 1.442695, %v9549_v61 }
 0x2ed   : > { %v6562_v2 = vpop.eup %5134  ;;  %5154 = vpow2.f32 %v1505_v22  ;;  %v9541_v22 = vld [vmem:[#allocation50_spill] sm:$0xff]  ;;  %v9543_v14 = vld [vmem:[#allocation52_spill] sm:$0xff] }
 0x2ee   : > { %v6572_v29 = vpop.eup %5136  ;;  %5156 = vpow2.f32 %v1509_v6  ;;  %v1575_v39 = vadd.f32 %v6543_v31, %v1574_v25 }
 0x2ef   : > { %v6579_v58 = vpop.eup %5138  ;;  %5158 = vpow2.f32 %v1513_v47  ;;  %v9546_v47 = vld [vmem:[#allocation56_spill] sm:$0xff] }
 0x2f0   : > { %v6587_v45 = vpop.eup %5140  ;;  %5160 = vpow2.f32 %v6490_v51  ;;  %v1576_v25 = vadd.f32 %v6553_v40, %v1575_v39 }
 0x2f1   : > { %v6595_v26 = vpop.eup %5142  ;;  %5162 = vpow2.f32 %v6492_v10 }
 0x2f2   : > { %v6604_v39 = vpop.eup %5144  ;;  %5164 = vpow2.f32 %v6494_v30  ;;  %v1577_v34 = vadd.f32 %v6562_v2, %v1576_v25  ;;  %v9551_v30 = vsub.f32 %v6349_v12, %v6394_v54  ;;  %v9552_v25 = vld [vmem:[#allocation54_spill] sm:$0xff] }
 0x2f3   : > { %v6611_v10 = vpop.eup %5146  ;;  %5166 = vpow2.f32 %v6496_v50  ;;  %v9553_v50 = vsub.f32 %v9552_v25, %v6394_v54  ;;  %v9557_v25 = vsub.f32 %v6373_v49, %v6394_v54 }
 0x2f4   : > { %v6617_v6 = vpop.eup %5148  ;;  %5168 = vpow2.f32 %v6499_v55  ;;  %v1549_v51 = vmul.f32 1.442695, %v9551_v30  ;;  %v1578_v13 = vadd.f32 %v6572_v29, %v1577_v34  ;;  %v9554_v55 = vsub.f32 %v6361_v24, %v6394_v54 }
 0x2f5   : > { %v6624_v61 = vpop.eup %5150  ;;  %5170 = vpow2.f32 %v6501_v62  ;;  %v1553_v36 = vmul.f32 1.442695, %v9553_v50  ;;  %v9555_v34 = vsub.f32 %v6367_v20, %v6394_v54 }
 0x2f6   : > { %v6630_v15 = vpop.eup %5152  ;;  %5172 = vpow2.f32 %v1541_v28  ;;  %v1557_v53 = vmul.f32 1.442695, %v9554_v55  ;;  %v1579_v12 = vadd.f32 %v6579_v58, %v1578_v13  ;;  %v1565_v28 = vmul.f32 1.442695, %v9557_v25 }
 0x2f7   : > { %v6636_v30 = vpop.eup %5154  ;;  %5174 = vpow2.f32 %v1545_v27  ;;  %v1561_v62 = vmul.f32 1.442695, %v9555_v34  ;;  %v9558_v13 = vsub.f32 %v6379_v57, %v6394_v54  ;;  %v9561_v57 = vsub.f32 %v6205_v16, %v6397_v11 }
 0x2f8   : > { %v6641_v60 = vpop.eup %5156  ;;  %5176 = vpow2.f32 %v1549_v51  ;;  %v1580_v50 = vadd.f32 %v6587_v45, %v1579_v12  ;;  %v9559_v51 = vsub.f32 %v6195_v4, %v6397_v11  ;;  %v9560_v12 = vsub.f32 %v6199_v8, %v6397_v11 }
 0x2f9   : > { %9556 = vst [vmem:[#allocation44_spill] sm:$0xff] %v6641_v60  ;;  %v6647_v24 = vpop.eup %5158  ;;  %5178 = vpow2.f32 %v1553_v36  ;;  %v1569_v27 = vmul.f32 1.442695, %v9558_v13  ;;  %v1455_v54 = vmul.f32 1.442695, %v9561_v57  ;;  %v9562_v4 = vsub.f32 %v6213_v38, %v6397_v11 }
 0x2fa   : > { %v6652_v55 = vpop.eup %5160  ;;  %5180 = vpow2.f32 %v1557_v53  ;;  %v1581_v20 = vadd.f32 %v6595_v26, %v1580_v50  ;;  %v1447_v34 = vmul.f32 1.442695, %v9559_v51  ;;  %v1451_v36 = vmul.f32 1.442695, %v9560_v12 }
 0x2fb   : > { %v6658_v49 = vpop.eup %5162  ;;  %5182 = vpow2.f32 %v1561_v62  ;;  %v1459_v50 = vmul.f32 1.442695, %v9562_v4  ;;  %v9563_v62 = vsub.f32 %v6220_v59, %v6397_v11  ;;  %v9564_v8 = vsub.f32 %v6226_v52, %v6397_v11 }
 0x2fc   : > { %v6666_v25 = vpop.eup %5164  ;;  %5184 = vpow2.f32 %v1565_v28  ;;  %v1582_v53 = vadd.f32 %v6604_v39, %v1581_v20  ;;  %v9565_v28 = vsub.f32 %v6232_v5, %v6397_v11  ;;  %v9566_v20 = vsub.f32 %v6238_v56, %v6397_v11 }
 0x2fd   : > { %v1463_v13 = vmul.f32 1.442695, %v9563_v62  ;;  %v6675_v51 = vpop.eup %5166  ;;  %5186 = vpow2.f32 %v1569_v27  ;;  %v1467_v16 = vmul.f32 1.442695, %v9564_v8  ;;  %v9567_v27 = vsub.f32 %v6244_v42, %v6397_v11 }
 0x2fe   : > { %v1471_v12 = vmul.f32 1.442695, %v9565_v28  ;;  %v1475_v38 = vmul.f32 1.442695, %v9566_v20  ;;  %v6686_v57 = vpop.eup %5168  ;;  %v1583_v59 = vadd.f32 %v6611_v10, %v1582_v53  ;;  %5188 = vpow2.f32 %v1447_v34 }
 0x2ff   : > { %v1479_v4 = vmul.f32 1.442695, %v9567_v27  ;;  %v9568_v52 = vsub.f32 %v6250_v23, %v6397_v11  ;;  %v6695_v8 = vpop.eup %5170  ;;  %5190 = vpow2.f32 %v1451_v36 }
 0x300   : > { %v6703_v53 = vpop.eup %5172  ;;  %v1584_v42 = vadd.f32 %v6617_v6, %v1583_v59  ;;  %5192 = vpow2.f32 %v1455_v54 }
 0x301   : > { %v1483_v62 = vmul.f32 1.442695, %v9568_v52  ;;  %v6710_v28 = vpop.eup %5174  ;;  %5194 = vpow2.f32 %v1459_v50  ;;  %v9569_v50 = vsub.f32 %v6256_v44, %v6397_v11  ;;  %v9570_v52 = vsub.f32 %v6262_v41, %v6397_v11 }
 0x302   : > { %v6718_v59 = vpop.eup %5176  ;;  %v1585_v54 = vadd.f32 %v6624_v61, %v1584_v42  ;;  %5196 = vpow2.f32 %v1463_v13 }
 0x303   : > { %v6725_v23 = vpop.eup %5178  ;;  %5198 = vpow2.f32 %v1467_v16  ;;  %v1487_v36 = vmul.f32 1.442695, %v9569_v50  ;;  %v1491_v27 = vmul.f32 1.442695, %v9570_v52 }
 0x304   : > { %v6733_v42 = vpop.eup %5180  ;;  %v1586_v13 = vadd.f32 %v6630_v15, %v1585_v54  ;;  %5200 = vpow2.f32 %v1471_v12  ;;  %v9571_v12 = vsub.f32 %v6268_v37, %v6397_v11  ;;  %v9576_v37 = vsub.f32 %v9533_v21, %v6397_v11 }
 0x305   : > { %v6741_v34 = vpop.eup %5182  ;;  %5202 = vpow2.f32 %v1475_v38  ;;  %v9572_v38 = vsub.f32 %v9527_v48, %v6397_v11  ;;  %v9575_v48 = vsub.f32 %v9531_v9, %v6397_v11  ;;  %v9579_v21 = vsub.f32 %v9537_v0, %v6397_v11 }
 0x306   : > { %v6746_v20 = vpop.eup %5184  ;;  %v1587_v5 = vadd.f32 %v6636_v30, %v1586_v13  ;;  %5204 = vpow2.f32 %v1479_v4  ;;  %v1495_v44 = vmul.f32 1.442695, %v9571_v12  ;;  %v9573_v4 = vsub.f32 %v9529_v32, %v6397_v11 }
 0x307   : > { %v6754_v50 = vpop.eup %5186  ;;  %5206 = vpow2.f32 %v1483_v62  ;;  %v1499_v41 = vmul.f32 1.442695, %v9572_v38  ;;  %v9574_v62 = vsub.f32 %v9530_v46, %v6397_v11  ;;  %v1511_v38 = vmul.f32 1.442695, %v9575_v48 }
 0x308   : > { %v5189_v52 = vpop.eup %5188  ;;  %v1588_v16 = vadd.f32 %v6641_v60, %v1587_v5  ;;  %5208 = vpow2.f32 %v1487_v36  ;;  %v1503_v13 = vmul.f32 1.442695, %v9573_v4  ;;  %v9577_v46 = vsub.f32 %v9534_v1, %v6397_v11 }
 0x309   : > { %v5191_v12 = vpop.eup %5190  ;;  %5210 = vpow2.f32 %v1491_v27  ;;  %v1507_v54 = vmul.f32 1.442695, %v9574_v62  ;;  %v1515_v27 = vmul.f32 1.442695, %v9576_v37  ;;  %v1527_v37 = vmul.f32 1.442695, %v9579_v21 }
 0x30a   : > { %v5193_v56 = vpop.eup %5192  ;;  %v1589_v5 = vadd.f32 %v6647_v24, %v1588_v16  ;;  %5212 = vpow2.f32 %v1495_v44  ;;  %v1610_v36 = vadd.f32 %v5191_v12, %v5189_v52  ;;  %v4751_v32 = vpack.c.bf16 %v5191_v12, %v5189_v52 }
 0x30b   : > { %v5195_v4 = vpop.eup %5194  ;;  %5214 = vpow2.f32 %v1499_v41  ;;  %v1519_v62 = vmul.f32 1.442695, %v9577_v46  ;;  %v9578_v41 = vsub.f32 %v9536_v18, %v6397_v11  ;;  %v9580_v1 = vpack.c.bf16 %v6523_v3, %v6513_v43 }
 0x30c   : > { %v5197_v60 = vpop.eup %5196  ;;  %v1590_v9 = vadd.f32 %v6652_v55, %v1589_v5  ;;  %5216 = vpow2.f32 %v1503_v13  ;;  %v1611_v48 = vadd.f32 %v5193_v56, %v1610_v36  ;;  %4752 = vmatprep.subr.bf16.mxu0 %v4751_v32  ;;  %v4755_v16 = vpack.c.bf16 %v5195_v4, %v5193_v56 }
 0x30d   : > { %v5199_v44 = vpop.eup %5198  ;;  %5218 = vpow2.f32 %v1507_v54  ;;  %v1523_v52 = vmul.f32 1.442695, %v9578_v41  ;;  %4754 = vmatpush1.bf16.msra.mxu0 %v9580_v1  ;;  %v9581_v18 = vsub.f32 %v9538_v7, %v6397_v11  ;;  %v9582_v0 = vsub.f32 %v9540_v35, %v6397_v11 }
 0x30e   : > { %v5201_v12 = vpop.eup %5200  ;;  %v1591_v13 = vadd.f32 %v6658_v49, %v1590_v9  ;;  %5220 = vpow2.f32 %v1511_v38  ;;  %v1612_v5 = vadd.f32 %v5195_v4, %v1611_v48  ;;  %4756 = vmatprep.subr.bf16.mxu0 %v4755_v16  ;;  %v4759_v56 = vpack.c.bf16 %v5199_v44, %v5197_v60 }
 0x30f   : > { %v5203_v54 = vpop.eup %5202  ;;  %5222 = vpow2.f32 %v1515_v27  ;;  %v1531_v36 = vmul.f32 1.442695, %v9581_v18  ;;  %v1535_v32 = vmul.f32 1.442695, %v9582_v0  ;;  %v9583_v4 = vsub.f32 %v9541_v22, %v6397_v11 }
 0x310   : > { %v5205_v46 = vpop.eup %5204  ;;  %v1592_v43 = vadd.f32 %v6666_v25, %v1591_v13  ;;  %5224 = vpow2.f32 %v1519_v62  ;;  %v1613_v3 = vadd.f32 %v5197_v60, %v1612_v5  ;;  %v4763_v9 = vpack.c.bf16 %v5203_v54, %v5201_v12 }
 0x311   : > { %v5207_v38 = vpop.eup %5206  ;;  %5226 = vpow2.f32 %v1523_v52  ;;  %v1539_v27 = vmul.f32 1.442695, %v9583_v4  ;;  %v9584_v7 = vsub.f32 %v9542_v19, %v6397_v11  ;;  %v9585_v35 = vpack.c.bf16 %v6543_v31, %v6533_v17 }
 0x312   : > { %v5209_v16 = vpop.eup %5208  ;;  %v1593_v41 = vadd.f32 %v6675_v51, %v1592_v43  ;;  %5228 = vpow2.f32 %v1527_v37  ;;  %v1614_v60 = vadd.f32 %v5199_v44, %v1613_v3  ;;  %v4767_v62 = vpack.c.bf16 %v5207_v38, %v5205_v46  ;;  %v9591_v3 = vld [vmem:[#allocation57_spill] sm:$0xff] }
 0x313   : > { %v1543_v48 = vmul.f32 1.442695, %v9584_v7  ;;  %4758 = vmatpush1.bf16.msra.mxu0 %v9585_v35  ;;  %v5211_v52 = vpop.eup %5210  ;;  %5230 = vpow2.f32 %v1531_v36  ;;  %v9586_v22 = vsub.f32 %v9543_v14, %v6397_v11  ;;  %v9587_v19 = vsub.f32 %v9544_v63, %v6397_v11 }
 0x314   : > { %4760 = vmatprep.subr.bf16.mxu0 %v4759_v56  ;;  %v5213_v13 = vpop.eup %5212  ;;  %v1594_v17 = vadd.f32 %v6686_v57, %v1593_v41  ;;  %5232 = vpow2.f32 %v1535_v32  ;;  %v1615_v31 = vadd.f32 %v5201_v12, %v1614_v60  ;;  %v4771_v5 = vpack.c.bf16 %v5211_v52, %v5209_v16 }
 0x315   : > { %v1547_v21 = vmul.f32 1.442695, %v9586_v22  ;;  %v1551_v1 = vmul.f32 1.442695, %v9587_v19  ;;  %v5215_v37 = vpop.eup %5214  ;;  %5234 = vpow2.f32 %v1539_v27  ;;  %v9588_v44 = vsub.f32 %v9545_v33, %v6397_v11  ;;  %v9593_v27 = vld [vmem:[#allocation58_spill] sm:$0xff] }
 0x316   : > { %v9589_v14 = vsub.f32 %v9546_v47, %v6397_v11  ;;  %v9590_v63 = vpack.c.bf16 %v6562_v2, %v6553_v40  ;;  %v5217_v36 = vpop.eup %5216  ;;  %v1595_v0 = vadd.f32 %v6695_v8, %v1594_v17  ;;  %5236 = vpow2.f32 %v1543_v48 }
 0x317   : > { %v1555_v56 = vmul.f32 1.442695, %v9588_v44  ;;  %v1616_v12 = vadd.f32 %v5203_v54, %v1615_v31  ;;  %v4775_v32 = vpack.c.bf16 %v5215_v37, %v5213_v13  ;;  %v5219_v43 = vpop.eup %5218  ;;  %5238 = vpow2.f32 %v1547_v21  ;;  %v9595_v54 = vld [vmem:[#allocation59_spill] sm:$0xff] }
 0x318   : > { %v1559_v18 = vmul.f32 1.442695, %v9589_v14  ;;  %4762 = vmatpush1.bf16.msra.mxu0 %v9590_v63  ;;  %v9592_v33 = vsub.f32 %v9591_v3, %v6397_v11  ;;  %v9594_v47 = vsub.f32 %v9593_v27, %v6397_v11  ;;  %v5221_v35 = vpop.eup %5220  ;;  %v1596_v2 = vadd.f32 %v6703_v53, %v1595_v0 }
 0x319   : > { %4764 = vmatprep.subr.bf16.mxu0 %v4763_v9  ;;  %5240 = vpow2.f32 %v1551_v1  ;;  %v1617_v40 = vadd.f32 %v5205_v46, %v1616_v12  ;;  %v4779_v41 = vpack.c.bf16 %v5219_v43, %v5217_v36  ;;  %v5223_v48 = vpop.eup %5222  ;;  %v9596_v9 = vsub.f32 %v9595_v54, %v6397_v11 }
 0x31a   : > { %v1563_v4 = vmul.f32 1.442695, %v9592_v33  ;;  %v1567_v7 = vmul.f32 1.442695, %v9594_v47  ;;  %5242 = vpow2.f32 %v1555_v56  ;;  %v9597_v22 = vpack.c.bf16 %v6579_v58, %v6572_v29  ;;  %v5225_v21 = vpop.eup %5224 }
 0x31b   : > { %v1571_v60 = vmul.f32 1.442695, %v9596_v9  ;;  %v1597_v19 = vadd.f32 %v6710_v28, %v1596_v2  ;;  %5244 = vpow2.f32 %v1559_v18  ;;  %v1618_v17 = vadd.f32 %v5207_v38, %v1617_v40  ;;  %v5227_v1 = vpop.eup %5226 }
 0x31c   : > { %4766 = vmatpush1.bf16.msra.mxu0 %v9597_v22  ;;  %v4783_v31 = vpack.c.bf16 %v5223_v48, %v5221_v35  ;;  %5246 = vpow2.f32 %v1563_v4  ;;  %v5229_v46 = vpop.eup %5228  ;;  %v4787_v11 = vpack.c.bf16 %v5227_v1, %v5225_v21  ;;  %v9598_v29 = vpack.c.bf16 %v6595_v26, %v6587_v45 }
 0x31d   : > { %4768 = vmatprep.subr.bf16.mxu0 %v4767_v62  ;;  %v1598_v44 = vadd.f32 %v6718_v59, %v1597_v19  ;;  %5248 = vpow2.f32 %v1567_v7  ;;  %v1619_v56 = vadd.f32 %v5209_v16, %v1618_v17  ;;  %v5231_v14 = vpop.eup %5230  ;;  %v9599_v4 = vpack.c.bf16 %v6611_v10, %v6604_v39 }
 0x31e   : > { %5250 = vpow2.f32 %v1571_v60  ;;  %v5233_v58 = vpop.eup %5232  ;;  %v4791_v62 = vpack.c.bf16 %v5231_v14, %v5229_v46  ;;  %v9601_v19 = vpack.c.bf16 %v6636_v30, %v6630_v15  ;;  %v9605_v15 = vpack.c.bf16 %v6675_v51, %v6666_v25 }
 0x31f   : > { %v1599_v18 = vadd.f32 %v6725_v23, %v1598_v44  ;;  %v1620_v38 = vadd.f32 %v5211_v52, %v1619_v56  ;;  %v5235_v63 = vpop.eup %5234  ;;  %v9608_v25 = vpack.c.bf16 %v6725_v23, %v6718_v59  ;;  %v9614_v59 = vld [vmem:[#allocation60_spill] sm:$0xff] }
 0x320   : > { %4770 = vmatpush1.bf16.msra.mxu0 %v9598_v29  ;;  %v5237_v0 = vpop.eup %5236  ;;  %v4795_v33 = vpack.c.bf16 %v5235_v63, %v5233_v58  ;;  %v9611_v29 = vld [vmem:[#allocation19_spill] sm:$0xff] }
 0x321   : > { %4772 = vmatprep.subr.bf16.mxu0 %v4771_v5  ;;  %v1600_v12 = vadd.f32 %v6733_v42, %v1599_v18  ;;  %v1621_v3 = vadd.f32 %v5213_v13, %v1620_v38  ;;  %v5239_v16 = vpop.eup %5238  ;;  %v9600_v13 = vpack.c.bf16 %v6624_v61, %v6617_v6  ;;  %v9602_v6 = vld [vmem:[#allocation44_spill] sm:$0xff]  ;;  %v9615_v18 = vld [vmem:[#allocation18_spill] sm:$0xff] }
 0x322   : > { %v4799_v47 = vpack.c.bf16 %v5239_v16, %v5237_v0  ;;  %v9603_v61 = vpack.c.bf16 %v6647_v24, %v9602_v6  ;;  %v9606_v24 = vpack.c.bf16 %v6695_v8, %v6686_v57  ;;  %v9609_v8 = vpack.c.bf16 %v6741_v34, %v6733_v42  ;;  %v9616_v38 = vld [vmem:[#allocation16_spill] sm:$0xff] }
 0x323   : > { %v5241_v27 = vpop.eup %5240  ;;  %v1601_v26 = vadd.f32 %v6741_v34, %v1600_v12  ;;  %v1622_v45 = vadd.f32 %v5215_v37, %v1621_v3  ;;  %v9618_v34 = vld [vmem:[#allocation62_spill] sm:$0xff]  ;;  %v9622_v3 = vld [vmem:[#allocation61_spill] sm:$0xff] }
 0x324   : > { %4774 = vmatpush1.bf16.msra.mxu0 %v9599_v4  ;;  %v5243_v52 = vpop.eup %5242 }
 0x325   : > { %4776 = vmatprep.subr.bf16.mxu0 %v4775_v32  ;;  %v5245_v5 = vpop.eup %5244  ;;  %v1602_v7 = vadd.f32 %v6746_v20, %v1601_v26  ;;  %v1623_v2 = vadd.f32 %v5217_v36, %v1622_v45  ;;  %v4803_v40 = vpack.c.bf16 %v5243_v52, %v5241_v27  ;;  %v9628_v26 = vld [vmem:[#allocation43_spill] sm:$0xff]  ;;  %v9629_v45 = vld [vmem:[#allocation42_spill] sm:$0xff] }
 0x326   : > { %v5247_v54 = vpop.eup %5246 }
 0x327   : > { %v5249_v9 = vpop.eup %5248  ;;  %v6852_v39 = vadd.f32 %v6754_v50, %v1602_v7  ;;  %v1624_v10 = vadd.f32 %v5219_v43, %v1623_v2  ;;  %v4807_v37 = vpack.c.bf16 %v5247_v54, %v5245_v5  ;;  %v9604_v43 = vpack.c.bf16 %v6658_v49, %v6652_v55 }
 0x328   : > { %4778 = vmatpush1.bf16.msra.mxu0 %v9600_v13  ;;  %v5251_v32 = vpop.eup %5250  ;;  %v9607_v55 = vpack.c.bf16 %v6710_v28, %v6703_v53  ;;  %v9610_v28 = vpack.c.bf16 %v6754_v50, %v6746_v20  ;;  %v9623_v20 = vld [vmem:[#allocation22_spill] sm:$0xff]  ;;  %v9624_v50 = vld [vmem:[#allocation20_spill] sm:$0xff]  ;;  %v1802_v13 = vpop.trf.xlu1 }
 0x329   : > { %4780 = vmatprep.subr.bf16.mxu0 %v4779_v41  ;;  %v1625_v60 = vadd.f32 %v5221_v35, %v1624_v10  ;;  %v4811_v22 = vpack.c.bf16 %v5251_v32, %v5249_v9 }
 0x32b   : > { %v1626_v36 = vadd.f32 %v5223_v48, %v1625_v60 }
 0x32c   : > { %4782 = vmatpush1.bf16.msra.mxu0 %v9601_v19  ;;  %v1803_v10 = vpop.trf.xlu1 }
 0x32d   : > { %4784 = vmatprep.subr.bf16.mxu0 %v4783_v31  ;;  %v1627_v17 = vadd.f32 %v5225_v21, %v1626_v36  ;;  %v1770_v31 = vpop.trf.xlu0 }
 0x32f   : > { %v1628_v44 = vadd.f32 %v5227_v1, %v1627_v17 }
 0x330   : > { %4786 = vmatpush1.bf16.msra.mxu0 %v9603_v61 }
 0x331   : > { %4788 = vmatprep.subr.bf16.mxu0 %v4787_v11  ;;  %v1629_v56 = vadd.f32 %v5229_v46, %v1628_v44  ;;  %v1771_v51 = vpop.trf.xlu0 }
 0x333   : > { %v1630_v35 = vadd.f32 %v5231_v14, %v1629_v56 }
 0x334   : > { %4790 = vmatpush1.bf16.msra.mxu0 %v9604_v43 }
 0x335   : > { %4792 = vmatprep.subr.bf16.mxu0 %v4791_v62  ;;  %v1631_v41 = vadd.f32 %v5233_v58, %v1630_v35  ;;  %v1772_v53 = vpop.trf.xlu0  ;;  %v9612_v58 = vld [vmem:[#allocation17_spill] sm:$0xff]  ;;  %v9617_v62 = vpack.c.bf16 %v9615_v18, %v9616_v38 }
 0x336   : > { %v9613_v23 = vpack.c.bf16 %v9611_v29, %v9612_v58  ;;  %v1604_v58 = vrot.slane %v6852_v39, 4 }
 0x337   : > { %v1632_v30 = vadd.f32 %v5235_v63, %v1631_v41  ;;  %v9619_v63 = vld [vmem:[#allocation23_spill] sm:$0xff] }
 0x338   : > { %4794 = vmatpush1.bf16.msra.mxu0 %v9605_v15 }
 0x339   : > { %4796 = vmatprep.subr.bf16.mxu0 %v4795_v33  ;;  %v1633_v48 = vadd.f32 %v5237_v0, %v1632_v30  ;;  %v1773_v42 = vpop.trf.xlu0  ;;  %v9620_v0 = vld [vmem:[#allocation21_spill] sm:$0xff]  ;;  %v9625_v33 = vpack.c.bf16 %v9623_v20, %v9624_v50 }
 0x33a   : > { %v9621_v12 = vpack.c.bf16 %v9619_v63, %v9620_v0 }
 0x33b   : > { %v1634_v21 = vadd.f32 %v5239_v16, %v1633_v48  ;;  %v9626_v16 = vld [vmem:[#allocation41_spill] sm:$0xff] }
 0x33c   : > { %4798 = vmatpush1.bf16.msra.mxu0 %v9606_v24 }
 0x33d   : > { %4800 = vmatprep.subr.bf16.mxu0 %v4799_v47  ;;  %v1635_v1 = vadd.f32 %v5241_v27, %v1634_v21  ;;  %v1774_v4 = vpop.trf.xlu0  ;;  %v9627_v27 = vld [vmem:[#allocation40_spill] sm:$0xff]  ;;  %v9630_v47 = vmov 0.0  }
 0x33f   : > { %v1636_v49 = vadd.f32 %v5243_v52, %v1635_v1 }
 0x340   : > { %4802 = vmatpush1.bf16.msra.mxu0 %v9607_v55 }
 0x341   : > { %4804 = vmatprep.subr.bf16.mxu0 %v4803_v40  ;;  %v1637_v46 = vadd.f32 %v5245_v5, %v1636_v49  ;;  %v1775_v52 = vpop.trf.xlu0 }
 0x343   : > { %v1638_v11 = vadd.f32 %v5247_v54, %v1637_v46 }
 0x344   : > { %4806 = vmatpush1.bf16.msra.mxu0 %v9608_v25 }
 0x345   : > { %4808 = vmatprep.subr.bf16.mxu0 %v4807_v37  ;;  %v1639_v57 = vadd.f32 %v5249_v9, %v1638_v11  ;;  %v1776_v5 = vpop.trf.xlu0 }
 0x347   : > { %v6878_v14 = vadd.f32 %v5251_v32, %v1639_v57  ;;  %v1804_v32 = vpop.trf.xlu1 }
 0x348   : > { %4810 = vmatpush1.bf16.msra.mxu0 %v9609_v8 }
 0x349   : > { %4812 = vmatprep.subr.bf16.mxu0 %v4811_v22  ;;  %v1777_v7 = vpop.trf.xlu0 }
 0x34b   : > { %v1805_v22 = vpop.trf.xlu1 }
 0x34c   : > { %4814 = vmatpush1.bf16.msra.mxu0 %v9610_v28 }
 0x34d   : > { %4816 = vmatprep.subr.bf16.mxu0 %v9613_v23  ;;  %v1778_v2 = vpop.trf.xlu0  ;;  %v1641_v23 = vrot.slane %v6878_v14, 4 }
 0x34f   : > { %1712 = vmatmul.mubr.f32.vlgmr.msra.gmra.mrb[54].mxu0 %v9614_v59  ;;  %v1806_v36 = vpop.trf.xlu1  ;;  %v1605_v59 = vadd.f32 %v1604_v58, %v6852_v39  ;;  %v1642_v18 = vadd.f32 %v1641_v23, %v6878_v14 }
 0x350   : > { %4818 = vmatpush1.bf16.msra.mxu0 %v9617_v62  ;;  %1717 = vmatprep.mubr.f32.mxu0 %v9618_v34 }
 0x351   : > { %4820 = vmatprep.subr.bf16.mxu0 %v9621_v12  ;;  %v1779_v40 = vpop.trf.xlu0  ;;  %v1606_v38 = vrot.slane %v1605_v59, 2  ;;  %v1643_v62 = vrot.slane %v1642_v18, 2 }
 0x353   : > { %1718 = vmatmul.mubr.f32.gmra.mrb[56].mxu0 %v9622_v3  ;;  %v1807_v6 = vpop.trf.xlu1  ;;  %v1607_v34 = vadd.f32 %v1606_v38, %v1605_v59 }
 0x354   : > { %4822 = vmatpush1.bf16.msra.mxu0 %v9625_v33  ;;  %1723 = vmatprep.mubr.f32.mxu0 %v9626_v16 }
 0x355   : > { %v1780_v54 = vpop.trf.xlu0  ;;  %v1608_v63 = vrot.slane %v1607_v34, 1 }
 0x357   : > { %1724 = vmatmul.mubr.f32.gmra.mrb[58].mxu0 %v9627_v27  ;;  %v1808_v61 = vpop.trf.xlu1  ;;  %v1609_v12 = vadd.f32 %v1608_v63, %v1607_v34 }
 0x358   : > { %1729 = vmatprep.mubr.f32.mxu0 %v9628_v26 }
 0x359   : > { %v1781_v9 = vpop.trf.xlu0  ;;  %5252 = vrcp.f32 %v1609_v12 }
 0x35b   : > { %1730 = vmatmul.mubr.f32.gmra.mrb[60].mxu0 %v9629_v45  ;;  %v1809_v35 = vpop.trf.xlu1 }
 0x35c   : > { %1978 = vmatprep.mubr.f32.mxu0 %v9630_v47 }
 0x35d   : > { %v1782_v37 = vpop.trf.xlu0 }
 0x35f   : > { %4640 = vmatmul.mubr.msk.f32.vlgmr.msra.gmra.mrb[62].mxu0 %vm953_vm2, %v1770_v31  ;;  %v1810_v48 = vpop.trf.xlu1 }
 0x360   : > { %1984 = vmatprep.mubr.f32.mxu0 %v9630_v47 }
 0x361   : > { %v1783_v60 = vpop.trf.xlu0 }
 0x363   : > { %4641 = vmatmul.mubr.msk.f32.gmra.mrb[64].mxu0 %vm953_vm2, %v1771_v51  ;;  %v1811_v1 = vpop.trf.xlu1  ;;  %v5253_v20 = vpop.eup %5252 }
 0x364   : > { %1990 = vmatprep.mubr.f32.mxu0 %v9630_v47 }
 0x365   : > { %v1784_v19 = vpop.trf.xlu0 }
 0x367   : > { %4642 = vmatmul.mubr.msk.f32.gmra.mrb[66].mxu0 %vm953_vm2, %v1772_v53  ;;  %v1812_v25 = vpop.trf.xlu1 }
 0x368   : > { %1996 = vmatprep.mubr.f32.mxu0 %v9630_v47 }
 0x369   : > { %v1785_v17 = vpop.trf.xlu0 }
 0x36b   : > { %4643 = vmatmul.mubr.msk.f32.gmra.mrb[68].mxu0 %vm953_vm2, %v1773_v42  ;;  %v1813_v57 = vpop.trf.xlu1  ;;  %v1644_v42 = vadd.f32 %v1643_v62, %v1642_v18 }
 0x36c   : > { %2002 = vmatprep.mubr.f32.mxu0 %v9630_v47 }
 0x36d   : > { %v1645_v0 = vrot.slane %v1644_v42, 1 }
 0x36f   : > { %4644 = vmatmul.mubr.msk.f32.gmra.mrb[70].mxu0 %vm953_vm2, %v1774_v4  ;;  %v1814_v8 = vpop.trf.xlu1  ;;  %v1646_v3 = vadd.f32 %v1645_v0, %v1644_v42 }
 0x370   : > { %2008 = vmatprep.mubr.f32.mxu0 %v9630_v47 }
 0x371   : > { %5254 = vrcp.f32 %v1646_v3 }
 0x373   : > { %4645 = vmatmul.mubr.msk.f32.gmra.mrb[72].mxu0 %vm953_vm2, %v1775_v52  ;;  %v1815_v53 = vpop.trf.xlu1 }
 0x374   : > { %2014 = vmatprep.mubr.f32.mxu0 %v9630_v47 }
 0x377   : > { %4646 = vmatmul.mubr.msk.f32.gmra.mrb[74].mxu0 %vm953_vm2, %v1776_v5  ;;  %v1816_v28 = vpop.trf.xlu1 }
 0x378   : > { %2020 = vmatprep.mubr.f32.mxu0 %v9630_v47 }
 0x37b   : > { %4647 = vmatmul.mubr.msk.f32.gmra.mrb[76].mxu0 %vm953_vm2, %v1777_v7  ;;  %v1817_v29 = vpop.trf.xlu1  ;;  %v5255_v33 = vpop.eup %5254 }
 0x37c   : > { %2026 = vmatprep.mubr.f32.mxu0 %v9630_v47 }
 0x37f   : > { %4648 = vmatmul.mubr.msk.f32.gmra.mrb[78].mxu0 %vm953_vm2, %v1778_v2 }
 0x380   : > { %2032 = vmatprep.mubr.f32.mxu0 %v9630_v47 }
 0x383   : > { %4649 = vmatmul.mubr.msk.f32.gmra.mrb[80].mxu0 %vm953_vm2, %v1779_v40 }
 0x384   : > { %2038 = vmatprep.mubr.f32.mxu0 %v9630_v47 }
 0x387   : > { %4650 = vmatmul.mubr.msk.f32.gmra.mrb[82].mxu0 %vm953_vm2, %v1780_v54 }
 0x388   : > { %2044 = vmatprep.mubr.f32.mxu0 %v9630_v47 }
 0x38b   : > { %4651 = vmatmul.mubr.msk.f32.gmra.mrb[84].mxu0 %vm953_vm2, %v1781_v9 }
 0x38c   : > { %2050 = vmatprep.mubr.f32.mxu0 %v9630_v47 }
 0x38f   : > { %4652 = vmatmul.mubr.msk.f32.gmra.mrb[86].mxu0 %vm953_vm2, %v1782_v37 }
 0x390   : > { %2056 = vmatprep.mubr.f32.mxu0 %v9630_v47 }
 0x393   : > { %4653 = vmatmul.mubr.msk.f32.gmra.mrb[88].mxu0 %vm953_vm2, %v1783_v60 }
 0x394   : > { %2062 = vmatprep.mubr.f32.mxu0 %v9630_v47 }
 0x396   : > { %v6938_v44 = vpop.f32.mrb[40].mxu0 }
 0x397   : > { %4654 = vmatmul.mubr.msk.f32.gmra.mrb[90].mxu0 %vm953_vm2, %v1784_v19  ;;  %9631 = vst [vmem:[#allocation45_spill] sm:$0xff] %v6938_v44  ;;  %v563_v56 = vpop.f32.mrb[41].mxu0 }
 0x398   : > { %2068 = vmatprep.mubr.f32.mxu0 %v9630_v47  ;;  %2575 = vmatprep.mubr.f32.mxu1 %v563_v56 }
 0x39b   : > { %4655 = vmatmul.mubr.msk.f32.gmra.mrb[92].mxu0 %vm953_vm2, %v1785_v17  ;;  %v6942_v43 = vpop.f32.mrb[42].mxu0 }
 0x39c   : > { %2074 = vmatprep.mubr.f32.mxu0 %v9630_v47  ;;  %9632 = vst [vmem:[#allocation46_spill] sm:$0xff] %v6942_v43  ;;  %v6945_v41 = vpop.f32.mrb[43].mxu0 }
 0x39d   : > { %9633 = vst [vmem:[#allocation47_spill] sm:$0xff] %v6945_v41 }
 0x39f   : > { %4656 = vmatmul.mubr.msk.f32.gmra.mrb[94].mxu0 %vm953_vm2, %v1802_v13 }
 0x3a0   : > { %2080 = vmatprep.mubr.f32.mxu0 %v9630_v47 }
 0x3a3   : > { %4657 = vmatmul.mubr.msk.f32.gmra.mrb[96].mxu0 %vm953_vm2, %v1803_v10 }
 0x3a4   : > { %2086 = vmatprep.mubr.f32.mxu0 %v9630_v47 }
 0x3a7   : > { %4658 = vmatmul.mubr.msk.f32.gmra.mrb[98].mxu0 %vm953_vm2, %v1804_v32 }
 0x3a8   : > { %2092 = vmatprep.mubr.f32.mxu0 %v9630_v47  ;;  %v6948_v15 = vpop.f32.mrb[44].mxu0 }
 0x3a9   : > { %9634 = vst [vmem:[#allocation48_spill] sm:$0xff] %v6948_v15  ;;  %v6951_v30 = vpop.f32.mrb[45].mxu0 }
 0x3aa   : > { %9635 = vst [vmem:[#allocation49_spill] sm:$0xff] %v6951_v30 }
 0x3ab   : > { %4659 = vmatmul.mubr.msk.f32.gmra.mrb[100].mxu0 %vm953_vm2, %v1805_v22 }
 0x3ac   : > { %2098 = vmatprep.mubr.f32.mxu0 %v9630_v47  ;;  %v6954_v24 = vpop.f32.mrb[46].mxu0 }
 0x3ad   : > { %9636 = vst [vmem:[#allocation50_spill] sm:$0xff] %v6954_v24  ;;  %v6957_v21 = vpop.f32.mrb[47].mxu0 }
 0x3ae   : > { %9637 = vst [vmem:[#allocation51_spill] sm:$0xff] %v6957_v21 }
 0x3af   : > { %4660 = vmatmul.mubr.msk.f32.gmra.mrb[102].mxu0 %vm953_vm2, %v1806_v36 }
 0x3b0   : > { %2104 = vmatprep.mubr.f32.mxu0 %v9630_v47  ;;  %v6960_v31 = vpop.f32.mrb[48].mxu0 }
 0x3b1   : > { %9638 = vst [vmem:[#allocation52_spill] sm:$0xff] %v6960_v31  ;;  %v587_v55 = vpop.f32.mrb[49].mxu0 }
 0x3b3   : > { %4661 = vmatmul.mubr.msk.f32.gmra.mrb[104].mxu0 %vm953_vm2, %v1807_v6 }
 0x3b4   : > { %2110 = vmatprep.mubr.f32.mxu0 %v9630_v47  ;;  %v6964_v49 = vpop.f32.mrb[50].mxu0 }
 0x3b5   : > { %9639 = vst [vmem:[#allocation53_spill] sm:$0xff] %v6964_v49  ;;  %v6967_v46 = vpop.f32.mrb[51].mxu0 }
 0x3b6   : > { %9640 = vst [vmem:[#allocation55_spill] sm:$0xff] %v6967_v46 }
 0x3b7   : > { %4662 = vmatmul.mubr.msk.f32.gmra.mrb[106].mxu0 %vm953_vm2, %v1808_v61 }
 0x3b8   : > { %2116 = vmatprep.mubr.f32.mxu0 %v9630_v47  ;;  %v6970_v51 = vpop.f32.mrb[52].mxu0 }
 0x3b9   : > { %9641 = vst [vmem:[#allocation56_spill] sm:$0xff] %v6970_v51  ;;  %v6973_v11 = vpop.f32.mrb[53].mxu0 }
 0x3ba   : > { %9642 = vst [vmem:[#allocation54_spill] sm:$0xff] %v6973_v11 }
 0x3bb   : > { %4663 = vmatmul.mubr.msk.f32.gmra.mrb[108].mxu0 %vm953_vm2, %v1809_v35 }
 0x3bc   : > { %2122 = vmatprep.mubr.f32.mxu0 %v9630_v47 }
 0x3bf   : > { %4664 = vmatmul.mubr.msk.f32.gmra.mrb[110].mxu0 %vm953_vm2, %v1810_v48 }
 0x3c0   : > { %2128 = vmatprep.mubr.f32.mxu0 %v9630_v47 }
 0x3c3   : > { %4665 = vmatmul.mubr.msk.f32.gmra.mrb[112].mxu0 %vm953_vm2, %v1811_v1 }
 0x3c4   : > { %2134 = vmatprep.mubr.f32.mxu0 %v9630_v47 }
 0x3c7   : > { %4666 = vmatmul.mubr.msk.f32.gmra.mrb[114].mxu0 %vm953_vm2, %v1812_v25 }
 0x3c8   : > { %2140 = vmatprep.mubr.f32.mxu0 %v9630_v47 }
 0x3cb   : > { %4667 = vmatmul.mubr.msk.f32.gmra.mrb[116].mxu0 %vm953_vm2, %v1813_v57 }
 0x3cc   : > { %2146 = vmatprep.mubr.f32.mxu0 %v9630_v47 }
 0x3cf   : > { %4668 = vmatmul.mubr.msk.f32.gmra.mrb[118].mxu0 %vm953_vm2, %v1814_v8 }
 0x3d0   : > { %2152 = vmatprep.mubr.f32.mxu0 %v9630_v47 }
 0x3d3   : > { %4669 = vmatmul.mubr.msk.f32.gmra.mrb[120].mxu0 %vm953_vm2, %v1815_v53 }
 0x3d4   : > { %2158 = vmatprep.mubr.f32.mxu0 %v9630_v47 }
 0x3d7   : > { %4670 = vmatmul.mubr.msk.f32.gmra.mrb[122].mxu0 %vm953_vm2, %v1816_v28 }
 0x3d8   : > { %2164 = vmatprep.mubr.f32.mxu0 %v9630_v47 }
 0x3db   : > { %4671 = vmatmul.mubr.msk.f32.gmra.mrb[124].mxu0 %vm953_vm2, %v1817_v29 }
 0x3dc   : > { %3439 = vmatprep.mubr.f32.mxu0 %v587_v55 }
 0x422   : > { %v1713_v50 = vpop.f32.mrb[54].mxu0 }
 0x423   : > { %v6994_v16 = vmul.f32 %v5253_v20, %v1713_v50  ;;  %v1715_v4 = vpop.f32.mrb[55].mxu0 }
 0x424   : > { %v6996_v27 = vmul.f32 %v5255_v33, %v1715_v4 }
 0x425   : > { %9643 = vst [vmem:[#allocation57_spill] sm:$0xff] %v6994_v16 }
 0x426   : > { %9644 = vst [vmem:[#allocation58_spill] sm:$0xff] %v6996_v27  ;;  %v1719_v39 = vpop.f32.mrb[56].mxu0 }
 0x427   : > { %v6998_v14 = vmul.f32 %v5253_v20, %v1719_v39  ;;  %v1721_v26 = vpop.f32.mrb[57].mxu0 }
 0x428   : > { %v7000_v45 = vmul.f32 %v5255_v33, %v1721_v26 }
 0x429   : > { %9645 = vst [vmem:[#allocation59_spill] sm:$0xff] %v6998_v14 }
 0x42a   : > { %9646 = vst [vmem:[#allocation44_spill] sm:$0xff] %v7000_v45  ;;  %v1725_v7 = vpop.f32.mrb[58].mxu0 }
 0x42b   : > { %v7006_v2 = vmul.f32 %v5253_v20, %v1725_v7  ;;  %v1727_v40 = vpop.f32.mrb[59].mxu0 }
 0x42c   : > { %v7008_v54 = vmul.f32 %v5255_v33, %v1727_v40 }
 0x42d   : > { %9647 = vst [vmem:[#allocation19_spill] sm:$0xff] %v7006_v2 }
 0x42e   : > { %9648 = vst [vmem:[#allocation17_spill] sm:$0xff] %v7008_v54  ;;  %v1731_v13 = vpop.f32.mrb[60].mxu0 }
 0x42f   : > { %v7010_v9 = vmul.f32 %v5253_v20, %v1731_v13  ;;  %v1733_v10 = vpop.f32.mrb[61].mxu0 }
 0x430   : > { %v7012_v37 = vmul.f32 %v5255_v33, %v1733_v10 }
 0x431   : > { %9649 = vst [vmem:[#allocation60_spill] sm:$0xff] %v7010_v9 }
 0x432   : > { %9650 = vst [vmem:[#allocation18_spill] sm:$0xff] %v7012_v37  ;;  %v7018_v22 = vpop.f32.mrb[62].mxu0 }
 0x433   : > { %v7020_v19 = vpop.f32.mrb[63].mxu0 }
 0x436   : > { %v7022_v36 = vpop.f32.mrb[64].mxu0 }
 0x437   : > { %v7024_v17 = vpop.f32.mrb[65].mxu0 }
 0x43a   : > { %v7026_v6 = vpop.f32.mrb[66].mxu0 }
 0x43b   : > { %v2171_v61 = vmax.f32 %v7018_v22, %v7026_v6  ;;  %v7030_v56 = vpop.f32.mrb[67].mxu0 }
 0x43c   : > { %v2208_v35 = vmax.f32 %v7020_v19, %v7030_v56 }
 0x43e   : > { %v7034_v48 = vpop.f32.mrb[68].mxu0 }
 0x43f   : > { %v2172_v1 = vmax.f32 %v7022_v36, %v7034_v48  ;;  %v7038_v55 = vpop.f32.mrb[69].mxu0 }
 0x440   : > { %v2209_v25 = vmax.f32 %v7024_v17, %v7038_v55 }
 0x442   : > { %v7042_v57 = vpop.f32.mrb[70].mxu0 }
 0x443   : > { %v2173_v8 = vmax.f32 %v2171_v61, %v7042_v57  ;;  %v7045_v53 = vpop.f32.mrb[71].mxu0 }
 0x444   : > { %v2210_v28 = vmax.f32 %v2208_v35, %v7045_v53 }
 0x446   : > { %v7048_v29 = vpop.f32.mrb[72].mxu0 }
 0x447   : > { %v2174_v58 = vmax.f32 %v2172_v1, %v7048_v29  ;;  %v7051_v23 = vpop.f32.mrb[73].mxu0 }
 0x448   : > { %v2211_v59 = vmax.f32 %v2209_v25, %v7051_v23 }
 0x44a   : > { %v7054_v18 = vpop.f32.mrb[74].mxu0 }
 0x44b   : > { %v2175_v38 = vmax.f32 %v2173_v8, %v7054_v18  ;;  %v7057_v62 = vpop.f32.mrb[75].mxu0 }
 0x44c   : > { %v2212_v34 = vmax.f32 %v2210_v28, %v7057_v62 }
 0x44e   : > { %v7060_v42 = vpop.f32.mrb[76].mxu0 }
 0x44f   : > { %v2176_v63 = vmax.f32 %v2174_v58, %v7060_v42  ;;  %v7063_v0 = vpop.f32.mrb[77].mxu0 }
 0x450   : > { %v2213_v12 = vmax.f32 %v2211_v59, %v7063_v0 }
 0x452   : > { %v7066_v3 = vpop.f32.mrb[78].mxu0 }
 0x453   : > { %v2177_v20 = vmax.f32 %v2175_v38, %v7066_v3  ;;  %v7069_v50 = vpop.f32.mrb[79].mxu0 }
 0x454   : > { %v2214_v33 = vmax.f32 %v2212_v34, %v7069_v50 }
 0x456   : > { %v7072_v4 = vpop.f32.mrb[80].mxu0 }
 0x457   : > { %v2178_v39 = vmax.f32 %v2176_v63, %v7072_v4  ;;  %v7075_v26 = vpop.f32.mrb[81].mxu0 }
 0x458   : > { %v2215_v7 = vmax.f32 %v2213_v12, %v7075_v26 }
 0x45a   : > { %v7078_v40 = vpop.f32.mrb[82].mxu0 }
 0x45b   : > { %v2179_v13 = vmax.f32 %v2177_v20, %v7078_v40  ;;  %v7081_v10 = vpop.f32.mrb[83].mxu0 }
 0x45c   : > { %v2216_v61 = vmax.f32 %v2214_v33, %v7081_v10 }
 0x45e   : > { %v7084_v35 = vpop.f32.mrb[84].mxu0 }
 0x45f   : > { %v2180_v1 = vmax.f32 %v2178_v39, %v7084_v35  ;;  %v7087_v25 = vpop.f32.mrb[85].mxu0 }
 0x460   : > { %9651 = vst [vmem:[#allocation16_spill] sm:$0xff] %v7087_v25  ;;  %v2217_v8 = vmax.f32 %v2215_v7, %v7087_v25 }
 0x462   : > { %v7090_v28 = vpop.f32.mrb[86].mxu0 }
 0x463   : > { %v2181_v58 = vmax.f32 %v2179_v13, %v7090_v28  ;;  %v7093_v59 = vpop.f32.mrb[87].mxu0 }
 0x464   : > { %9652 = vst [vmem:[#allocation62_spill] sm:$0xff] %v7093_v59  ;;  %v2218_v38 = vmax.f32 %v2216_v61, %v7093_v59 }
 0x466   : > { %v7096_v34 = vpop.f32.mrb[88].mxu0 }
 0x467   : > { %v2182_v63 = vmax.f32 %v2180_v1, %v7096_v34  ;;  %v7099_v12 = vpop.f32.mrb[89].mxu0 }
 0x468   : > { %9653 = vst [vmem:[#allocation23_spill] sm:$0xff] %v7099_v12  ;;  %v2219_v20 = vmax.f32 %v2217_v8, %v7099_v12 }
 0x46a   : > { %v7102_v33 = vpop.f32.mrb[90].mxu0 }
 0x46b   : > { %v2183_v39 = vmax.f32 %v2181_v58, %v7102_v33  ;;  %v7105_v7 = vpop.f32.mrb[91].mxu0 }
 0x46c   : > { %9654 = vst [vmem:[#allocation21_spill] sm:$0xff] %v7105_v7  ;;  %v2220_v13 = vmax.f32 %v2218_v38, %v7105_v7 }
 0x46e   : > { %v7108_v32 = vpop.f32.mrb[92].mxu0 }
 0x46f   : > { %v2184_v61 = vmax.f32 %v2182_v63, %v7108_v32  ;;  %v7111_v60 = vpop.f32.mrb[93].mxu0 }
 0x470   : > { %9655 = vst [vmem:[#allocation61_spill] sm:$0xff] %v7111_v60  ;;  %v2221_v1 = vmax.f32 %v2219_v20, %v7111_v60 }
 0x472   : > { %v7114_v52 = vpop.f32.mrb[94].mxu0 }
 0x473   : > { %v2185_v8 = vmax.f32 %v2183_v39, %v7114_v52  ;;  %v7117_v5 = vpop.f32.mrb[95].mxu0 }
 0x474   : > { %9656 = vst [vmem:[#allocation22_spill] sm:$0xff] %v7117_v5  ;;  %v2222_v58 = vmax.f32 %v2220_v13, %v7117_v5 }
 0x476   : > { %v7120_v2 = vpop.f32.mrb[96].mxu0 }
 0x477   : > { %v2186_v38 = vmax.f32 %v2184_v61, %v7120_v2  ;;  %v7123_v9 = vpop.f32.mrb[97].mxu0 }
 0x478   : > { %9657 = vst [vmem:[#allocation20_spill] sm:$0xff] %v7123_v9  ;;  %v2223_v63 = vmax.f32 %v2221_v1, %v7123_v9 }
 0x47a   : > { %v7126_v54 = vpop.f32.mrb[98].mxu0 }
 0x47b   : > { %v2187_v20 = vmax.f32 %v2185_v8, %v7126_v54  ;;  %v7129_v37 = vpop.f32.mrb[99].mxu0 }
 0x47c   : > { %9658 = vst [vmem:[#allocation41_spill] sm:$0xff] %v7129_v37  ;;  %v2224_v39 = vmax.f32 %v2222_v58, %v7129_v37 }
 0x47e   : > { %v7132_v16 = vpop.f32.mrb[100].mxu0 }
 0x47f   : > { %v2188_v13 = vmax.f32 %v2186_v38, %v7132_v16  ;;  %v7135_v14 = vpop.f32.mrb[101].mxu0 }
 0x480   : > { %9659 = vst [vmem:[#allocation40_spill] sm:$0xff] %v7135_v14  ;;  %v2225_v61 = vmax.f32 %v2223_v63, %v7135_v14 }
 0x482   : > { %v7138_v27 = vpop.f32.mrb[102].mxu0 }
 0x483   : > { %v2189_v1 = vmax.f32 %v2187_v20, %v7138_v27  ;;  %v7141_v45 = vpop.f32.mrb[103].mxu0 }
 0x484   : > { %9660 = vst [vmem:[#allocation43_spill] sm:$0xff] %v7141_v45  ;;  %v2226_v8 = vmax.f32 %v2224_v39, %v7141_v45 }
 0x486   : > { %v7144_v51 = vpop.f32.mrb[104].mxu0 }
 0x487   : > { %v2190_v58 = vmax.f32 %v2188_v13, %v7144_v51  ;;  %v7147_v11 = vpop.f32.mrb[105].mxu0 }
 0x488   : > { %9661 = vst [vmem:[#allocation42_spill] sm:$0xff] %v7147_v11  ;;  %v2227_v38 = vmax.f32 %v2225_v61, %v7147_v11 }
 0x48a   : > { %v7150_v49 = vpop.f32.mrb[106].mxu0 }
 0x48b   : > { %v2191_v63 = vmax.f32 %v2189_v1, %v7150_v49  ;;  %v7153_v46 = vpop.f32.mrb[107].mxu0 }
 0x48c   : > { %9662 = vst [vmem:[#allocation63_spill] sm:$0xff] %v7153_v46  ;;  %v2228_v20 = vmax.f32 %v2226_v8, %v7153_v46 }
 0x48e   : > { %v7156_v31 = vpop.f32.mrb[108].mxu0 }
 0x48f   : > { %v2192_v39 = vmax.f32 %v2190_v58, %v7156_v31  ;;  %v7159_v47 = vpop.f32.mrb[109].mxu0 }
 0x490   : > { %9663 = vst [vmem:[#allocation64_spill] sm:$0xff] %v7159_v47  ;;  %v2229_v13 = vmax.f32 %v2227_v38, %v7159_v47 }
 0x492   : > { %v7162_v24 = vpop.f32.mrb[110].mxu0 }
 0x493   : > { %v2193_v61 = vmax.f32 %v2191_v63, %v7162_v24  ;;  %v7165_v21 = vpop.f32.mrb[111].mxu0 }
 0x494   : > { %9664 = vst [vmem:[#allocation65_spill] sm:$0xff] %v7165_v21  ;;  %v2230_v1 = vmax.f32 %v2228_v20, %v7165_v21 }
 0x496   : > { %v7168_v15 = vpop.f32.mrb[112].mxu0 }
 0x497   : > { %v2194_v8 = vmax.f32 %v2192_v39, %v7168_v15  ;;  %v7171_v30 = vpop.f32.mrb[113].mxu0 }
 0x498   : > { %9665 = vst [vmem:[#allocation66_spill] sm:$0xff] %v7171_v30  ;;  %v2231_v58 = vmax.f32 %v2229_v13, %v7171_v30 }
 0x49a   : > { %v7174_v43 = vpop.f32.mrb[114].mxu0 }
 0x49b   : > { %v2195_v38 = vmax.f32 %v2193_v61, %v7174_v43  ;;  %v7177_v41 = vpop.f32.mrb[115].mxu0 }
 0x49c   : > { %9666 = vst [vmem:[#allocation67_spill] sm:$0xff] %v7177_v41  ;;  %v2232_v63 = vmax.f32 %v2230_v1, %v7177_v41 }
 0x49e   : > { %v7180_v44 = vpop.f32.mrb[116].mxu0 }
 0x49f   : > { %v2196_v20 = vmax.f32 %v2194_v8, %v7180_v44  ;;  %v7183_v21 = vpop.f32.mrb[117].mxu0 }
 0x4a0   : > { %9667 = vst [vmem:[#allocation68_spill] sm:$0xff] %v7183_v21  ;;  %v2233_v39 = vmax.f32 %v2231_v58, %v7183_v21 }
 0x4a2   : > { %v7186_v47 = vpop.f32.mrb[118].mxu0 }
 0x4a3   : > { %v2197_v13 = vmax.f32 %v2195_v38, %v7186_v47  ;;  %v7189_v30 = vpop.f32.mrb[119].mxu0 }
 0x4a4   : > { %9668 = vst [vmem:[#allocation69_spill] sm:$0xff] %v7189_v30  ;;  %v2234_v61 = vmax.f32 %v2232_v63, %v7189_v30 }
 0x4a6   : > { %v7192_v46 = vpop.f32.mrb[120].mxu0 }
 0x4a7   : > { %v2198_v1 = vmax.f32 %v2196_v20, %v7192_v46  ;;  %v7195_v41 = vpop.f32.mrb[121].mxu0 }
 0x4a8   : > { %9669 = vst [vmem:[#allocation70_spill] sm:$0xff] %v7195_v41  ;;  %v2235_v8 = vmax.f32 %v2233_v39, %v7195_v41 }
 0x4aa   : > { %v7198_v11 = vpop.f32.mrb[122].mxu0 }
 0x4ab   : > { %v2199_v58 = vmax.f32 %v2197_v13, %v7198_v11  ;;  %v7201_v21 = vpop.f32.mrb[123].mxu0 }
 0x4ac   : > { %9670 = vst [vmem:[#allocation71_spill] sm:$0xff] %v7201_v21  ;;  %v2236_v38 = vmax.f32 %v2234_v61, %v7201_v21 }
 0x4ae   : > { %v7204_v45 = vpop.f32.mrb[124].mxu0 }
 0x4af   : > { %v2200_v63 = vmax.f32 %v2198_v1, %v7204_v45  ;;  %v7207_v30 = vpop.f32.mrb[125].mxu0 }
 0x4b0   : > { %9671 = vst [vmem:[#allocation72_spill] sm:$0xff] %v7207_v30  ;;  %v2237_v20 = vmax.f32 %v2235_v8, %v7207_v30 }
 0x4b1   : > { %v2201_v14 = vmax.f32 %v2199_v58, %v2200_v63 }
 0x4b2   : > { %v2238_v37 = vmax.f32 %v2236_v38, %v2237_v20 }
 0x4b3   : > { %v2202_v9 = vrot.slane %v2201_v14, 4 }
 0x4b4   : > { %v2239_v39 = vrot.slane %v2238_v37, 4 }
 0x4b5   : > { %v2203_v41 = vmax.f32 %v2201_v14, %v2202_v9 }
 0x4b6   : > { %v2240_v5 = vmax.f32 %v2238_v37, %v2239_v39 }
 0x4b7   : > { %v2204_v60 = vrot.slane %v2203_v41, 2 }
 0x4b8   : > { %v2241_v13 = vrot.slane %v2240_v5, 2 }
 0x4b9   : > { %v2205_v7 = vmax.f32 %v2203_v41, %v2204_v60 }
 0x4ba   : > { %v2242_v12 = vmax.f32 %v2240_v5, %v2241_v13 }
 0x4bb   : > { %v2206_v59 = vrot.slane %v2205_v7, 1 }
 0x4bc   : > { %v2243_v61 = vrot.slane %v2242_v12, 1 }
 0x4bd   : > { %v7210_v21 = vmax.f32 %v2205_v7, %v2206_v59 }
 0x4be   : > { %v7212_v25 = vmax.f32 %v2242_v12, %v2243_v61 }
 0x4bf   : > { %v2245_v1 = vsub.f32 %v7018_v22, %v7210_v21  ;;  %v2247_v8 = vsub.f32 %v7022_v36, %v7210_v21  ;;  %v2249_v14 = vsub.f32 %v7026_v6, %v7210_v21  ;;  %v2251_v9 = vsub.f32 %v7034_v48, %v7210_v21 }
 0x4c0   : > { %v2253_v41 = vsub.f32 %v7042_v57, %v7210_v21  ;;  %v2255_v5 = vsub.f32 %v7048_v29, %v7210_v21  ;;  %v2257_v37 = vsub.f32 %v7054_v18, %v7210_v21  ;;  %v2259_v60 = vsub.f32 %v7060_v42, %v7210_v21 }
 0x4c1   : > { %v2261_v22 = vsub.f32 %v7066_v3, %v7210_v21  ;;  %v2263_v36 = vsub.f32 %v7072_v4, %v7210_v21  ;;  %v2265_v6 = vsub.f32 %v7078_v40, %v7210_v21  ;;  %v2267_v48 = vsub.f32 %v7084_v35, %v7210_v21 }
 0x4c2   : > { %v2269_v57 = vsub.f32 %v7090_v28, %v7210_v21  ;;  %v2271_v29 = vsub.f32 %v7096_v34, %v7210_v21  ;;  %v2273_v18 = vsub.f32 %v7102_v33, %v7210_v21  ;;  %v2275_v42 = vsub.f32 %v7108_v32, %v7210_v21 }
 0x4c3   : > { %v2277_v3 = vsub.f32 %v7114_v52, %v7210_v21  ;;  %v2279_v4 = vsub.f32 %v7120_v2, %v7210_v21  ;;  %v2281_v40 = vsub.f32 %v7126_v54, %v7210_v21  ;;  %v2283_v35 = vsub.f32 %v7132_v16, %v7210_v21  ;;  %v9691_v2 = vld [vmem:[#allocation71_spill] sm:$0xff] }
 0x4c4   : > { %v2285_v28 = vsub.f32 %v7138_v27, %v7210_v21  ;;  %v2287_v59 = vsub.f32 %v7144_v51, %v7210_v21  ;;  %v2289_v32 = vsub.f32 %v7150_v49, %v7210_v21  ;;  %v2291_v52 = vsub.f32 %v7156_v31, %v7210_v21 }
 0x4c5   : > { %v2309_v12 = vmul.f32 1.442695, %v2245_v1  ;;  %v2313_v33 = vmul.f32 1.442695, %v2247_v8  ;;  %v2317_v7 = vmul.f32 1.442695, %v2249_v14 }
 0x4c6   : > { %v2321_v38 = vmul.f32 1.442695, %v2251_v9  ;;  %v2325_v20 = vmul.f32 1.442695, %v2253_v41  ;;  %v2329_v39 = vmul.f32 1.442695, %v2255_v5 }
 0x4c7   : > { %5256 = vpow2.f32 %v2309_v12  ;;  %v2333_v13 = vmul.f32 1.442695, %v2257_v37  ;;  %v2337_v61 = vmul.f32 1.442695, %v2259_v60  ;;  %v2341_v31 = vmul.f32 1.442695, %v2261_v22 }
 0x4c8   : > { %5258 = vpow2.f32 %v2313_v33  ;;  %v2345_v34 = vmul.f32 1.442695, %v2263_v36  ;;  %v2349_v1 = vmul.f32 1.442695, %v2265_v6  ;;  %v2353_v8 = vmul.f32 1.442695, %v2267_v48 }
 0x4c9   : > { %5260 = vpow2.f32 %v2317_v7  ;;  %v2357_v14 = vmul.f32 1.442695, %v2269_v57  ;;  %v2361_v58 = vmul.f32 1.442695, %v2271_v29  ;;  %v2365_v9 = vmul.f32 1.442695, %v2273_v18 }
 0x4ca   : > { %5262 = vpow2.f32 %v2321_v38  ;;  %v2369_v49 = vmul.f32 1.442695, %v2275_v42  ;;  %v2373_v63 = vmul.f32 1.442695, %v2277_v3  ;;  %v2377_v12 = vmul.f32 1.442695, %v2279_v4 }
 0x4cb   : > { %5264 = vpow2.f32 %v2325_v20  ;;  %v2381_v41 = vmul.f32 1.442695, %v2281_v40  ;;  %v2385_v5 = vmul.f32 1.442695, %v2283_v35  ;;  %v2389_v33 = vmul.f32 1.442695, %v2285_v28 }
 0x4cc   : > { %5266 = vpow2.f32 %v2329_v39  ;;  %v7282_v37 = vmul.f32 1.442695, %v2287_v59  ;;  %v7284_v60 = vmul.f32 1.442695, %v2289_v32  ;;  %v7286_v22 = vmul.f32 1.442695, %v2291_v52 }
 0x4cd   : > { %5268 = vpow2.f32 %v2333_v13  ;;  %v9672_v28 = vld [vmem:[#allocation16_spill] sm:$0xff]  ;;  %v9674_v7 = vld [vmem:[#allocation23_spill] sm:$0xff]  ;;  %v9675_v39 = vld [vmem:[#allocation21_spill] sm:$0xff] }
 0x4ce   : > { %5270 = vpow2.f32 %v2337_v61  ;;  %v9676_v61 = vld [vmem:[#allocation61_spill] sm:$0xff]  ;;  %v9678_v35 = vld [vmem:[#allocation20_spill] sm:$0xff]  ;;  %v9681_v42 = vld [vmem:[#allocation43_spill] sm:$0xff] }
 0x4cf   : > { %5272 = vpow2.f32 %v2341_v31  ;;  %v9673_v31 = vld [vmem:[#allocation62_spill] sm:$0xff]  ;;  %v9679_v40 = vld [vmem:[#allocation41_spill] sm:$0xff]  ;;  %v9680_v13 = vld [vmem:[#allocation40_spill] sm:$0xff] }
 0x4d0   : > { %5274 = vpow2.f32 %v2345_v34  ;;  %v9682_v18 = vld [vmem:[#allocation42_spill] sm:$0xff]  ;;  %v9683_v38 = vld [vmem:[#allocation63_spill] sm:$0xff]  ;;  %v9684_v48 = vld [vmem:[#allocation64_spill] sm:$0xff] }
 0x4d1   : > { %v7296_v29 = vpop.eup %5256  ;;  %5276 = vpow2.f32 %v2349_v1  ;;  %v9685_v1 = vld [vmem:[#allocation65_spill] sm:$0xff]  ;;  %v9686_v36 = vld [vmem:[#allocation66_spill] sm:$0xff] }
 0x4d2   : > { %v7304_v4 = vpop.eup %5258  ;;  %5278 = vpow2.f32 %v2353_v8  ;;  %v9677_v8 = vld [vmem:[#allocation22_spill] sm:$0xff] }
 0x4d3   : > { %v7312_v32 = vpop.eup %5260  ;;  %5280 = vpow2.f32 %v2357_v14  ;;  %v2437_v52 = vadd.f32 %v7304_v4, %v7296_v29  ;;  %v9690_v14 = vld [vmem:[#allocation70_spill] sm:$0xff] }
 0x4d4   : > { %v7320_v20 = vpop.eup %5262  ;;  %5282 = vpow2.f32 %v2361_v58  ;;  %v9688_v58 = vld [vmem:[#allocation68_spill] sm:$0xff] }
 0x4d5   : > { %v7328_v59 = vpop.eup %5264  ;;  %5284 = vpow2.f32 %v2365_v9  ;;  %v2438_v34 = vadd.f32 %v7312_v32, %v2437_v52 }
 0x4d6   : > { %v7335_v3 = vpop.eup %5266  ;;  %5286 = vpow2.f32 %v2369_v49 }
 0x4d7   : > { %v7343_v57 = vpop.eup %5268  ;;  %5288 = vpow2.f32 %v2373_v63  ;;  %v2439_v52 = vadd.f32 %v7320_v20, %v2438_v34 }
 0x4d8   : > { %v7350_v6 = vpop.eup %5270  ;;  %5290 = vpow2.f32 %v2377_v12 }
 0x4d9   : > { %v7358_v27 = vpop.eup %5272  ;;  %5292 = vpow2.f32 %v2381_v41  ;;  %v2440_v34 = vadd.f32 %v7328_v59, %v2439_v52  ;;  %v9692_v52 = vsub.f32 %v7162_v24, %v7210_v21 }
 0x4da   : > { %v7365_v54 = vpop.eup %5274  ;;  %5294 = vpow2.f32 %v2385_v5  ;;  %v9693_v5 = vsub.f32 %v7168_v15, %v7210_v21 }
 0x4db   : > { %v7373_v51 = vpop.eup %5276  ;;  %5296 = vpow2.f32 %v2389_v33  ;;  %v2405_v49 = vmul.f32 1.442695, %v9692_v52  ;;  %v2441_v12 = vadd.f32 %v7335_v3, %v2440_v34  ;;  %v9694_v33 = vsub.f32 %v7174_v43, %v7210_v21 }
 0x4dc   : > { %v7379_v16 = vpop.eup %5278  ;;  %5298 = vpow2.f32 %v7282_v37  ;;  %v2409_v63 = vmul.f32 1.442695, %v9693_v5  ;;  %v9695_v37 = vsub.f32 %v7180_v44, %v7210_v21  ;;  %v9699_v44 = vsub.f32 %v7198_v11, %v7210_v21 }
 0x4dd   : > { %v7385_v9 = vpop.eup %5280  ;;  %5300 = vpow2.f32 %v7284_v60  ;;  %v2413_v41 = vmul.f32 1.442695, %v9694_v33  ;;  %v2442_v24 = vadd.f32 %v7343_v57, %v2441_v12  ;;  %v9696_v60 = vsub.f32 %v7186_v47, %v7210_v21 }
 0x4de   : > { %v7392_v52 = vpop.eup %5282  ;;  %5302 = vpow2.f32 %v7286_v22  ;;  %v2417_v34 = vmul.f32 1.442695, %v9695_v37  ;;  %v9697_v12 = vsub.f32 %v7192_v46, %v7210_v21 }
 0x4df   : > { %v7398_v15 = vpop.eup %5284  ;;  %5304 = vpow2.f32 %v2405_v49  ;;  %v2421_v5 = vmul.f32 1.442695, %v9696_v60  ;;  %v2443_v43 = vadd.f32 %v7350_v6, %v2442_v24  ;;  %v2429_v49 = vmul.f32 1.442695, %v9699_v44 }
 0x4e0   : > { %v7404_v33 = vpop.eup %5286  ;;  %5306 = vpow2.f32 %v2409_v63  ;;  %v2425_v22 = vmul.f32 1.442695, %v9697_v12  ;;  %v9700_v24 = vsub.f32 %v7204_v45, %v7210_v21  ;;  %v9703_v21 = vsub.f32 %v7030_v56, %v7212_v25 }
 0x4e1   : > { %v7409_v30 = vpop.eup %5288  ;;  %5308 = vpow2.f32 %v2413_v41  ;;  %v2444_v37 = vadd.f32 %v7358_v27, %v2443_v43  ;;  %v9701_v41 = vsub.f32 %v7020_v19, %v7212_v25  ;;  %v9702_v43 = vsub.f32 %v7024_v17, %v7212_v25 }
 0x4e2   : > { %9698 = vst [vmem:[#allocation16_spill] sm:$0xff] %v7409_v30  ;;  %v7415_v47 = vpop.eup %5290  ;;  %5310 = vpow2.f32 %v2417_v34  ;;  %v2433_v63 = vmul.f32 1.442695, %v9700_v24  ;;  %v2319_v45 = vmul.f32 1.442695, %v9703_v21  ;;  %v9704_v19 = vsub.f32 %v7038_v55, %v7212_v25 }
 0x4e3   : > { %v7420_v60 = vpop.eup %5292  ;;  %5312 = vpow2.f32 %v2421_v5  ;;  %v2445_v46 = vadd.f32 %v7365_v54, %v2444_v37  ;;  %v2311_v12 = vmul.f32 1.442695, %v9701_v41  ;;  %v2315_v34 = vmul.f32 1.442695, %v9702_v43 }
 0x4e4   : > { %v7426_v11 = vpop.eup %5294  ;;  %5314 = vpow2.f32 %v2425_v22  ;;  %v2323_v37 = vmul.f32 1.442695, %v9704_v19  ;;  %v9705_v22 = vsub.f32 %v7045_v53, %v7212_v25  ;;  %v9706_v17 = vsub.f32 %v7051_v23, %v7212_v25 }
 0x4e5   : > { %v7434_v44 = vpop.eup %5296  ;;  %5316 = vpow2.f32 %v2429_v49  ;;  %v2446_v5 = vadd.f32 %v7373_v51, %v2445_v46  ;;  %v9707_v49 = vsub.f32 %v7057_v62, %v7212_v25  ;;  %v9708_v46 = vsub.f32 %v7063_v0, %v7212_v25 }
 0x4e6   : > { %v2327_v24 = vmul.f32 1.442695, %v9705_v22  ;;  %v7443_v41 = vpop.eup %5298  ;;  %5318 = vpow2.f32 %v2433_v63  ;;  %v2331_v56 = vmul.f32 1.442695, %v9706_v17  ;;  %v9709_v63 = vsub.f32 %v7069_v50, %v7212_v25 }
 0x4e7   : > { %v2335_v43 = vmul.f32 1.442695, %v9707_v49  ;;  %v2339_v55 = vmul.f32 1.442695, %v9708_v46  ;;  %v7454_v21 = vpop.eup %5300  ;;  %v2447_v53 = vadd.f32 %v7379_v16, %v2446_v5  ;;  %5320 = vpow2.f32 %v2311_v12 }
 0x4e8   : > { %v2343_v19 = vmul.f32 1.442695, %v9709_v63  ;;  %v9710_v23 = vsub.f32 %v7075_v26, %v7212_v25  ;;  %v7463_v17 = vpop.eup %5302  ;;  %5322 = vpow2.f32 %v2315_v34 }
 0x4e9   : > { %v7471_v5 = vpop.eup %5304  ;;  %v2448_v50 = vadd.f32 %v7385_v9, %v2447_v53  ;;  %5324 = vpow2.f32 %v2319_v45 }
 0x4ea   : > { %v2347_v22 = vmul.f32 1.442695, %v9710_v23  ;;  %v7478_v49 = vpop.eup %5306  ;;  %5326 = vpow2.f32 %v2323_v37  ;;  %v9711_v37 = vsub.f32 %v7081_v10, %v7212_v25  ;;  %v9712_v23 = vsub.f32 %v9672_v28, %v7212_v25 }
 0x4eb   : > { %v7486_v53 = vpop.eup %5308  ;;  %v2449_v45 = vadd.f32 %v7392_v52, %v2448_v50  ;;  %5328 = vpow2.f32 %v2327_v24 }
 0x4ec   : > { %v7493_v26 = vpop.eup %5310  ;;  %5330 = vpow2.f32 %v2331_v56  ;;  %v2351_v34 = vmul.f32 1.442695, %v9711_v37  ;;  %v2355_v63 = vmul.f32 1.442695, %v9712_v23 }
 0x4ed   : > { %v7501_v50 = vpop.eup %5312  ;;  %v2450_v24 = vadd.f32 %v7398_v15, %v2449_v45  ;;  %5332 = vpow2.f32 %v2335_v43  ;;  %v9713_v43 = vsub.f32 %v9673_v31, %v7212_v25  ;;  %v9718_v31 = vsub.f32 %v9678_v35, %v7212_v25 }
 0x4ee   : > { %v7509_v12 = vpop.eup %5314  ;;  %5334 = vpow2.f32 %v2339_v55  ;;  %v9714_v55 = vsub.f32 %v9674_v7, %v7212_v25  ;;  %v9717_v7 = vsub.f32 %v9677_v8, %v7212_v25  ;;  %v9721_v35 = vsub.f32 %v9681_v42, %v7212_v25 }
 0x4ef   : > { %v7514_v46 = vpop.eup %5316  ;;  %v2451_v0 = vadd.f32 %v7404_v33, %v2450_v24  ;;  %5336 = vpow2.f32 %v2343_v19  ;;  %v2359_v10 = vmul.f32 1.442695, %v9713_v43  ;;  %v9715_v19 = vsub.f32 %v9675_v39, %v7212_v25 }
 0x4f0   : > { %v7522_v37 = vpop.eup %5318  ;;  %5338 = vpow2.f32 %v2347_v22  ;;  %v2363_v28 = vmul.f32 1.442695, %v9714_v55  ;;  %v9716_v22 = vsub.f32 %v9676_v61, %v7212_v25  ;;  %v2375_v55 = vmul.f32 1.442695, %v9717_v7 }
 0x4f1   : > { %v5321_v23 = vpop.eup %5320  ;;  %v2452_v56 = vadd.f32 %v7409_v30, %v2451_v0  ;;  %5340 = vpow2.f32 %v2351_v34  ;;  %v2367_v24 = vmul.f32 1.442695, %v9715_v19  ;;  %v9719_v61 = vsub.f32 %v9679_v40, %v7212_v25 }
 0x4f2   : > { %v5323_v43 = vpop.eup %5322  ;;  %5342 = vpow2.f32 %v2355_v63  ;;  %v2371_v45 = vmul.f32 1.442695, %v9716_v22  ;;  %v2379_v63 = vmul.f32 1.442695, %v9718_v31  ;;  %v2391_v31 = vmul.f32 1.442695, %v9721_v35 }
 0x4f3   : > { %v5325_v62 = vpop.eup %5324  ;;  %v2453_v0 = vadd.f32 %v7415_v47, %v2452_v56  ;;  %5344 = vpow2.f32 %v2359_v10  ;;  %v2474_v34 = vadd.f32 %v5323_v43, %v5321_v23  ;;  %v4823_v39 = vpack.c.bf16 %v5323_v43, %v5321_v23 }
 0x4f4   : > { %v5327_v19 = vpop.eup %5326  ;;  %5346 = vpow2.f32 %v2363_v28  ;;  %v2383_v22 = vmul.f32 1.442695, %v9719_v61  ;;  %v9720_v28 = vsub.f32 %v9680_v13, %v7212_v25  ;;  %v9722_v40 = vpack.c.bf16 %v7304_v4, %v7296_v29 }
 0x4f5   : > { %v5329_v30 = vpop.eup %5328  ;;  %v2454_v8 = vadd.f32 %v7420_v60, %v2453_v0  ;;  %5348 = vpow2.f32 %v2367_v24  ;;  %v2475_v7 = vadd.f32 %v5325_v62, %v2474_v34  ;;  %4824 = vmatprep.subr.bf16.mxu1 %v4823_v39  ;;  %v4827_v56 = vpack.c.bf16 %v5327_v19, %v5325_v62 }
 0x4f6   : > { %v5331_v10 = vpop.eup %5330  ;;  %5350 = vpow2.f32 %v2371_v45  ;;  %v2387_v23 = vmul.f32 1.442695, %v9720_v28  ;;  %4826 = vmatpush1.bf16.msra.mxu1 %v9722_v40  ;;  %v9723_v13 = vsub.f32 %v9682_v18, %v7212_v25  ;;  %v9724_v42 = vsub.f32 %v9683_v38, %v7212_v25  ;;  %v9729_v40 = vld [vmem:[#allocation67_spill] sm:$0xff] }
 0x4f7   : > { %v5333_v43 = vpop.eup %5332  ;;  %v2455_v24 = vadd.f32 %v7426_v11, %v2454_v8  ;;  %5352 = vpow2.f32 %v2375_v55  ;;  %v2476_v0 = vadd.f32 %v5327_v19, %v2475_v7  ;;  %4828 = vmatprep.subr.bf16.mxu1 %v4827_v56  ;;  %v4831_v62 = vpack.c.bf16 %v5331_v10, %v5329_v30 }
 0x4f8   : > { %v5335_v45 = vpop.eup %5334  ;;  %5354 = vpow2.f32 %v2379_v63  ;;  %v2395_v34 = vmul.f32 1.442695, %v9723_v13  ;;  %v2399_v39 = vmul.f32 1.442695, %v9724_v42  ;;  %v9725_v19 = vsub.f32 %v9684_v48, %v7212_v25 }
 0x4f9   : > { %v5337_v61 = vpop.eup %5336  ;;  %v2456_v29 = vadd.f32 %v7434_v44, %v2455_v24  ;;  %5356 = vpow2.f32 %v2383_v22  ;;  %v2477_v4 = vadd.f32 %v5329_v30, %v2476_v0  ;;  %v4835_v8 = vpack.c.bf16 %v5335_v45, %v5333_v43 }
 0x4fa   : > { %v5339_v55 = vpop.eup %5338  ;;  %5358 = vpow2.f32 %v2387_v23  ;;  %v2403_v63 = vmul.f32 1.442695, %v9725_v19  ;;  %v9726_v18 = vsub.f32 %v9685_v1, %v7212_v25  ;;  %v9727_v38 = vpack.c.bf16 %v7320_v20, %v7312_v32 }
 0x4fb   : > { %v5341_v56 = vpop.eup %5340  ;;  %v2457_v28 = vadd.f32 %v7443_v41, %v2456_v29  ;;  %5360 = vpow2.f32 %v2391_v31  ;;  %v2478_v30 = vadd.f32 %v5331_v10, %v2477_v4  ;;  %v4839_v22 = vpack.c.bf16 %v5339_v55, %v5337_v61 }
 0x4fc   : > { %v2407_v7 = vmul.f32 1.442695, %v9726_v18  ;;  %4830 = vmatpush1.bf16.msra.mxu1 %v9727_v38  ;;  %v5343_v23 = vpop.eup %5342  ;;  %5362 = vpow2.f32 %v2395_v34  ;;  %v9728_v48 = vsub.f32 %v9686_v36, %v7212_v25  ;;  %v9730_v1 = vsub.f32 %v9729_v40, %v7212_v25  ;;  %v9732_v34 = vld [vmem:[#allocation69_spill] sm:$0xff] }
 0x4fd   : > { %4832 = vmatprep.subr.bf16.mxu1 %v4831_v62  ;;  %v5345_v0 = vpop.eup %5344  ;;  %v2458_v32 = vadd.f32 %v7454_v21, %v2457_v28  ;;  %5364 = vpow2.f32 %v2399_v39  ;;  %v2479_v20 = vadd.f32 %v5333_v43, %v2478_v30  ;;  %v4843_v13 = vpack.c.bf16 %v5343_v23, %v5341_v56 }
 0x4fe   : > { %v2411_v35 = vmul.f32 1.442695, %v9728_v48  ;;  %v2415_v24 = vmul.f32 1.442695, %v9730_v1  ;;  %v5347_v31 = vpop.eup %5346  ;;  %5366 = vpow2.f32 %v2403_v63  ;;  %v9731_v10 = vsub.f32 %v9688_v58, %v7212_v25 }
 0x4ff   : > { %v9733_v36 = vsub.f32 %v9732_v34, %v7212_v25  ;;  %v9734_v29 = vpack.c.bf16 %v7335_v3, %v7328_v59  ;;  %v5349_v4 = vpop.eup %5348  ;;  %v2459_v19 = vadd.f32 %v7463_v17, %v2458_v32  ;;  %5368 = vpow2.f32 %v2407_v7 }
 0x500   : > { %v2419_v62 = vmul.f32 1.442695, %v9731_v10  ;;  %v2480_v43 = vadd.f32 %v5335_v45, %v2479_v20  ;;  %v4847_v39 = vpack.c.bf16 %v5347_v31, %v5345_v0  ;;  %v5351_v63 = vpop.eup %5350  ;;  %5370 = vpow2.f32 %v2411_v35  ;;  %v9737_v45 = vld [vmem:[#allocation72_spill] sm:$0xff] }
 0x501   : > { %v2423_v42 = vmul.f32 1.442695, %v9733_v36  ;;  %4834 = vmatpush1.bf16.msra.mxu1 %v9734_v29  ;;  %v9735_v58 = vsub.f32 %v9690_v14, %v7212_v25  ;;  %v9736_v38 = vsub.f32 %v9691_v2, %v7212_v25  ;;  %v5353_v30 = vpop.eup %5352  ;;  %v2460_v3 = vadd.f32 %v7471_v5, %v2459_v19 }
 0x502   : > { %4836 = vmatprep.subr.bf16.mxu1 %v4835_v8  ;;  %5372 = vpow2.f32 %v2415_v24  ;;  %v2481_v59 = vadd.f32 %v5337_v61, %v2480_v43  ;;  %v4851_v48 = vpack.c.bf16 %v5351_v63, %v5349_v4  ;;  %v5355_v7 = vpop.eup %5354  ;;  %v9738_v8 = vsub.f32 %v9737_v45, %v7212_v25 }
 0x503   : > { %v2427_v18 = vmul.f32 1.442695, %v9735_v58  ;;  %v2431_v28 = vmul.f32 1.442695, %v9736_v38  ;;  %5374 = vpow2.f32 %v2419_v62  ;;  %v9739_v14 = vpack.c.bf16 %v7350_v6, %v7343_v57  ;;  %v5357_v40 = vpop.eup %5356 }
 0x504   : > { %v2435_v35 = vmul.f32 1.442695, %v9738_v8  ;;  %v2461_v2 = vadd.f32 %v7478_v49, %v2460_v3  ;;  %5376 = vpow2.f32 %v2423_v42  ;;  %v2482_v1 = vadd.f32 %v5339_v55, %v2481_v59  ;;  %v5359_v24 = vpop.eup %5358 }
 0x505   : > { %4838 = vmatpush1.bf16.msra.mxu1 %v9739_v14  ;;  %v4855_v32 = vpack.c.bf16 %v5355_v7, %v5353_v30  ;;  %5378 = vpow2.f32 %v2427_v18  ;;  %v5361_v61 = vpop.eup %5360  ;;  %v4859_v25 = vpack.c.bf16 %v5359_v24, %v5357_v40  ;;  %v9740_v6 = vpack.c.bf16 %v7365_v54, %v7358_v27 }
 0x506   : > { %4840 = vmatprep.subr.bf16.mxu1 %v4839_v22  ;;  %v2462_v20 = vadd.f32 %v7486_v53, %v2461_v2  ;;  %5380 = vpow2.f32 %v2431_v28  ;;  %v2483_v10 = vadd.f32 %v5341_v56, %v2482_v1  ;;  %v5363_v62 = vpop.eup %5362  ;;  %v9741_v58 = vpack.c.bf16 %v7379_v16, %v7373_v51 }
 0x507   : > { %5382 = vpow2.f32 %v2435_v35  ;;  %v5365_v57 = vpop.eup %5364  ;;  %v4863_v22 = vpack.c.bf16 %v5363_v62, %v5361_v61  ;;  %v9743_v2 = vpack.c.bf16 %v7404_v33, %v7398_v15  ;;  %v9747_v15 = vpack.c.bf16 %v7443_v41, %v7434_v44 }
 0x508   : > { %v2463_v34 = vadd.f32 %v7493_v26, %v2462_v20  ;;  %v2484_v55 = vadd.f32 %v5343_v23, %v2483_v10  ;;  %v5367_v36 = vpop.eup %5366  ;;  %v9750_v44 = vpack.c.bf16 %v7493_v26, %v7486_v53  ;;  %v9756_v53 = vld [vmem:[#allocation45_spill] sm:$0xff] }
 0x509   : > { %4842 = vmatpush1.bf16.msra.mxu1 %v9740_v6  ;;  %v5369_v42 = vpop.eup %5368  ;;  %v4867_v43 = vpack.c.bf16 %v5367_v36, %v5365_v57  ;;  %v9753_v6 = vld [vmem:[#allocation27_spill] sm:$0xff] }
 0x50a   : > { %4844 = vmatprep.subr.bf16.mxu1 %v4843_v13  ;;  %v2464_v29 = vadd.f32 %v7501_v50, %v2463_v34  ;;  %v2485_v19 = vadd.f32 %v5345_v0, %v2484_v55  ;;  %v5371_v56 = vpop.eup %5370  ;;  %v9742_v0 = vpack.c.bf16 %v7392_v52, %v7385_v9  ;;  %v9744_v9 = vld [vmem:[#allocation16_spill] sm:$0xff]  ;;  %v9757_v34 = vld [vmem:[#allocation47_spill] sm:$0xff]  ;;  %v9758_v55 = vld [vmem:[#allocation26_spill] sm:$0xff] }
 0x50b   : > { %v4871_v38 = vpack.c.bf16 %v5371_v56, %v5369_v42  ;;  %v9745_v52 = vpack.c.bf16 %v7415_v47, %v9744_v9  ;;  %v9748_v47 = vpack.c.bf16 %v7463_v17, %v7454_v21  ;;  %v9751_v17 = vpack.c.bf16 %v7509_v12, %v7501_v50 }
 0x50c   : > { %v5373_v18 = vpop.eup %5372  ;;  %v2465_v54 = vadd.f32 %v7509_v12, %v2464_v29  ;;  %v2486_v27 = vadd.f32 %v5347_v31, %v2485_v19  ;;  %v9764_v19 = vld [vmem:[#allocation46_spill] sm:$0xff] }
 0x50d   : > { %4846 = vmatpush1.bf16.msra.mxu1 %v9741_v58  ;;  %v5375_v23 = vpop.eup %5374 }
 0x50e   : > { %4848 = vmatprep.subr.bf16.mxu1 %v4847_v39  ;;  %v5377_v13 = vpop.eup %5376  ;;  %v2466_v28 = vadd.f32 %v7514_v46, %v2465_v54  ;;  %v2487_v3 = vadd.f32 %v5349_v4, %v2486_v27  ;;  %v4875_v59 = vpack.c.bf16 %v5375_v23, %v5373_v18  ;;  %v9770_v54 = vld [vmem:[#allocation51_spill] sm:$0xff]  ;;  %v9771_v27 = vld [vmem:[#allocation50_spill] sm:$0xff] }
 0x50f   : > { %v5379_v45 = vpop.eup %5378 }
 0x510   : > { %v5381_v8 = vpop.eup %5380  ;;  %v7620_v16 = vadd.f32 %v7522_v37, %v2466_v28  ;;  %v2488_v51 = vadd.f32 %v5351_v63, %v2487_v3  ;;  %v4879_v31 = vpack.c.bf16 %v5379_v45, %v5377_v13  ;;  %v9746_v63 = vpack.c.bf16 %v7426_v11, %v7420_v60 }
 0x511   : > { %4850 = vmatpush1.bf16.msra.mxu1 %v9742_v0  ;;  %v5383_v39 = vpop.eup %5382  ;;  %v9749_v60 = vpack.c.bf16 %v7478_v49, %v7471_v5  ;;  %v9752_v49 = vpack.c.bf16 %v7522_v37, %v7514_v46  ;;  %v9765_v46 = vld [vmem:[#allocation49_spill] sm:$0xff]  ;;  %v9766_v37 = vld [vmem:[#allocation30_spill] sm:$0xff]  ;;  %v2666_v0 = vpop.trf.xlu1 }
 0x512   : > { %4852 = vmatprep.subr.bf16.mxu1 %v4851_v48  ;;  %v2489_v35 = vadd.f32 %v5353_v30, %v2488_v51  ;;  %v4883_v14 = vpack.c.bf16 %v5383_v39, %v5381_v8 }
 0x514   : > { %v2490_v4 = vadd.f32 %v5355_v7, %v2489_v35 }
 0x515   : > { %4854 = vmatpush1.bf16.msra.mxu1 %v9743_v2  ;;  %v2667_v51 = vpop.trf.xlu1 }
 0x516   : > { %4856 = vmatprep.subr.bf16.mxu1 %v4855_v32  ;;  %v2491_v1 = vadd.f32 %v5357_v40, %v2490_v4  ;;  %v2634_v32 = vpop.trf.xlu0 }
 0x518   : > { %v2492_v20 = vadd.f32 %v5359_v24, %v2491_v1 }
 0x519   : > { %4858 = vmatpush1.bf16.msra.mxu1 %v9745_v52 }
 0x51a   : > { %4860 = vmatprep.subr.bf16.mxu1 %v4859_v25  ;;  %v2493_v10 = vadd.f32 %v5361_v61, %v2492_v20  ;;  %v2635_v41 = vpop.trf.xlu0 }
 0x51c   : > { %v2494_v30 = vadd.f32 %v5363_v62, %v2493_v10 }
 0x51d   : > { %4862 = vmatpush1.bf16.msra.mxu1 %v9746_v63 }
 0x51e   : > { %4864 = vmatprep.subr.bf16.mxu1 %v4863_v22  ;;  %v2495_v48 = vadd.f32 %v5365_v57, %v2494_v30  ;;  %v2636_v5 = vpop.trf.xlu0  ;;  %v9754_v57 = vld [vmem:[#allocation25_spill] sm:$0xff]  ;;  %v9759_v22 = vld [vmem:[#allocation24_spill] sm:$0xff] }
 0x51f   : > { %v9755_v26 = vpack.c.bf16 %v9753_v6, %v9754_v57  ;;  %v9760_v12 = vpack.c.bf16 %v9758_v55, %v9759_v22 }
 0x520   : > { %v2496_v33 = vadd.f32 %v5367_v36, %v2495_v48  ;;  %v9761_v36 = vld [vmem:[#allocation31_spill] sm:$0xff] }
 0x521   : > { %4866 = vmatpush1.bf16.msra.mxu1 %v9747_v15 }
 0x522   : > { %4868 = vmatprep.subr.bf16.mxu1 %v4867_v43  ;;  %v2497_v7 = vadd.f32 %v5369_v42, %v2496_v33  ;;  %v2637_v50 = vpop.trf.xlu0  ;;  %v9762_v42 = vld [vmem:[#allocation29_spill] sm:$0xff]  ;;  %v9767_v43 = vld [vmem:[#allocation28_spill] sm:$0xff] }
 0x523   : > { %v9763_v29 = vpack.c.bf16 %v9761_v36, %v9762_v42 }
 0x524   : > { %v2498_v40 = vadd.f32 %v5371_v56, %v2497_v7  ;;  %v9768_v56 = vpack.c.bf16 %v9766_v37, %v9767_v43 }
 0x525   : > { %4870 = vmatpush1.bf16.msra.mxu1 %v9748_v47 }
 0x526   : > { %4872 = vmatprep.subr.bf16.mxu1 %v4871_v38  ;;  %v2499_v24 = vadd.f32 %v5373_v18, %v2498_v40  ;;  %v2638_v58 = vpop.trf.xlu0  ;;  %v9769_v18 = vld [vmem:[#allocation48_spill] sm:$0xff]  ;;  %v9772_v38 = vmov 0.0   ;;  %v9773_v40 = vld [vmem:[#allocation9_spill] sm:$0xff] }
 0x528   : > { %v2500_v11 = vadd.f32 %v5375_v23, %v2499_v24 }
 0x529   : > { %4874 = vmatpush1.bf16.msra.mxu1 %v9749_v60 }
 0x52a   : > { %4876 = vmatprep.subr.bf16.mxu1 %v4875_v59  ;;  %v2501_v61 = vadd.f32 %v5377_v13, %v2500_v11  ;;  %v2639_v23 = vpop.trf.xlu0 }
 0x52c   : > { %v2502_v25 = vadd.f32 %v5379_v45, %v2501_v61 }
 0x52d   : > { %4878 = vmatpush1.bf16.msra.mxu1 %v9750_v44 }
 0x52e   : > { %4880 = vmatprep.subr.bf16.mxu1 %v4879_v31  ;;  %v2503_v21 = vadd.f32 %v5381_v8, %v2502_v25  ;;  %v2640_v13 = vpop.trf.xlu0 }
 0x530   : > { %v7646_v62 = vadd.f32 %v5383_v39, %v2503_v21  ;;  %v2668_v39 = vpop.trf.xlu1 }
 0x531   : > { %4882 = vmatpush1.bf16.msra.mxu1 %v9751_v17 }
 0x532   : > { %4884 = vmatprep.subr.bf16.mxu1 %v4883_v14  ;;  %v2641_v28 = vpop.trf.xlu0  ;;  %v2505_v24 = vrot.slane %v7646_v62, 4 }
 0x534   : > { %v2669_v14 = vpop.trf.xlu1  ;;  %v2506_v11 = vadd.f32 %v2505_v24, %v7646_v62 }
 0x535   : > { %4886 = vmatpush1.bf16.msra.mxu1 %v9752_v49 }
 0x536   : > { %4888 = vmatprep.subr.bf16.mxu1 %v9755_v26  ;;  %v2642_v3 = vpop.trf.xlu0  ;;  %v2507_v44 = vrot.slane %v2506_v11, 2 }
 0x538   : > { %2576 = vmatmul.mubr.f32.vlgmr.msra.gmra.mrb[106].mxu1 %v9756_v53  ;;  %v2670_v4 = vpop.trf.xlu1  ;;  %v2508_v25 = vadd.f32 %v2507_v44, %v2506_v11 }
 0x539   : > { %2581 = vmatprep.mubr.f32.mxu1 %v9757_v34  ;;  %4890 = vmatpush1.bf16.msra.mxu1 %v9760_v12 }
 0x53a   : > { %4892 = vmatprep.subr.bf16.mxu1 %v9763_v29  ;;  %v2643_v59 = vpop.trf.xlu0  ;;  %v2509_v17 = vrot.slane %v2508_v25, 1 }
 0x53c   : > { %2582 = vmatmul.mubr.f32.gmra.mrb[108].mxu1 %v9764_v19  ;;  %v2671_v9 = vpop.trf.xlu1  ;;  %v2510_v49 = vadd.f32 %v2509_v17, %v2508_v25 }
 0x53d   : > { %2587 = vmatprep.mubr.f32.mxu1 %v9765_v46  ;;  %4894 = vmatpush1.bf16.msra.mxu1 %v9768_v56 }
 0x53e   : > { %v2644_v45 = vpop.trf.xlu0 }
 0x540   : > { %2588 = vmatmul.mubr.f32.gmra.mrb[110].mxu1 %v9769_v18  ;;  %v2672_v52 = vpop.trf.xlu1 }
 0x541   : > { %2593 = vmatprep.mubr.f32.mxu1 %v9770_v54 }
 0x542   : > { %v2645_v8 = vpop.trf.xlu0 }
 0x544   : > { %2594 = vmatmul.mubr.f32.gmra.mrb[112].mxu1 %v9771_v27  ;;  %v2673_v20 = vpop.trf.xlu1 }
 0x545   : > { %2842 = vmatprep.mubr.f32.mxu1 %v9772_v38 }
 0x546   : > { %v2646_v31 = vpop.trf.xlu0 }
 0x548   : > { %4672 = vmatmul.mubr.msk.f32.vlgmr.msra.gmra.mrb[114].mxu1 %vm953_vm2, %v2634_v32  ;;  %v2674_v10 = vpop.trf.xlu1  ;;  %v2468_v32 = vrot.slane %v7620_v16, 4 }
 0x549   : > { %2848 = vmatprep.mubr.f32.mxu1 %v9772_v38 }
 0x54a   : > { %v2647_v35 = vpop.trf.xlu0  ;;  %v2469_v60 = vadd.f32 %v2468_v32, %v7620_v16 }
 0x54c   : > { %4673 = vmatmul.mubr.msk.f32.gmra.mrb[116].mxu1 %vm953_vm2, %v2635_v41  ;;  %v2675_v63 = vpop.trf.xlu1  ;;  %v2470_v61 = vrot.slane %v2469_v60, 2 }
 0x54d   : > { %2854 = vmatprep.mubr.f32.mxu1 %v9772_v38 }
 0x54e   : > { %v2648_v2 = vpop.trf.xlu0  ;;  %v2471_v41 = vadd.f32 %v2470_v61, %v2469_v60 }
 0x550   : > { %4674 = vmatmul.mubr.msk.f32.gmra.mrb[118].mxu1 %vm953_vm2, %v2636_v5  ;;  %v2676_v30 = vpop.trf.xlu1  ;;  %v2472_v21 = vrot.slane %v2471_v41, 1 }
 0x551   : > { %2860 = vmatprep.mubr.f32.mxu1 %v9772_v38 }
 0x552   : > { %v2649_v1 = vpop.trf.xlu0  ;;  %v2473_v5 = vadd.f32 %v2472_v21, %v2471_v41 }
 0x554   : > { %4675 = vmatmul.mubr.msk.f32.gmra.mrb[120].mxu1 %vm953_vm2, %v2637_v50  ;;  %v2677_v48 = vpop.trf.xlu1  ;;  %5384 = vrcp.f32 %v2473_v5 }
 0x555   : > { %2866 = vmatprep.mubr.f32.mxu1 %v9772_v38  ;;  %5386 = vrcp.f32 %v2510_v49 }
 0x558   : > { %4676 = vmatmul.mubr.msk.f32.gmra.mrb[122].mxu1 %vm953_vm2, %v2638_v58  ;;  %v2678_v15 = vpop.trf.xlu1 }
 0x559   : > { %2872 = vmatprep.mubr.f32.mxu1 %v9772_v38 }
 0x55c   : > { %4677 = vmatmul.mubr.msk.f32.gmra.mrb[124].mxu1 %vm953_vm2, %v2639_v23  ;;  %v2679_v33 = vpop.trf.xlu1 }
 0x55d   : > { %2878 = vmatprep.mubr.f32.mxu1 %v9772_v38 }
 0x55e   : > { %v5385_v6 = vpop.eup %5384 }
 0x55f   : > { %v5387_v26 = vpop.eup %5386 }
 0x560   : > { %4678 = vmatmul.mubr.msk.f32.gmra.mrb[126].mxu1 %vm953_vm2, %v2640_v13  ;;  %v2680_v7 = vpop.trf.xlu1 }
 0x561   : > { %2884 = vmatprep.mubr.f32.mxu1 %v9772_v38 }
 0x564   : > { %4679 = vmatmul.mubr.msk.f32.gmra.mrb[128].mxu1 %vm953_vm2, %v2641_v28  ;;  %v2681_v47 = vpop.trf.xlu1 }
 0x565   : > { %2890 = vmatprep.mubr.f32.mxu1 %v9772_v38 }
 0x568   : > { %4680 = vmatmul.mubr.msk.f32.gmra.mrb[130].mxu1 %vm953_vm2, %v2642_v3 }
 0x569   : > { %2896 = vmatprep.mubr.f32.mxu1 %v9772_v38 }
 0x56c   : > { %4681 = vmatmul.mubr.msk.f32.gmra.mrb[132].mxu1 %vm953_vm2, %v2643_v59 }
 0x56d   : > { %2902 = vmatprep.mubr.f32.mxu1 %v9772_v38 }
 0x570   : > { %4682 = vmatmul.mubr.msk.f32.gmra.mrb[134].mxu1 %vm953_vm2, %v2644_v45 }
 0x571   : > { %2908 = vmatprep.mubr.f32.mxu1 %v9772_v38 }
 0x574   : > { %4683 = vmatmul.mubr.msk.f32.gmra.mrb[136].mxu1 %vm953_vm2, %v2645_v8 }
 0x575   : > { %2914 = vmatprep.mubr.f32.mxu1 %v9772_v38 }
 0x578   : > { %4684 = vmatmul.mubr.msk.f32.gmra.mrb[138].mxu1 %vm953_vm2, %v2646_v31 }
 0x579   : > { %2920 = vmatprep.mubr.f32.mxu1 %v9772_v38 }
 0x57c   : > { %4685 = vmatmul.mubr.msk.f32.gmra.mrb[140].mxu1 %vm953_vm2, %v2647_v35 }
 0x57d   : > { %2926 = vmatprep.mubr.f32.mxu1 %v9772_v38 }
 0x580   : > { %4686 = vmatmul.mubr.msk.f32.gmra.mrb[142].mxu1 %vm953_vm2, %v2648_v2 }
 0x581   : > { %2932 = vmatprep.mubr.f32.mxu1 %v9772_v38 }
 0x584   : > { %4687 = vmatmul.mubr.msk.f32.gmra.mrb[144].mxu1 %vm953_vm2, %v2649_v1 }
 0x585   : > { %2938 = vmatprep.mubr.f32.mxu1 %v9772_v38 }
 0x588   : > { %4688 = vmatmul.mubr.msk.f32.gmra.mrb[146].mxu1 %vm953_vm2, %v2666_v0 }
 0x589   : > { %2944 = vmatprep.mubr.f32.mxu1 %v9772_v38 }
 0x58c   : > { %4689 = vmatmul.mubr.msk.f32.gmra.mrb[148].mxu1 %vm953_vm2, %v2667_v51 }
 0x58d   : > { %2950 = vmatprep.mubr.f32.mxu1 %v9772_v38 }
 0x590   : > { %4690 = vmatmul.mubr.msk.f32.gmra.mrb[150].mxu1 %vm953_vm2, %v2668_v39 }
 0x591   : > { %2956 = vmatprep.mubr.f32.mxu1 %v9772_v38 }
 0x594   : > { %4691 = vmatmul.mubr.msk.f32.gmra.mrb[152].mxu1 %vm953_vm2, %v2669_v14 }
 0x595   : > { %2962 = vmatprep.mubr.f32.mxu1 %v9772_v38 }
 0x598   : > { %4692 = vmatmul.mubr.msk.f32.gmra.mrb[154].mxu1 %vm953_vm2, %v2670_v4 }
 0x599   : > { %2968 = vmatprep.mubr.f32.mxu1 %v9772_v38 }
 0x59c   : > { %4693 = vmatmul.mubr.msk.f32.gmra.mrb[156].mxu1 %vm953_vm2, %v2671_v9 }
 0x59d   : > { %2974 = vmatprep.mubr.f32.mxu1 %v9772_v38 }
 0x5a0   : > { %4694 = vmatmul.mubr.msk.f32.gmra.mrb[158].mxu1 %vm953_vm2, %v2672_v52 }
 0x5a1   : > { %2980 = vmatprep.mubr.f32.mxu1 %v9772_v38 }
 0x5a4   : > { %4695 = vmatmul.mubr.msk.f32.gmra.mrb[160].mxu1 %vm953_vm2, %v2673_v20 }
 0x5a5   : > { %2986 = vmatprep.mubr.f32.mxu1 %v9772_v38 }
 0x5a8   : > { %4696 = vmatmul.mubr.msk.f32.gmra.mrb[162].mxu1 %vm953_vm2, %v2674_v10 }
 0x5a9   : > { %2992 = vmatprep.mubr.f32.mxu1 %v9772_v38 }
 0x5ac   : > { %4697 = vmatmul.mubr.msk.f32.gmra.mrb[164].mxu1 %vm953_vm2, %v2675_v63 }
 0x5ad   : > { %2998 = vmatprep.mubr.f32.mxu1 %v9772_v38 }
 0x5b0   : > { %4698 = vmatmul.mubr.msk.f32.gmra.mrb[166].mxu1 %vm953_vm2, %v2676_v30 }
 0x5b1   : > { %3004 = vmatprep.mubr.f32.mxu1 %v9772_v38 }
 0x5b4   : > { %4699 = vmatmul.mubr.msk.f32.gmra.mrb[168].mxu1 %vm953_vm2, %v2677_v48 }
 0x5b5   : > { %3010 = vmatprep.mubr.f32.mxu1 %v9772_v38 }
 0x5b8   : > { %4700 = vmatmul.mubr.msk.f32.gmra.mrb[170].mxu1 %vm953_vm2, %v2678_v15 }
 0x5b9   : > { %3016 = vmatprep.mubr.f32.mxu1 %v9772_v38 }
 0x5bc   : > { %4701 = vmatmul.mubr.msk.f32.gmra.mrb[172].mxu1 %vm953_vm2, %v2679_v33 }
 0x5bd   : > { %3022 = vmatprep.mubr.f32.mxu1 %v9772_v38 }
 0x5c0   : > { %4702 = vmatmul.mubr.msk.f32.gmra.mrb[174].mxu1 %vm953_vm2, %v2680_v7 }
 0x5c1   : > { %3028 = vmatprep.mubr.f32.mxu1 %v9772_v38 }
 0x5c4   : > { %4703 = vmatmul.mubr.msk.f32.gmra.mrb[176].mxu1 %vm953_vm2, %v2681_v47 }
 0x5c5   : > { %4303 = vmatprep.mubr.f32.mxu1 %v9773_v40 }
 0x60b   : > { %v2577_v57 = vpop.f32.mrb[106].mxu1 }
 0x60c   : > { %v7739_v53 = vmul.f32 %v5385_v6, %v2577_v57  ;;  %v2579_v34 = vpop.f32.mrb[107].mxu1 }
 0x60d   : > { %v7741_v55 = vmul.f32 %v5387_v26, %v2579_v34 }
 0x60e   : > { %9774 = vst [vmem:[#allocation62_spill] sm:$0xff] %v7739_v53 }
 0x60f   : > { %9775 = vst [vmem:[#allocation23_spill] sm:$0xff] %v7741_v55  ;;  %v2583_v16 = vpop.f32.mrb[108].mxu1 }
 0x610   : > { %v7743_v62 = vmul.f32 %v5385_v6, %v2583_v16  ;;  %v2585_v22 = vpop.f32.mrb[109].mxu1 }
 0x611   : > { %v7745_v12 = vmul.f32 %v5387_v26, %v2585_v22 }
 0x612   : > { %9776 = vst [vmem:[#allocation21_spill] sm:$0xff] %v7743_v62 }
 0x613   : > { %9777 = vst [vmem:[#allocation61_spill] sm:$0xff] %v7745_v12  ;;  %v2589_v42 = vpop.f32.mrb[110].mxu1 }
 0x614   : > { %v7751_v29 = vmul.f32 %v5385_v6, %v2589_v42  ;;  %v2591_v19 = vpop.f32.mrb[111].mxu1 }
 0x615   : > { %v7753_v46 = vmul.f32 %v5387_v26, %v2591_v19 }
 0x616   : > { %9778 = vst [vmem:[#allocation22_spill] sm:$0xff] %v7751_v29 }
 0x617   : > { %9779 = vst [vmem:[#allocation20_spill] sm:$0xff] %v7753_v46  ;;  %v2595_v37 = vpop.f32.mrb[112].mxu1 }
 0x618   : > { %v7755_v43 = vmul.f32 %v5385_v6, %v2595_v37  ;;  %v2597_v56 = vpop.f32.mrb[113].mxu1 }
 0x619   : > { %v7757_v58 = vmul.f32 %v5387_v26, %v2597_v56 }
 0x61a   : > { %9780 = vst [vmem:[#allocation41_spill] sm:$0xff] %v7755_v43 }
 0x61b   : > { %9781 = vst [vmem:[#allocation40_spill] sm:$0xff] %v7757_v58  ;;  %v7763_v27 = vpop.f32.mrb[114].mxu1 }
 0x61c   : > { %v7765_v23 = vpop.f32.mrb[115].mxu1 }
 0x61f   : > { %v7767_v13 = vpop.f32.mrb[116].mxu1 }
 0x620   : > { %v7769_v28 = vpop.f32.mrb[117].mxu1 }
 0x623   : > { %v7771_v3 = vpop.f32.mrb[118].mxu1 }
 0x624   : > { %v3035_v59 = vmax.f32 %v7763_v27, %v7771_v3  ;;  %v7775_v45 = vpop.f32.mrb[119].mxu1 }
 0x625   : > { %v3072_v0 = vmax.f32 %v7765_v23, %v7775_v45 }
 0x627   : > { %v7779_v8 = vpop.f32.mrb[120].mxu1 }
 0x628   : > { %v3036_v51 = vmax.f32 %v7767_v13, %v7779_v8  ;;  %v7783_v31 = vpop.f32.mrb[121].mxu1 }
 0x629   : > { %v3073_v39 = vmax.f32 %v7769_v28, %v7783_v31 }
 0x62b   : > { %v7787_v35 = vpop.f32.mrb[122].mxu1 }
 0x62c   : > { %v3037_v14 = vmax.f32 %v3035_v59, %v7787_v35  ;;  %v7790_v2 = vpop.f32.mrb[123].mxu1 }
 0x62d   : > { %v3074_v4 = vmax.f32 %v3072_v0, %v7790_v2 }
 0x62f   : > { %v7793_v1 = vpop.f32.mrb[124].mxu1 }
 0x630   : > { %v3038_v9 = vmax.f32 %v3036_v51, %v7793_v1  ;;  %v7796_v52 = vpop.f32.mrb[125].mxu1 }
 0x631   : > { %v3075_v20 = vmax.f32 %v3073_v39, %v7796_v52 }
 0x633   : > { %v7799_v10 = vpop.f32.mrb[126].mxu1 }
 0x634   : > { %v3039_v63 = vmax.f32 %v3037_v14, %v7799_v10  ;;  %v7802_v30 = vpop.f32.mrb[127].mxu1 }
 0x635   : > { %v3076_v48 = vmax.f32 %v3074_v4, %v7802_v30 }
 0x637   : > { %v7805_v15 = vpop.f32.mrb[128].mxu1 }
 0x638   : > { %v3040_v33 = vmax.f32 %v3038_v9, %v7805_v15  ;;  %v7808_v7 = vpop.f32.mrb[129].mxu1 }
 0x639   : > { %v3077_v47 = vmax.f32 %v3075_v20, %v7808_v7 }
 0x63b   : > { %v7811_v40 = vpop.f32.mrb[130].mxu1 }
 0x63c   : > { %v3041_v32 = vmax.f32 %v3039_v63, %v7811_v40  ;;  %v7814_v24 = vpop.f32.mrb[131].mxu1 }
 0x63d   : > { %v3078_v60 = vmax.f32 %v3076_v48, %v7814_v24 }
 0x63f   : > { %v7817_v11 = vpop.f32.mrb[132].mxu1 }
 0x640   : > { %v3042_v61 = vmax.f32 %v3040_v33, %v7817_v11  ;;  %v7820_v44 = vpop.f32.mrb[133].mxu1 }
 0x641   : > { %v3079_v41 = vmax.f32 %v3077_v47, %v7820_v44 }
 0x643   : > { %v7823_v25 = vpop.f32.mrb[134].mxu1 }
 0x644   : > { %v3043_v21 = vmax.f32 %v3041_v32, %v7823_v25  ;;  %v7826_v17 = vpop.f32.mrb[135].mxu1 }
 0x645   : > { %v3080_v5 = vmax.f32 %v3078_v60, %v7826_v17 }
 0x647   : > { %v7829_v49 = vpop.f32.mrb[136].mxu1 }
 0x648   : > { %v3044_v6 = vmax.f32 %v3042_v61, %v7829_v49  ;;  %v7832_v57 = vpop.f32.mrb[137].mxu1 }
 0x649   : > { %9782 = vst [vmem:[#allocation43_spill] sm:$0xff] %v7832_v57  ;;  %v3081_v26 = vmax.f32 %v3079_v41, %v7832_v57 }
 0x64b   : > { %v7835_v34 = vpop.f32.mrb[138].mxu1 }
 0x64c   : > { %v3045_v16 = vmax.f32 %v3043_v21, %v7835_v34  ;;  %v7838_v22 = vpop.f32.mrb[139].mxu1 }
 0x64d   : > { %9783 = vst [vmem:[#allocation42_spill] sm:$0xff] %v7838_v22  ;;  %v3082_v42 = vmax.f32 %v3080_v5, %v7838_v22 }
 0x64f   : > { %v7841_v19 = vpop.f32.mrb[140].mxu1 }
 0x650   : > { %v3046_v37 = vmax.f32 %v3044_v6, %v7841_v19  ;;  %v7844_v56 = vpop.f32.mrb[141].mxu1 }
 0x651   : > { %9784 = vst [vmem:[#allocation63_spill] sm:$0xff] %v7844_v56  ;;  %v3083_v59 = vmax.f32 %v3081_v26, %v7844_v56 }
 0x653   : > { %v7847_v0 = vpop.f32.mrb[142].mxu1 }
 0x654   : > { %v3047_v51 = vmax.f32 %v3045_v16, %v7847_v0  ;;  %v7850_v39 = vpop.f32.mrb[143].mxu1 }
 0x655   : > { %9785 = vst [vmem:[#allocation64_spill] sm:$0xff] %v7850_v39  ;;  %v3084_v14 = vmax.f32 %v3082_v42, %v7850_v39 }
 0x657   : > { %v7853_v4 = vpop.f32.mrb[144].mxu1 }
 0x658   : > { %v3048_v9 = vmax.f32 %v3046_v37, %v7853_v4  ;;  %v7856_v20 = vpop.f32.mrb[145].mxu1 }
 0x659   : > { %9786 = vst [vmem:[#allocation65_spill] sm:$0xff] %v7856_v20  ;;  %v3085_v63 = vmax.f32 %v3083_v59, %v7856_v20 }
 0x65b   : > { %v7859_v48 = vpop.f32.mrb[146].mxu1 }
 0x65c   : > { %v3049_v33 = vmax.f32 %v3047_v51, %v7859_v48  ;;  %v7862_v47 = vpop.f32.mrb[147].mxu1 }
 0x65d   : > { %9787 = vst [vmem:[#allocation66_spill] sm:$0xff] %v7862_v47  ;;  %v3086_v32 = vmax.f32 %v3084_v14, %v7862_v47 }
 0x65f   : > { %v7865_v60 = vpop.f32.mrb[148].mxu1 }
 0x660   : > { %v3050_v61 = vmax.f32 %v3048_v9, %v7865_v60  ;;  %v7868_v41 = vpop.f32.mrb[149].mxu1 }
 0x661   : > { %9788 = vst [vmem:[#allocation68_spill] sm:$0xff] %v7868_v41  ;;  %v3087_v21 = vmax.f32 %v3085_v63, %v7868_v41 }
 0x663   : > { %v7871_v5 = vpop.f32.mrb[150].mxu1 }
 0x664   : > { %v3051_v6 = vmax.f32 %v3049_v33, %v7871_v5  ;;  %v7874_v26 = vpop.f32.mrb[151].mxu1 }
 0x665   : > { %9789 = vst [vmem:[#allocation70_spill] sm:$0xff] %v7874_v26  ;;  %v3088_v16 = vmax.f32 %v3086_v32, %v7874_v26 }
 0x667   : > { %v7877_v42 = vpop.f32.mrb[152].mxu1 }
 0x668   : > { %v3052_v37 = vmax.f32 %v3050_v61, %v7877_v42  ;;  %v7880_v59 = vpop.f32.mrb[153].mxu1 }
 0x669   : > { %9790 = vst [vmem:[#allocation71_spill] sm:$0xff] %v7880_v59  ;;  %v3089_v51 = vmax.f32 %v3087_v21, %v7880_v59 }
 0x66b   : > { %v7883_v14 = vpop.f32.mrb[154].mxu1 }
 0x66c   : > { %v3053_v9 = vmax.f32 %v3051_v6, %v7883_v14  ;;  %v7886_v63 = vpop.f32.mrb[155].mxu1 }
 0x66d   : > { %9791 = vst [vmem:[#allocation67_spill] sm:$0xff] %v7886_v63  ;;  %v3090_v33 = vmax.f32 %v3088_v16, %v7886_v63 }
 0x66f   : > { %v7889_v18 = vpop.f32.mrb[156].mxu1 }
 0x670   : > { %v3054_v32 = vmax.f32 %v3052_v37, %v7889_v18  ;;  %v7892_v54 = vpop.f32.mrb[157].mxu1 }
 0x671   : > { %9792 = vst [vmem:[#allocation69_spill] sm:$0xff] %v7892_v54  ;;  %v3091_v61 = vmax.f32 %v3089_v51, %v7892_v54 }
 0x673   : > { %v7895_v50 = vpop.f32.mrb[158].mxu1 }
 0x674   : > { %v3055_v21 = vmax.f32 %v3053_v9, %v7895_v50  ;;  %v7898_v36 = vpop.f32.mrb[159].mxu1 }
 0x675   : > { %9793 = vst [vmem:[#allocation72_spill] sm:$0xff] %v7898_v36  ;;  %v3092_v6 = vmax.f32 %v3090_v33, %v7898_v36 }
 0x677   : > { %v7901_v29 = vpop.f32.mrb[160].mxu1 }
 0x678   : > { %v3056_v16 = vmax.f32 %v3054_v32, %v7901_v29  ;;  %v7904_v43 = vpop.f32.mrb[161].mxu1 }
 0x679   : > { %9794 = vst [vmem:[#allocation16_spill] sm:$0xff] %v7904_v43  ;;  %v3093_v37 = vmax.f32 %v3091_v61, %v7904_v43 }
 0x67b   : > { %v7907_v46 = vpop.f32.mrb[162].mxu1 }
 0x67c   : > { %v3057_v51 = vmax.f32 %v3055_v21, %v7907_v46  ;;  %v7910_v58 = vpop.f32.mrb[163].mxu1 }
 0x67d   : > { %9795 = vst [vmem:[#allocation27_spill] sm:$0xff] %v7910_v58  ;;  %v3094_v9 = vmax.f32 %v3092_v6, %v7910_v58 }
 0x67f   : > { %v7913_v53 = vpop.f32.mrb[164].mxu1 }
 0x680   : > { %v3058_v33 = vmax.f32 %v3056_v16, %v7913_v53  ;;  %v7916_v62 = vpop.f32.mrb[165].mxu1 }
 0x681   : > { %9796 = vst [vmem:[#allocation25_spill] sm:$0xff] %v7916_v62  ;;  %v3095_v32 = vmax.f32 %v3093_v37, %v7916_v62 }
 0x683   : > { %v7919_v55 = vpop.f32.mrb[166].mxu1 }
 0x684   : > { %v3059_v61 = vmax.f32 %v3057_v51, %v7919_v55  ;;  %v7922_v12 = vpop.f32.mrb[167].mxu1 }
 0x685   : > { %9797 = vst [vmem:[#allocation45_spill] sm:$0xff] %v7922_v12  ;;  %v3096_v21 = vmax.f32 %v3094_v9, %v7922_v12 }
 0x687   : > { %v7925_v38 = vpop.f32.mrb[168].mxu1 }
 0x688   : > { %v3060_v6 = vmax.f32 %v3058_v33, %v7925_v38  ;;  %v7928_v58 = vpop.f32.mrb[169].mxu1 }
 0x689   : > { %9798 = vst [vmem:[#allocation47_spill] sm:$0xff] %v7928_v58  ;;  %v3097_v16 = vmax.f32 %v3095_v32, %v7928_v58 }
 0x68b   : > { %v7931_v43 = vpop.f32.mrb[170].mxu1 }
 0x68c   : > { %v3061_v37 = vmax.f32 %v3059_v61, %v7931_v43  ;;  %v7934_v62 = vpop.f32.mrb[171].mxu1 }
 0x68d   : > { %9799 = vst [vmem:[#allocation26_spill] sm:$0xff] %v7934_v62  ;;  %v3098_v51 = vmax.f32 %v3096_v21, %v7934_v62 }
 0x68f   : > { %v7937_v36 = vpop.f32.mrb[172].mxu1 }
 0x690   : > { %v3062_v9 = vmax.f32 %v3060_v6, %v7937_v36  ;;  %v7940_v12 = vpop.f32.mrb[173].mxu1 }
 0x691   : > { %9800 = vst [vmem:[#allocation24_spill] sm:$0xff] %v7940_v12  ;;  %v3099_v33 = vmax.f32 %v3097_v16, %v7940_v12 }
 0x693   : > { %v7943_v54 = vpop.f32.mrb[174].mxu1 }
 0x694   : > { %v3063_v32 = vmax.f32 %v3061_v37, %v7943_v54  ;;  %v7946_v58 = vpop.f32.mrb[175].mxu1 }
 0x695   : > { %9801 = vst [vmem:[#allocation31_spill] sm:$0xff] %v7946_v58  ;;  %v3100_v61 = vmax.f32 %v3098_v51, %v7946_v58 }
 0x697   : > { %v7949_v63 = vpop.f32.mrb[176].mxu1 }
 0x698   : > { %v3064_v21 = vmax.f32 %v3062_v9, %v7949_v63  ;;  %v7952_v62 = vpop.f32.mrb[177].mxu1 }
 0x699   : > { %9802 = vst [vmem:[#allocation29_spill] sm:$0xff] %v7952_v62  ;;  %v3101_v6 = vmax.f32 %v3099_v33, %v7952_v62 }
 0x69a   : > { %v3065_v59 = vmax.f32 %v3063_v32, %v3064_v21 }
 0x69b   : > { %v3102_v26 = vmax.f32 %v3100_v61, %v3101_v6 }
 0x69c   : > { %v3066_v41 = vrot.slane %v3065_v59, 4 }
 0x69d   : > { %v3103_v16 = vrot.slane %v3102_v26, 4 }
 0x69e   : > { %v3067_v12 = vmax.f32 %v3065_v59, %v3066_v41 }
 0x69f   : > { %v3104_v47 = vmax.f32 %v3102_v26, %v3103_v16 }
 0x6a0   : > { %v3068_v20 = vrot.slane %v3067_v12, 2 }
 0x6a1   : > { %v3105_v37 = vrot.slane %v3104_v47, 2 }
 0x6a2   : > { %v3069_v39 = vmax.f32 %v3067_v12, %v3068_v20  ;;  %v9822_v20 = vld [vmem:[#allocation31_spill] sm:$0xff] }
 0x6a3   : > { %v3106_v56 = vmax.f32 %v3104_v47, %v3105_v37 }
 0x6a4   : > { %v3070_v22 = vrot.slane %v3069_v39, 1 }
 0x6a5   : > { %v3107_v51 = vrot.slane %v3106_v56, 1 }
 0x6a6   : > { %v7955_v58 = vmax.f32 %v3069_v39, %v3070_v22 }
 0x6a7   : > { %v7957_v57 = vmax.f32 %v3106_v56, %v3107_v51 }
 0x6a8   : > { %v3109_v9 = vsub.f32 %v7763_v27, %v7955_v58  ;;  %v3111_v33 = vsub.f32 %v7767_v13, %v7955_v58  ;;  %v3113_v41 = vsub.f32 %v7771_v3, %v7955_v58  ;;  %v3115_v26 = vsub.f32 %v7779_v8, %v7955_v58 }
 0x6a9   : > { %v3117_v12 = vsub.f32 %v7787_v35, %v7955_v58  ;;  %v3119_v22 = vsub.f32 %v7793_v1, %v7955_v58  ;;  %v3121_v56 = vsub.f32 %v7799_v10, %v7955_v58  ;;  %v3123_v27 = vsub.f32 %v7805_v15, %v7955_v58 }
 0x6aa   : > { %v3125_v13 = vsub.f32 %v7811_v40, %v7955_v58  ;;  %v3127_v3 = vsub.f32 %v7817_v11, %v7955_v58  ;;  %v3129_v8 = vsub.f32 %v7823_v25, %v7955_v58  ;;  %v3131_v35 = vsub.f32 %v7829_v49, %v7955_v58 }
 0x6ab   : > { %v3133_v1 = vsub.f32 %v7835_v34, %v7955_v58  ;;  %v3135_v10 = vsub.f32 %v7841_v19, %v7955_v58  ;;  %v3137_v15 = vsub.f32 %v7847_v0, %v7955_v58  ;;  %v3139_v40 = vsub.f32 %v7853_v4, %v7955_v58 }
 0x6ac   : > { %v3141_v11 = vsub.f32 %v7859_v48, %v7955_v58  ;;  %v3143_v25 = vsub.f32 %v7865_v60, %v7955_v58  ;;  %v3145_v49 = vsub.f32 %v7871_v5, %v7955_v58  ;;  %v3147_v34 = vsub.f32 %v7877_v42, %v7955_v58 }
 0x6ad   : > { %v3149_v19 = vsub.f32 %v7883_v14, %v7955_v58  ;;  %v3151_v0 = vsub.f32 %v7889_v18, %v7955_v58  ;;  %v3153_v39 = vsub.f32 %v7895_v50, %v7955_v58  ;;  %v3155_v4 = vsub.f32 %v7901_v29, %v7955_v58 }
 0x6ae   : > { %v3173_v42 = vmul.f32 1.442695, %v3109_v9  ;;  %v3177_v59 = vmul.f32 1.442695, %v3111_v33  ;;  %v3181_v14 = vmul.f32 1.442695, %v3113_v41 }
 0x6af   : > { %v3185_v61 = vmul.f32 1.442695, %v3115_v26  ;;  %v3189_v6 = vmul.f32 1.442695, %v3117_v12  ;;  %v3193_v16 = vmul.f32 1.442695, %v3119_v22 }
 0x6b0   : > { %5388 = vpow2.f32 %v3173_v42  ;;  %v3197_v37 = vmul.f32 1.442695, %v3121_v56  ;;  %v3201_v51 = vmul.f32 1.442695, %v3123_v27  ;;  %v3205_v29 = vmul.f32 1.442695, %v3125_v13 }
 0x6b1   : > { %5390 = vpow2.f32 %v3177_v59  ;;  %v3209_v5 = vmul.f32 1.442695, %v3127_v3  ;;  %v3213_v9 = vmul.f32 1.442695, %v3129_v8  ;;  %v3217_v33 = vmul.f32 1.442695, %v3131_v35 }
 0x6b2   : > { %5392 = vpow2.f32 %v3181_v14  ;;  %v3221_v41 = vmul.f32 1.442695, %v3133_v1  ;;  %v3225_v32 = vmul.f32 1.442695, %v3135_v10  ;;  %v3229_v26 = vmul.f32 1.442695, %v3137_v15 }
 0x6b3   : > { %5394 = vpow2.f32 %v3185_v61  ;;  %v3233_v50 = vmul.f32 1.442695, %v3139_v40  ;;  %v3237_v21 = vmul.f32 1.442695, %v3141_v11  ;;  %v3241_v42 = vmul.f32 1.442695, %v3143_v25 }
 0x6b4   : > { %5396 = vpow2.f32 %v3189_v6  ;;  %v3245_v12 = vmul.f32 1.442695, %v3145_v49  ;;  %v3249_v22 = vmul.f32 1.442695, %v3147_v34  ;;  %v3253_v59 = vmul.f32 1.442695, %v3149_v19 }
 0x6b5   : > { %5398 = vpow2.f32 %v3193_v16  ;;  %v8027_v56 = vmul.f32 1.442695, %v3151_v0  ;;  %v8029_v27 = vmul.f32 1.442695, %v3153_v39  ;;  %v8031_v13 = vmul.f32 1.442695, %v3155_v4 }
 0x6b6   : > { %5400 = vpow2.f32 %v3197_v37  ;;  %v9803_v19 = vld [vmem:[#allocation43_spill] sm:$0xff]  ;;  %v9806_v16 = vld [vmem:[#allocation64_spill] sm:$0xff]  ;;  %v9810_v49 = vld [vmem:[#allocation70_spill] sm:$0xff] }
 0x6b7   : > { %5402 = vpow2.f32 %v3201_v51  ;;  %v9805_v14 = vld [vmem:[#allocation63_spill] sm:$0xff]  ;;  %v9807_v51 = vld [vmem:[#allocation65_spill] sm:$0xff]  ;;  %v9809_v34 = vld [vmem:[#allocation68_spill] sm:$0xff] }
 0x6b8   : > { %5404 = vpow2.f32 %v3205_v29  ;;  %v9804_v29 = vld [vmem:[#allocation42_spill] sm:$0xff]  ;;  %v9811_v37 = vld [vmem:[#allocation71_spill] sm:$0xff]  ;;  %v9813_v15 = vld [vmem:[#allocation69_spill] sm:$0xff] }
 0x6b9   : > { %5406 = vpow2.f32 %v3209_v5  ;;  %v9812_v40 = vld [vmem:[#allocation67_spill] sm:$0xff]  ;;  %v9814_v61 = vld [vmem:[#allocation72_spill] sm:$0xff]  ;;  %v9817_v3 = vld [vmem:[#allocation25_spill] sm:$0xff] }
 0x6ba   : > { %v8041_v10 = vpop.eup %5388  ;;  %5408 = vpow2.f32 %v3213_v9  ;;  %v9815_v35 = vld [vmem:[#allocation16_spill] sm:$0xff]  ;;  %v9816_v9 = vld [vmem:[#allocation27_spill] sm:$0xff] }
 0x6bb   : > { %v8049_v25 = vpop.eup %5390  ;;  %5410 = vpow2.f32 %v3217_v33  ;;  %v9808_v33 = vld [vmem:[#allocation66_spill] sm:$0xff] }
 0x6bc   : > { %v8057_v39 = vpop.eup %5392  ;;  %5412 = vpow2.f32 %v3221_v41  ;;  %v3301_v4 = vadd.f32 %v8049_v25, %v8041_v10  ;;  %v9821_v41 = vld [vmem:[#allocation24_spill] sm:$0xff] }
 0x6bd   : > { %v8065_v6 = vpop.eup %5394  ;;  %5414 = vpow2.f32 %v3225_v32  ;;  %v9819_v32 = vld [vmem:[#allocation47_spill] sm:$0xff] }
 0x6be   : > { %v8073_v0 = vpop.eup %5396  ;;  %5416 = vpow2.f32 %v3229_v26  ;;  %v3302_v5 = vadd.f32 %v8057_v39, %v3301_v4 }
 0x6bf   : > { %v8080_v11 = vpop.eup %5398  ;;  %5418 = vpow2.f32 %v3233_v50 }
 0x6c0   : > { %v8088_v1 = vpop.eup %5400  ;;  %5420 = vpow2.f32 %v3237_v21  ;;  %v3303_v4 = vadd.f32 %v8065_v6, %v3302_v5 }
 0x6c1   : > { %v8095_v8 = vpop.eup %5402  ;;  %5422 = vpow2.f32 %v3241_v42 }
 0x6c2   : > { %v8103_v60 = vpop.eup %5404  ;;  %5424 = vpow2.f32 %v3245_v12  ;;  %v3304_v5 = vadd.f32 %v8073_v0, %v3303_v4  ;;  %v9823_v4 = vsub.f32 %v7907_v46, %v7955_v58 }
 0x6c3   : > { %v8110_v48 = vpop.eup %5406  ;;  %5426 = vpow2.f32 %v3249_v22  ;;  %v9824_v22 = vsub.f32 %v7913_v53, %v7955_v58 }
 0x6c4   : > { %v8118_v18 = vpop.eup %5408  ;;  %5428 = vpow2.f32 %v3253_v59  ;;  %v3269_v50 = vmul.f32 1.442695, %v9823_v4  ;;  %v3305_v42 = vadd.f32 %v8080_v11, %v3304_v5  ;;  %v9825_v59 = vsub.f32 %v7919_v55, %v7955_v58 }
 0x6c5   : > { %v8124_v47 = vpop.eup %5410  ;;  %5430 = vpow2.f32 %v8027_v56  ;;  %v3273_v21 = vmul.f32 1.442695, %v9824_v22  ;;  %v9826_v56 = vsub.f32 %v7925_v38, %v7955_v58  ;;  %v9830_v38 = vsub.f32 %v7943_v54, %v7955_v58 }
 0x6c6   : > { %v8130_v26 = vpop.eup %5412  ;;  %5432 = vpow2.f32 %v8029_v27  ;;  %v3277_v12 = vmul.f32 1.442695, %v9825_v59  ;;  %v3306_v46 = vadd.f32 %v8088_v1, %v3305_v42  ;;  %v9827_v27 = vsub.f32 %v7931_v43, %v7955_v58 }
 0x6c7   : > { %v8137_v4 = vpop.eup %5414  ;;  %5434 = vpow2.f32 %v8031_v13  ;;  %v3281_v5 = vmul.f32 1.442695, %v9826_v56  ;;  %v9828_v42 = vsub.f32 %v7937_v36, %v7955_v58 }
 0x6c8   : > { %v8143_v53 = vpop.eup %5416  ;;  %5436 = vpow2.f32 %v3269_v50  ;;  %v3285_v22 = vmul.f32 1.442695, %v9827_v27  ;;  %v3307_v55 = vadd.f32 %v8095_v8, %v3306_v46  ;;  %v3293_v50 = vmul.f32 1.442695, %v9830_v38 }
 0x6c9   : > { %v8149_v59 = vpop.eup %5418  ;;  %5438 = vpow2.f32 %v3273_v21  ;;  %v3289_v13 = vmul.f32 1.442695, %v9828_v42  ;;  %v9831_v46 = vsub.f32 %v7949_v63, %v7955_v58  ;;  %v9834_v58 = vsub.f32 %v7775_v45, %v7957_v57 }
 0x6ca   : > { %v8154_v62 = vpop.eup %5420  ;;  %5440 = vpow2.f32 %v3277_v12  ;;  %v3308_v56 = vadd.f32 %v8103_v60, %v3307_v55  ;;  %v9832_v12 = vsub.f32 %v7765_v23, %v7957_v57  ;;  %v9833_v55 = vsub.f32 %v7769_v28, %v7957_v57 }
 0x6cb   : > { %9829 = vst [vmem:[#allocation46_spill] sm:$0xff] %v8154_v62  ;;  %v8160_v43 = vpop.eup %5422  ;;  %5442 = vpow2.f32 %v3281_v5  ;;  %v3297_v21 = vmul.f32 1.442695, %v9831_v46  ;;  %v3183_v63 = vmul.f32 1.442695, %v9834_v58  ;;  %v9835_v23 = vsub.f32 %v7783_v31, %v7957_v57 }
 0x6cc   : > { %v8165_v27 = vpop.eup %5424  ;;  %5444 = vpow2.f32 %v3285_v22  ;;  %v3309_v36 = vadd.f32 %v8110_v48, %v3308_v56  ;;  %v3175_v42 = vmul.f32 1.442695, %v9832_v12  ;;  %v3179_v5 = vmul.f32 1.442695, %v9833_v55 }
 0x6cd   : > { %v8171_v54 = vpop.eup %5426  ;;  %5446 = vpow2.f32 %v3289_v13  ;;  %v3187_v56 = vmul.f32 1.442695, %v9835_v23  ;;  %v9836_v13 = vsub.f32 %v7790_v2, %v7957_v57  ;;  %v9837_v28 = vsub.f32 %v7796_v52, %v7957_v57 }
 0x6ce   : > { %v8179_v38 = vpop.eup %5428  ;;  %5448 = vpow2.f32 %v3293_v50  ;;  %v3310_v22 = vadd.f32 %v8118_v18, %v3309_v36  ;;  %v9838_v50 = vsub.f32 %v7802_v30, %v7957_v57  ;;  %v9839_v36 = vsub.f32 %v7808_v7, %v7957_v57 }
 0x6cf   : > { %v3191_v46 = vmul.f32 1.442695, %v9836_v13  ;;  %v8188_v12 = vpop.eup %5430  ;;  %5450 = vpow2.f32 %v3297_v21  ;;  %v3195_v45 = vmul.f32 1.442695, %v9837_v28  ;;  %v9840_v21 = vsub.f32 %v7814_v24, %v7957_v57 }
 0x6d0   : > { %v3199_v55 = vmul.f32 1.442695, %v9838_v50  ;;  %v3203_v31 = vmul.f32 1.442695, %v9839_v36  ;;  %v8199_v58 = vpop.eup %5432  ;;  %v3311_v2 = vadd.f32 %v8124_v47, %v3310_v22  ;;  %5452 = vpow2.f32 %v3175_v42 }
 0x6d1   : > { %v3207_v23 = vmul.f32 1.442695, %v9840_v21  ;;  %v9841_v52 = vsub.f32 %v7820_v44, %v7957_v57  ;;  %v8208_v28 = vpop.eup %5434  ;;  %5454 = vpow2.f32 %v3179_v5 }
 0x6d2   : > { %v8216_v22 = vpop.eup %5436  ;;  %v3312_v24 = vadd.f32 %v8130_v26, %v3311_v2  ;;  %5456 = vpow2.f32 %v3183_v63 }
 0x6d3   : > { %v3211_v13 = vmul.f32 1.442695, %v9841_v52  ;;  %v8223_v50 = vpop.eup %5438  ;;  %5458 = vpow2.f32 %v3187_v56  ;;  %v9842_v56 = vsub.f32 %v7826_v17, %v7957_v57  ;;  %v9843_v52 = vsub.f32 %v9803_v19, %v7957_v57 }
 0x6d4   : > { %v8231_v2 = vpop.eup %5440  ;;  %v3313_v63 = vadd.f32 %v8137_v4, %v3312_v24  ;;  %5460 = vpow2.f32 %v3191_v46 }
 0x6d5   : > { %v8238_v44 = vpop.eup %5442  ;;  %5462 = vpow2.f32 %v3195_v45  ;;  %v3215_v5 = vmul.f32 1.442695, %v9842_v56  ;;  %v3219_v21 = vmul.f32 1.442695, %v9843_v52 }
 0x6d6   : > { %v8246_v24 = vpop.eup %5444  ;;  %v3314_v46 = vadd.f32 %v8143_v53, %v3313_v63  ;;  %5464 = vpow2.f32 %v3199_v55  ;;  %v9844_v55 = vsub.f32 %v9804_v29, %v7957_v57  ;;  %v9849_v29 = vsub.f32 %v9809_v34, %v7957_v57 }
 0x6d7   : > { %v8254_v42 = vpop.eup %5446  ;;  %5466 = vpow2.f32 %v3203_v31  ;;  %v9845_v31 = vsub.f32 %v9805_v14, %v7957_v57  ;;  %v9848_v14 = vsub.f32 %v9808_v33, %v7957_v57  ;;  %v9852_v34 = vsub.f32 %v9812_v40, %v7957_v57 }
 0x6d8   : > { %v8259_v36 = vpop.eup %5448  ;;  %v3315_v7 = vadd.f32 %v8149_v59, %v3314_v46  ;;  %5468 = vpow2.f32 %v3207_v23  ;;  %v3223_v17 = vmul.f32 1.442695, %v9844_v55  ;;  %v9846_v23 = vsub.f32 %v9806_v16, %v7957_v57 }
 0x6d9   : > { %v8267_v56 = vpop.eup %5450  ;;  %5470 = vpow2.f32 %v3211_v13  ;;  %v3227_v19 = vmul.f32 1.442695, %v9845_v31  ;;  %v9847_v13 = vsub.f32 %v9807_v51, %v7957_v57  ;;  %v3239_v31 = vmul.f32 1.442695, %v9848_v14 }
 0x6da   : > { %v5453_v52 = vpop.eup %5452  ;;  %v3316_v45 = vadd.f32 %v8154_v62, %v3315_v7  ;;  %5472 = vpow2.f32 %v3215_v5  ;;  %v3231_v46 = vmul.f32 1.442695, %v9846_v23  ;;  %v9850_v51 = vsub.f32 %v9810_v49, %v7957_v57 }
 0x6db   : > { %v5455_v55 = vpop.eup %5454  ;;  %5474 = vpow2.f32 %v3219_v21  ;;  %v3235_v63 = vmul.f32 1.442695, %v9847_v13  ;;  %v3243_v21 = vmul.f32 1.442695, %v9849_v29  ;;  %v3255_v29 = vmul.f32 1.442695, %v9852_v34 }
 0x6dc   : > { %v5457_v30 = vpop.eup %5456  ;;  %v3317_v7 = vadd.f32 %v8160_v43, %v3316_v45  ;;  %5476 = vpow2.f32 %v3223_v17  ;;  %v3338_v5 = vadd.f32 %v5455_v55, %v5453_v52  ;;  %v4895_v16 = vpack.c.bf16 %v5455_v55, %v5453_v52 }
 0x6dd   : > { %v5459_v23 = vpop.eup %5458  ;;  %5478 = vpow2.f32 %v3227_v19  ;;  %v3247_v13 = vmul.f32 1.442695, %v9850_v51  ;;  %v9851_v19 = vsub.f32 %v9811_v37, %v7957_v57  ;;  %v9853_v49 = vpack.c.bf16 %v8049_v25, %v8041_v10 }
 0x6de   : > { %v5461_v62 = vpop.eup %5460  ;;  %v3318_v33 = vadd.f32 %v8165_v27, %v3317_v7  ;;  %5480 = vpow2.f32 %v3231_v46  ;;  %v3339_v14 = vadd.f32 %v5457_v30, %v3338_v5  ;;  %4896 = vmatprep.subr.bf16.mxu0 %v4895_v16  ;;  %v4899_v45 = vpack.c.bf16 %v5459_v23, %v5457_v30 }
 0x6df   : > { %v5463_v17 = vpop.eup %5462  ;;  %5482 = vpow2.f32 %v3235_v63  ;;  %v3251_v52 = vmul.f32 1.442695, %v9851_v19  ;;  %4898 = vmatpush1.bf16.msra.mxu0 %v9853_v49  ;;  %v9854_v37 = vsub.f32 %v9813_v15, %v7957_v57  ;;  %v9855_v40 = vsub.f32 %v9814_v61, %v7957_v57  ;;  %v9860_v49 = vld [vmem:[#allocation45_spill] sm:$0xff] }
 0x6e0   : > { %v5465_v55 = vpop.eup %5464  ;;  %v3319_v46 = vadd.f32 %v8171_v54, %v3318_v33  ;;  %5484 = vpow2.f32 %v3239_v31  ;;  %v3340_v7 = vadd.f32 %v5459_v23, %v3339_v14  ;;  %4900 = vmatprep.subr.bf16.mxu0 %v4899_v45  ;;  %v4903_v30 = vpack.c.bf16 %v5463_v17, %v5461_v62 }
 0x6e1   : > { %v5467_v63 = vpop.eup %5466  ;;  %5486 = vpow2.f32 %v3243_v21  ;;  %v3259_v5 = vmul.f32 1.442695, %v9854_v37  ;;  %v3263_v16 = vmul.f32 1.442695, %v9855_v40  ;;  %v9856_v23 = vsub.f32 %v9815_v35, %v7957_v57 }
 0x6e2   : > { %v5469_v51 = vpop.eup %5468  ;;  %v3320_v10 = vadd.f32 %v8179_v38, %v3319_v46  ;;  %5488 = vpow2.f32 %v3247_v13  ;;  %v3341_v25 = vadd.f32 %v5461_v62, %v3340_v7  ;;  %v4907_v33 = vpack.c.bf16 %v5467_v63, %v5465_v55 }
 0x6e3   : > { %v5471_v31 = vpop.eup %5470  ;;  %5490 = vpow2.f32 %v3251_v52  ;;  %v3267_v21 = vmul.f32 1.442695, %v9856_v23  ;;  %v9857_v15 = vsub.f32 %v9816_v9, %v7957_v57  ;;  %v9858_v61 = vpack.c.bf16 %v8065_v6, %v8057_v39 }
 0x6e4   : > { %v5473_v45 = vpop.eup %5472  ;;  %v3321_v19 = vadd.f32 %v8188_v12, %v3320_v10  ;;  %5492 = vpow2.f32 %v3255_v29  ;;  %v3342_v62 = vadd.f32 %v5463_v17, %v3341_v25  ;;  %v4911_v13 = vpack.c.bf16 %v5471_v31, %v5469_v51 }
 0x6e5   : > { %v3271_v14 = vmul.f32 1.442695, %v9857_v15  ;;  %4902 = vmatpush1.bf16.msra.mxu0 %v9858_v61  ;;  %v5475_v52 = vpop.eup %5474  ;;  %5494 = vpow2.f32 %v3259_v5  ;;  %v9859_v35 = vsub.f32 %v9817_v3, %v7957_v57  ;;  %v9861_v9 = vsub.f32 %v9860_v49, %v7957_v57  ;;  %v9863_v5 = vld [vmem:[#allocation26_spill] sm:$0xff] }
 0x6e6   : > { %4904 = vmatprep.subr.bf16.mxu0 %v4903_v30  ;;  %v5477_v7 = vpop.eup %5476  ;;  %v3322_v39 = vadd.f32 %v8199_v58, %v3321_v19  ;;  %5496 = vpow2.f32 %v3263_v16  ;;  %v3343_v6 = vadd.f32 %v5465_v55, %v3342_v62  ;;  %v4915_v37 = vpack.c.bf16 %v5475_v52, %v5473_v45 }
 0x6e7   : > { %v3275_v34 = vmul.f32 1.442695, %v9859_v35  ;;  %v3279_v46 = vmul.f32 1.442695, %v9861_v9  ;;  %v5479_v29 = vpop.eup %5478  ;;  %5498 = vpow2.f32 %v3267_v21  ;;  %v9862_v17 = vsub.f32 %v9819_v32, %v7957_v57 }
 0x6e8   : > { %v9864_v3 = vsub.f32 %v9863_v5, %v7957_v57  ;;  %v9865_v10 = vpack.c.bf16 %v8080_v11, %v8073_v0  ;;  %v5481_v25 = vpop.eup %5480  ;;  %v3323_v23 = vadd.f32 %v8208_v28, %v3322_v39  ;;  %5500 = vpow2.f32 %v3271_v14 }
 0x6e9   : > { %v3283_v30 = vmul.f32 1.442695, %v9862_v17  ;;  %v3344_v55 = vadd.f32 %v5467_v63, %v3343_v6  ;;  %v4919_v16 = vpack.c.bf16 %v5479_v29, %v5477_v7  ;;  %v5483_v21 = vpop.eup %5482  ;;  %5502 = vpow2.f32 %v3275_v34  ;;  %v9868_v63 = vld [vmem:[#allocation29_spill] sm:$0xff] }
 0x6ea   : > { %v3287_v40 = vmul.f32 1.442695, %v9864_v3  ;;  %4906 = vmatpush1.bf16.msra.mxu0 %v9865_v10  ;;  %v9866_v32 = vsub.f32 %v9821_v41, %v7957_v57  ;;  %v9867_v61 = vsub.f32 %v9822_v20, %v7957_v57  ;;  %v5485_v62 = vpop.eup %5484  ;;  %v3324_v11 = vadd.f32 %v8216_v22, %v3323_v23 }
 0x6eb   : > { %4908 = vmatprep.subr.bf16.mxu0 %v4907_v33  ;;  %5504 = vpow2.f32 %v3279_v46  ;;  %v3345_v0 = vadd.f32 %v5469_v51, %v3344_v55  ;;  %v4923_v35 = vpack.c.bf16 %v5483_v21, %v5481_v25  ;;  %v5487_v14 = vpop.eup %5486  ;;  %v9869_v33 = vsub.f32 %v9868_v63, %v7957_v57 }
 0x6ec   : > { %v3291_v15 = vmul.f32 1.442695, %v9866_v32  ;;  %v3295_v19 = vmul.f32 1.442695, %v9867_v61  ;;  %5506 = vpow2.f32 %v3283_v30  ;;  %v9870_v41 = vpack.c.bf16 %v8095_v8, %v8088_v1  ;;  %v5489_v49 = vpop.eup %5488 }
 0x6ed   : > { %v3299_v34 = vmul.f32 1.442695, %v9869_v33  ;;  %v3325_v20 = vadd.f32 %v8223_v50, %v3324_v11  ;;  %5508 = vpow2.f32 %v3287_v40  ;;  %v3346_v9 = vadd.f32 %v5471_v31, %v3345_v0  ;;  %v5491_v46 = vpop.eup %5490 }
 0x6ee   : > { %4910 = vmatpush1.bf16.msra.mxu0 %v9870_v41  ;;  %v4927_v39 = vpack.c.bf16 %v5487_v14, %v5485_v62  ;;  %5510 = vpow2.f32 %v3291_v15  ;;  %v5493_v51 = vpop.eup %5492  ;;  %v4931_v57 = vpack.c.bf16 %v5491_v46, %v5489_v49  ;;  %v9871_v8 = vpack.c.bf16 %v8110_v48, %v8103_v60 }
 0x6ef   : > { %4912 = vmatprep.subr.bf16.mxu0 %v4911_v13  ;;  %v3326_v6 = vadd.f32 %v8231_v2, %v3325_v20  ;;  %5512 = vpow2.f32 %v3295_v19  ;;  %v3347_v17 = vadd.f32 %v5473_v45, %v3346_v9  ;;  %v5495_v30 = vpop.eup %5494  ;;  %v9872_v32 = vpack.c.bf16 %v8124_v47, %v8118_v18 }
 0x6f0   : > { %5514 = vpow2.f32 %v3299_v34  ;;  %v5497_v1 = vpop.eup %5496  ;;  %v4935_v13 = vpack.c.bf16 %v5495_v30, %v5493_v51  ;;  %v9874_v20 = vpack.c.bf16 %v8149_v59, %v8143_v53  ;;  %v9878_v53 = vpack.c.bf16 %v8188_v12, %v8179_v38 }
 0x6f1   : > { %v3327_v5 = vadd.f32 %v8238_v44, %v3326_v6  ;;  %v3348_v31 = vadd.f32 %v5475_v52, %v3347_v17  ;;  %v5499_v3 = vpop.eup %5498  ;;  %v9881_v38 = vpack.c.bf16 %v8238_v44, %v8231_v2  ;;  %v9887_v2 = vld [vmem:[#allocation52_spill] sm:$0xff] }
 0x6f2   : > { %4914 = vmatpush1.bf16.msra.mxu0 %v9871_v8  ;;  %v5501_v40 = vpop.eup %5500  ;;  %v4939_v55 = vpack.c.bf16 %v5499_v3, %v5497_v1  ;;  %v9884_v8 = vld [vmem:[#allocation35_spill] sm:$0xff] }
 0x6f3   : > { %4916 = vmatprep.subr.bf16.mxu0 %v4915_v37  ;;  %v3328_v10 = vadd.f32 %v8246_v24, %v3327_v5  ;;  %v3349_v23 = vadd.f32 %v5477_v7, %v3348_v31  ;;  %v5503_v45 = vpop.eup %5502  ;;  %v9873_v7 = vpack.c.bf16 %v8137_v4, %v8130_v26  ;;  %v9875_v26 = vld [vmem:[#allocation46_spill] sm:$0xff]  ;;  %v9888_v5 = vld [vmem:[#allocation55_spill] sm:$0xff] }
 0x6f4   : > { %v4943_v61 = vpack.c.bf16 %v5503_v45, %v5501_v40  ;;  %v9876_v4 = vpack.c.bf16 %v8160_v43, %v9875_v26  ;;  %v9879_v43 = vpack.c.bf16 %v8208_v28, %v8199_v58  ;;  %v9882_v28 = vpack.c.bf16 %v8254_v42, %v8246_v24  ;;  %v9889_v31 = vld [vmem:[#allocation34_spill] sm:$0xff] }
 0x6f5   : > { %v5505_v15 = vpop.eup %5504  ;;  %v3329_v48 = vadd.f32 %v8254_v42, %v3328_v10  ;;  %v3350_v60 = vadd.f32 %v5479_v29, %v3349_v23  ;;  %v9895_v23 = vld [vmem:[#allocation53_spill] sm:$0xff] }
 0x6f6   : > { %4918 = vmatpush1.bf16.msra.mxu0 %v9872_v32  ;;  %v5507_v52 = vpop.eup %5506 }
 0x6f7   : > { %4920 = vmatprep.subr.bf16.mxu0 %v4919_v16  ;;  %v5509_v37 = vpop.eup %5508  ;;  %v3330_v19 = vadd.f32 %v8259_v36, %v3329_v48  ;;  %v3351_v11 = vadd.f32 %v5481_v25, %v3350_v60  ;;  %v4947_v0 = vpack.c.bf16 %v5507_v52, %v5505_v15  ;;  %v9901_v48 = vld [vmem:[#allocation7_spill] sm:$0xff]  ;;  %v9902_v60 = vld [vmem:[#allocation6_spill] sm:$0xff] }
 0x6f8   : > { %v5511_v63 = vpop.eup %5510 }
 0x6f9   : > { %v5513_v33 = vpop.eup %5512  ;;  %v8365_v47 = vadd.f32 %v8267_v56, %v3330_v19  ;;  %v3352_v18 = vadd.f32 %v5483_v21, %v3351_v11  ;;  %v4951_v29 = vpack.c.bf16 %v5511_v63, %v5509_v37  ;;  %v9877_v21 = vpack.c.bf16 %v8171_v54, %v8165_v27 }
 0x6fa   : > { %4922 = vmatpush1.bf16.msra.mxu0 %v9873_v7  ;;  %v5515_v16 = vpop.eup %5514  ;;  %v9880_v27 = vpack.c.bf16 %v8223_v50, %v8216_v22  ;;  %v9883_v50 = vpack.c.bf16 %v8267_v56, %v8259_v36  ;;  %v9896_v36 = vld [vmem:[#allocation54_spill] sm:$0xff]  ;;  %v3530_v7 = vpop.trf.xlu1 }
 0x6fb   : > { %4924 = vmatprep.subr.bf16.mxu0 %v4923_v35  ;;  %v3353_v34 = vadd.f32 %v5485_v62, %v3352_v18  ;;  %v4955_v41 = vpack.c.bf16 %v5515_v16, %v5513_v33  ;;  %v9897_v56 = vld [vmem:[#allocation38_spill] sm:$0xff] }
 0x6fd   : > { %v3354_v25 = vadd.f32 %v5487_v14, %v3353_v34 }
 0x6fe   : > { %4926 = vmatpush1.bf16.msra.mxu0 %v9874_v20  ;;  %v3531_v18 = vpop.trf.xlu1 }
 0x6ff   : > { %4928 = vmatprep.subr.bf16.mxu0 %v4927_v39  ;;  %v3355_v9 = vadd.f32 %v5489_v49, %v3354_v25  ;;  %v3498_v39 = vpop.trf.xlu0 }
 0x701   : > { %v3356_v6 = vadd.f32 %v5491_v46, %v3355_v9 }
 0x702   : > { %4930 = vmatpush1.bf16.msra.mxu0 %v9876_v4 }
 0x703   : > { %4932 = vmatprep.subr.bf16.mxu0 %v4931_v57  ;;  %v3357_v17 = vadd.f32 %v5493_v51, %v3356_v6  ;;  %v3499_v12 = vpop.trf.xlu0 }
 0x705   : > { %v3358_v62 = vadd.f32 %v5495_v30, %v3357_v17 }
 0x706   : > { %4934 = vmatpush1.bf16.msra.mxu0 %v9877_v21 }
 0x707   : > { %4936 = vmatprep.subr.bf16.mxu0 %v4935_v13  ;;  %v3359_v35 = vadd.f32 %v5497_v1, %v3358_v62  ;;  %v3500_v22 = vpop.trf.xlu0  ;;  %v9885_v1 = vld [vmem:[#allocation33_spill] sm:$0xff]  ;;  %v9890_v13 = vld [vmem:[#allocation32_spill] sm:$0xff] }
 0x708   : > { %v9886_v44 = vpack.c.bf16 %v9884_v8, %v9885_v1  ;;  %v9891_v42 = vpack.c.bf16 %v9889_v31, %v9890_v13 }
 0x709   : > { %v3360_v59 = vadd.f32 %v5499_v3, %v3359_v35  ;;  %v9892_v3 = vld [vmem:[#allocation39_spill] sm:$0xff] }
 0x70a   : > { %4938 = vmatpush1.bf16.msra.mxu0 %v9878_v53 }
 0x70b   : > { %4940 = vmatprep.subr.bf16.mxu0 %v4939_v55  ;;  %v3361_v14 = vadd.f32 %v5501_v40, %v3360_v59  ;;  %v3501_v24 = vpop.trf.xlu0  ;;  %v9893_v40 = vld [vmem:[#allocation37_spill] sm:$0xff]  ;;  %v9898_v55 = vld [vmem:[#allocation36_spill] sm:$0xff] }
 0x70c   : > { %v9894_v10 = vpack.c.bf16 %v9892_v3, %v9893_v40 }
 0x70d   : > { %v3362_v49 = vadd.f32 %v5503_v45, %v3361_v14  ;;  %v9899_v45 = vpack.c.bf16 %v9897_v56, %v9898_v55 }
 0x70e   : > { %4942 = vmatpush1.bf16.msra.mxu0 %v9879_v43 }
 0x70f   : > { %4944 = vmatprep.subr.bf16.mxu0 %v4943_v61  ;;  %v3363_v46 = vadd.f32 %v5505_v15, %v3362_v49  ;;  %v3502_v32 = vpop.trf.xlu0  ;;  %v9900_v15 = vld [vmem:[#allocation56_spill] sm:$0xff]  ;;  %v9903_v61 = vmov 0.0   ;;  %v3332_v49 = vrot.slane %v8365_v47, 4 }
 0x711   : > { %v3364_v54 = vadd.f32 %v5507_v52, %v3363_v46  ;;  %v3333_v46 = vadd.f32 %v3332_v49, %v8365_v47 }
 0x712   : > { %4946 = vmatpush1.bf16.msra.mxu0 %v9880_v27 }
 0x713   : > { %4948 = vmatprep.subr.bf16.mxu0 %v4947_v0  ;;  %v3365_v51 = vadd.f32 %v5509_v37, %v3364_v54  ;;  %v3503_v52 = vpop.trf.xlu0  ;;  %v3334_v54 = vrot.slane %v3333_v46, 2 }
 0x715   : > { %v3366_v57 = vadd.f32 %v5511_v63, %v3365_v51 }
 0x716   : > { %4950 = vmatpush1.bf16.msra.mxu0 %v9881_v38  ;;  %v3335_v38 = vadd.f32 %v3334_v54, %v3333_v46 }
 0x717   : > { %4952 = vmatprep.subr.bf16.mxu0 %v4951_v29  ;;  %v3367_v58 = vadd.f32 %v5513_v33, %v3366_v57  ;;  %v3504_v37 = vpop.trf.xlu0 }
 0x718   : > { %v3336_v57 = vrot.slane %v3335_v38, 1 }
 0x719   : > { %v8391_v30 = vadd.f32 %v5515_v16, %v3367_v58  ;;  %v3532_v16 = vpop.trf.xlu1 }
 0x71a   : > { %4954 = vmatpush1.bf16.msra.mxu0 %v9882_v28  ;;  %v3337_v28 = vadd.f32 %v3336_v57, %v3335_v38 }
 0x71b   : > { %4956 = vmatprep.subr.bf16.mxu0 %v4955_v41  ;;  %v3505_v19 = vpop.trf.xlu0 }
 0x71c   : > { %5516 = vrcp.f32 %v3337_v28 }
 0x71d   : > { %v3533_v41 = vpop.trf.xlu1 }
 0x71e   : > { %4958 = vmatpush1.bf16.msra.mxu0 %v9883_v50 }
 0x71f   : > { %4960 = vmatprep.subr.bf16.mxu0 %v9886_v44  ;;  %v3506_v11 = vpop.trf.xlu0 }
 0x721   : > { %3440 = vmatmul.mubr.f32.vlgmr.msra.gmra.mrb[126].mxu0 %v9887_v2  ;;  %v3534_v25 = vpop.trf.xlu1 }
 0x722   : > { %3445 = vmatprep.mubr.f32.mxu0 %v9888_v5  ;;  %4962 = vmatpush1.bf16.msra.mxu0 %v9891_v42 }
 0x723   : > { %4964 = vmatprep.subr.bf16.mxu0 %v9894_v10  ;;  %v3507_v0 = vpop.trf.xlu0 }
 0x725   : > { %3446 = vmatmul.mubr.f32.gmra.mrb[128].mxu0 %v9895_v23  ;;  %v3535_v26 = vpop.trf.xlu1 }
 0x726   : > { %3451 = vmatprep.mubr.f32.mxu0 %v9896_v36  ;;  %4966 = vmatpush1.bf16.msra.mxu0 %v9899_v45  ;;  %v5517_v50 = vpop.eup %5516 }
 0x727   : > { %v3508_v63 = vpop.trf.xlu0 }
 0x729   : > { %3452 = vmatmul.mubr.f32.gmra.mrb[130].mxu0 %v9900_v15  ;;  %v3536_v4 = vpop.trf.xlu1 }
 0x72a   : > { %3457 = vmatprep.mubr.f32.mxu0 %v9901_v48 }
 0x72b   : > { %v3509_v33 = vpop.trf.xlu0 }
 0x72d   : > { %3458 = vmatmul.mubr.f32.gmra.mrb[132].mxu0 %v9902_v60  ;;  %v3537_v6 = vpop.trf.xlu1 }
 0x72e   : > { %3706 = vmatprep.mubr.f32.mxu0 %v9903_v61 }
 0x72f   : > { %v3510_v29 = vpop.trf.xlu0 }
 0x731   : > { %4704 = vmatmul.mubr.msk.f32.vlgmr.msra.gmra.mrb[134].mxu0 %vm953_vm2, %v3498_v39  ;;  %v3538_v17 = vpop.trf.xlu1  ;;  %v3369_v39 = vrot.slane %v8391_v30, 4 }
 0x732   : > { %3712 = vmatprep.mubr.f32.mxu0 %v9903_v61 }
 0x733   : > { %v3511_v34 = vpop.trf.xlu0  ;;  %v3370_v27 = vadd.f32 %v3369_v39, %v8391_v30 }
 0x735   : > { %4705 = vmatmul.mubr.msk.f32.gmra.mrb[136].mxu0 %vm953_vm2, %v3499_v12  ;;  %v3539_v21 = vpop.trf.xlu1  ;;  %v3371_v51 = vrot.slane %v3370_v27, 2 }
 0x736   : > { %3718 = vmatprep.mubr.f32.mxu0 %v9903_v61 }
 0x737   : > { %v3512_v20 = vpop.trf.xlu0  ;;  %v3372_v12 = vadd.f32 %v3371_v51, %v3370_v27 }
 0x739   : > { %4706 = vmatmul.mubr.msk.f32.gmra.mrb[138].mxu0 %vm953_vm2, %v3500_v22  ;;  %v3540_v62 = vpop.trf.xlu1  ;;  %v3373_v58 = vrot.slane %v3372_v12, 1 }
 0x73a   : > { %3724 = vmatprep.mubr.f32.mxu0 %v9903_v61 }
 0x73b   : > { %v3513_v9 = vpop.trf.xlu0  ;;  %v3374_v22 = vadd.f32 %v3373_v58, %v3372_v12 }
 0x73d   : > { %4707 = vmatmul.mubr.msk.f32.gmra.mrb[140].mxu0 %vm953_vm2, %v3501_v24  ;;  %v3541_v35 = vpop.trf.xlu1  ;;  %5518 = vrcp.f32 %v3374_v22 }
 0x73e   : > { %3730 = vmatprep.mubr.f32.mxu0 %v9903_v61 }
 0x741   : > { %4708 = vmatmul.mubr.msk.f32.gmra.mrb[142].mxu0 %vm953_vm2, %v3502_v32  ;;  %v3542_v53 = vpop.trf.xlu1 }
 0x742   : > { %3736 = vmatprep.mubr.f32.mxu0 %v9903_v61 }
 0x745   : > { %4709 = vmatmul.mubr.msk.f32.gmra.mrb[144].mxu0 %vm953_vm2, %v3503_v52  ;;  %v3543_v59 = vpop.trf.xlu1 }
 0x746   : > { %3742 = vmatprep.mubr.f32.mxu0 %v9903_v61 }
 0x747   : > { %v5519_v1 = vpop.eup %5518 }
 0x749   : > { %4710 = vmatmul.mubr.msk.f32.gmra.mrb[146].mxu0 %vm953_vm2, %v3504_v37  ;;  %v3544_v14 = vpop.trf.xlu1 }
 0x74a   : > { %3748 = vmatprep.mubr.f32.mxu0 %v9903_v61 }
 0x74d   : > { %4711 = vmatmul.mubr.msk.f32.gmra.mrb[148].mxu0 %vm953_vm2, %v3505_v19  ;;  %v3545_v43 = vpop.trf.xlu1 }
 0x74e   : > { %3754 = vmatprep.mubr.f32.mxu0 %v9903_v61 }
 0x751   : > { %4712 = vmatmul.mubr.msk.f32.gmra.mrb[150].mxu0 %vm953_vm2, %v3506_v11 }
 0x752   : > { %3760 = vmatprep.mubr.f32.mxu0 %v9903_v61 }
 0x755   : > { %4713 = vmatmul.mubr.msk.f32.gmra.mrb[152].mxu0 %vm953_vm2, %v3507_v0 }
 0x756   : > { %3766 = vmatprep.mubr.f32.mxu0 %v9903_v61 }
 0x759   : > { %4714 = vmatmul.mubr.msk.f32.gmra.mrb[154].mxu0 %vm953_vm2, %v3508_v63 }
 0x75a   : > { %3772 = vmatprep.mubr.f32.mxu0 %v9903_v61 }
 0x75d   : > { %4715 = vmatmul.mubr.msk.f32.gmra.mrb[156].mxu0 %vm953_vm2, %v3509_v33 }
 0x75e   : > { %3778 = vmatprep.mubr.f32.mxu0 %v9903_v61 }
 0x761   : > { %4716 = vmatmul.mubr.msk.f32.gmra.mrb[158].mxu0 %vm953_vm2, %v3510_v29 }
 0x762   : > { %3784 = vmatprep.mubr.f32.mxu0 %v9903_v61 }
 0x765   : > { %4717 = vmatmul.mubr.msk.f32.gmra.mrb[160].mxu0 %vm953_vm2, %v3511_v34 }
 0x766   : > { %3790 = vmatprep.mubr.f32.mxu0 %v9903_v61 }
 0x769   : > { %4718 = vmatmul.mubr.msk.f32.gmra.mrb[162].mxu0 %vm953_vm2, %v3512_v20 }
 0x76a   : > { %3796 = vmatprep.mubr.f32.mxu0 %v9903_v61 }
 0x76d   : > { %4719 = vmatmul.mubr.msk.f32.gmra.mrb[164].mxu0 %vm953_vm2, %v3513_v9 }
 0x76e   : > { %3802 = vmatprep.mubr.f32.mxu0 %v9903_v61 }
 0x771   : > { %4720 = vmatmul.mubr.msk.f32.gmra.mrb[166].mxu0 %vm953_vm2, %v3530_v7 }
 0x772   : > { %3808 = vmatprep.mubr.f32.mxu0 %v9903_v61 }
 0x775   : > { %4721 = vmatmul.mubr.msk.f32.gmra.mrb[168].mxu0 %vm953_vm2, %v3531_v18 }
 0x776   : > { %3814 = vmatprep.mubr.f32.mxu0 %v9903_v61 }
 0x779   : > { %4722 = vmatmul.mubr.msk.f32.gmra.mrb[170].mxu0 %vm953_vm2, %v3532_v16 }
 0x77a   : > { %3820 = vmatprep.mubr.f32.mxu0 %v9903_v61 }
 0x77d   : > { %4723 = vmatmul.mubr.msk.f32.gmra.mrb[172].mxu0 %vm953_vm2, %v3533_v41 }
 0x77e   : > { %3826 = vmatprep.mubr.f32.mxu0 %v9903_v61 }
 0x781   : > { %4724 = vmatmul.mubr.msk.f32.gmra.mrb[174].mxu0 %vm953_vm2, %v3534_v25 }
 0x782   : > { %3832 = vmatprep.mubr.f32.mxu0 %v9903_v61 }
 0x785   : > { %4725 = vmatmul.mubr.msk.f32.gmra.mrb[176].mxu0 %vm953_vm2, %v3535_v26 }
 0x786   : > { %3838 = vmatprep.mubr.f32.mxu0 %v9903_v61 }
 0x789   : > { %4726 = vmatmul.mubr.msk.f32.gmra.mrb[178].mxu0 %vm953_vm2, %v3536_v4 }
 0x78a   : > { %3844 = vmatprep.mubr.f32.mxu0 %v9903_v61 }
 0x78d   : > { %4727 = vmatmul.mubr.msk.f32.gmra.mrb[180].mxu0 %vm953_vm2, %v3537_v6 }
 0x78e   : > { %3850 = vmatprep.mubr.f32.mxu0 %v9903_v61 }
 0x791   : > { %4728 = vmatmul.mubr.msk.f32.gmra.mrb[182].mxu0 %vm953_vm2, %v3538_v17 }
 0x792   : > { %3856 = vmatprep.mubr.f32.mxu0 %v9903_v61 }
 0x795   : > { %4729 = vmatmul.mubr.msk.f32.gmra.mrb[184].mxu0 %vm953_vm2, %v3539_v21 }
 0x796   : > { %3862 = vmatprep.mubr.f32.mxu0 %v9903_v61 }
 0x799   : > { %4730 = vmatmul.mubr.msk.f32.gmra.mrb[186].mxu0 %vm953_vm2, %v3540_v62 }
 0x79a   : > { %3868 = vmatprep.mubr.f32.mxu0 %v9903_v61 }
 0x79d   : > { %4731 = vmatmul.mubr.msk.f32.gmra.mrb[188].mxu0 %vm953_vm2, %v3541_v35 }
 0x79e   : > { %3874 = vmatprep.mubr.f32.mxu0 %v9903_v61 }
 0x7a1   : > { %4732 = vmatmul.mubr.msk.f32.gmra.mrb[190].mxu0 %vm953_vm2, %v3542_v53 }
 0x7a2   : > { %3880 = vmatprep.mubr.f32.mxu0 %v9903_v61 }
 0x7a5   : > { %4733 = vmatmul.mubr.msk.f32.gmra.mrb[192].mxu0 %vm953_vm2, %v3543_v59 }
 0x7a6   : > { %3886 = vmatprep.mubr.f32.mxu0 %v9903_v61 }
 0x7a9   : > { %4734 = vmatmul.mubr.msk.f32.gmra.mrb[194].mxu0 %vm953_vm2, %v3544_v14 }
 0x7aa   : > { %3892 = vmatprep.mubr.f32.mxu0 %v9903_v61 }
 0x7ad   : > { %4735 = vmatmul.mubr.msk.f32.gmra.mrb[196].mxu0 %vm953_vm2, %v3545_v43 }
 0x7f4   : > { %v3441_v8 = vpop.f32.mrb[126].mxu0 }
 0x7f5   : > { %v8483_v44 = vmul.f32 %v5517_v50, %v3441_v8  ;;  %v3443_v2 = vpop.f32.mrb[127].mxu0 }
 0x7f6   : > { %v8485_v5 = vmul.f32 %v5519_v1, %v3443_v2 }
 0x7f7   : > { %9904 = vst [vmem:[#allocation49_spill] sm:$0xff] %v8483_v44 }
 0x7f8   : > { %9905 = vst [vmem:[#allocation30_spill] sm:$0xff] %v8485_v5  ;;  %v3447_v47 = vpop.f32.mrb[128].mxu0 }
 0x7f9   : > { %v8487_v30 = vmul.f32 %v5517_v50, %v3447_v47  ;;  %v3449_v31 = vpop.f32.mrb[129].mxu0 }
 0x7fa   : > { %v8489_v13 = vmul.f32 %v5519_v1, %v3449_v31 }
 0x7fb   : > { %9906 = vst [vmem:[#allocation28_spill] sm:$0xff] %v8487_v30 }
 0x7fc   : > { %9907 = vst [vmem:[#allocation48_spill] sm:$0xff] %v8489_v13  ;;  %v3453_v3 = vpop.f32.mrb[130].mxu0 }
 0x7fd   : > { %v8495_v40 = vmul.f32 %v5517_v50, %v3453_v3  ;;  %v3455_v10 = vpop.f32.mrb[131].mxu0 }
 0x7fe   : > { %v8497_v23 = vmul.f32 %v5519_v1, %v3455_v10 }
 0x7ff   : > { %9908 = vst [vmem:[#allocation51_spill] sm:$0xff] %v8495_v40 }
 0x800   : > { %9909 = vst [vmem:[#allocation50_spill] sm:$0xff] %v8497_v23  ;;  %v3459_v36 = vpop.f32.mrb[132].mxu0 }
 0x801   : > { %v8499_v56 = vmul.f32 %v5517_v50, %v3459_v36  ;;  %v3461_v55 = vpop.f32.mrb[133].mxu0 }
 0x802   : > { %v8501_v45 = vmul.f32 %v5519_v1, %v3461_v55 }
 0x803   : > { %9910 = vst [vmem:[#allocation9_spill] sm:$0xff] %v8499_v56 }
 0x804   : > { %9911 = vst [vmem:[#allocation43_spill] sm:$0xff] %v8501_v45  ;;  %v8507_v48 = vpop.f32.mrb[134].mxu0 }
 0x805   : > { %v8509_v60 = vpop.f32.mrb[135].mxu0 }
 0x808   : > { %v8511_v52 = vpop.f32.mrb[136].mxu0 }
 0x809   : > { %v8513_v37 = vpop.f32.mrb[137].mxu0 }
 0x80c   : > { %v8515_v19 = vpop.f32.mrb[138].mxu0 }
 0x80d   : > { %v3899_v11 = vmax.f32 %v8507_v48, %v8515_v19  ;;  %v8519_v0 = vpop.f32.mrb[139].mxu0 }
 0x80e   : > { %v3936_v63 = vmax.f32 %v8509_v60, %v8519_v0 }
 0x810   : > { %v8523_v7 = vpop.f32.mrb[140].mxu0 }
 0x811   : > { %v3900_v33 = vmax.f32 %v8511_v52, %v8523_v7  ;;  %v8527_v18 = vpop.f32.mrb[141].mxu0 }
 0x812   : > { %v3937_v29 = vmax.f32 %v8513_v37, %v8527_v18 }
 0x814   : > { %v8531_v16 = vpop.f32.mrb[142].mxu0 }
 0x815   : > { %v3901_v34 = vmax.f32 %v3899_v11, %v8531_v16  ;;  %v8534_v41 = vpop.f32.mrb[143].mxu0 }
 0x816   : > { %v3938_v20 = vmax.f32 %v3936_v63, %v8534_v41 }
 0x818   : > { %v8537_v25 = vpop.f32.mrb[144].mxu0 }
 0x819   : > { %v3902_v9 = vmax.f32 %v3900_v33, %v8537_v25  ;;  %v8540_v26 = vpop.f32.mrb[145].mxu0 }
 0x81a   : > { %v3939_v4 = vmax.f32 %v3937_v29, %v8540_v26 }
 0x81c   : > { %v8543_v6 = vpop.f32.mrb[146].mxu0 }
 0x81d   : > { %v3903_v17 = vmax.f32 %v3901_v34, %v8543_v6  ;;  %v8546_v21 = vpop.f32.mrb[147].mxu0 }
 0x81e   : > { %v3940_v62 = vmax.f32 %v3938_v20, %v8546_v21 }
 0x820   : > { %v8549_v35 = vpop.f32.mrb[148].mxu0 }
 0x821   : > { %v3904_v53 = vmax.f32 %v3902_v9, %v8549_v35  ;;  %v8552_v59 = vpop.f32.mrb[149].mxu0 }
 0x822   : > { %v3941_v14 = vmax.f32 %v3939_v4, %v8552_v59 }
 0x824   : > { %v8555_v43 = vpop.f32.mrb[150].mxu0 }
 0x825   : > { %v3905_v49 = vmax.f32 %v3903_v17, %v8555_v43  ;;  %v8558_v39 = vpop.f32.mrb[151].mxu0 }
 0x826   : > { %v3942_v46 = vmax.f32 %v3940_v62, %v8558_v39 }
 0x828   : > { %v8561_v27 = vpop.f32.mrb[152].mxu0 }
 0x829   : > { %v3906_v54 = vmax.f32 %v3904_v53, %v8561_v27  ;;  %v8564_v51 = vpop.f32.mrb[153].mxu0 }
 0x82a   : > { %v3943_v38 = vmax.f32 %v3941_v14, %v8564_v51 }
 0x82c   : > { %v8567_v12 = vpop.f32.mrb[154].mxu0 }
 0x82d   : > { %v3907_v57 = vmax.f32 %v3905_v49, %v8567_v12  ;;  %v8570_v58 = vpop.f32.mrb[155].mxu0 }
 0x82e   : > { %v3944_v28 = vmax.f32 %v3942_v46, %v8570_v58 }
 0x830   : > { %v8573_v22 = vpop.f32.mrb[156].mxu0 }
 0x831   : > { %v3908_v50 = vmax.f32 %v3906_v54, %v8573_v22  ;;  %v8576_v8 = vpop.f32.mrb[157].mxu0 }
 0x832   : > { %9912 = vst [vmem:[#allocation42_spill] sm:$0xff] %v8576_v8  ;;  %v3945_v1 = vmax.f32 %v3943_v38, %v8576_v8 }
 0x834   : > { %v8579_v2 = vpop.f32.mrb[158].mxu0 }
 0x835   : > { %v3909_v47 = vmax.f32 %v3907_v57, %v8579_v2  ;;  %v8582_v31 = vpop.f32.mrb[159].mxu0 }
 0x836   : > { %9913 = vst [vmem:[#allocation63_spill] sm:$0xff] %v8582_v31  ;;  %v3946_v3 = vmax.f32 %v3944_v28, %v8582_v31 }
 0x838   : > { %v8585_v10 = vpop.f32.mrb[160].mxu0 }
 0x839   : > { %v3910_v36 = vmax.f32 %v3908_v50, %v8585_v10  ;;  %v8588_v55 = vpop.f32.mrb[161].mxu0 }
 0x83a   : > { %9914 = vst [vmem:[#allocation64_spill] sm:$0xff] %v8588_v55  ;;  %v3947_v11 = vmax.f32 %v3945_v1, %v8588_v55 }
 0x83c   : > { %v8591_v63 = vpop.f32.mrb[162].mxu0 }
 0x83d   : > { %v3911_v33 = vmax.f32 %v3909_v47, %v8591_v63  ;;  %v8594_v29 = vpop.f32.mrb[163].mxu0 }
 0x83e   : > { %9915 = vst [vmem:[#allocation65_spill] sm:$0xff] %v8594_v29  ;;  %v3948_v34 = vmax.f32 %v3946_v3, %v8594_v29 }
 0x840   : > { %v8597_v20 = vpop.f32.mrb[164].mxu0 }
 0x841   : > { %v3912_v9 = vmax.f32 %v3910_v36, %v8597_v20  ;;  %v8600_v4 = vpop.f32.mrb[165].mxu0 }
 0x842   : > { %9916 = vst [vmem:[#allocation66_spill] sm:$0xff] %v8600_v4  ;;  %v3949_v17 = vmax.f32 %v3947_v11, %v8600_v4 }
 0x844   : > { %v8603_v62 = vpop.f32.mrb[166].mxu0 }
 0x845   : > { %v3913_v53 = vmax.f32 %v3911_v33, %v8603_v62  ;;  %v8606_v14 = vpop.f32.mrb[167].mxu0 }
 0x846   : > { %9917 = vst [vmem:[#allocation68_spill] sm:$0xff] %v8606_v14  ;;  %v3950_v49 = vmax.f32 %v3948_v34, %v8606_v14 }
 0x848   : > { %v8609_v46 = vpop.f32.mrb[168].mxu0 }
 0x849   : > { %v3914_v54 = vmax.f32 %v3912_v9, %v8609_v46  ;;  %v8612_v38 = vpop.f32.mrb[169].mxu0 }
 0x84a   : > { %9918 = vst [vmem:[#allocation70_spill] sm:$0xff] %v8612_v38  ;;  %v3951_v57 = vmax.f32 %v3949_v17, %v8612_v38 }
 0x84c   : > { %v8615_v28 = vpop.f32.mrb[170].mxu0 }
 0x84d   : > { %v3915_v50 = vmax.f32 %v3913_v53, %v8615_v28  ;;  %v8618_v1 = vpop.f32.mrb[171].mxu0 }
 0x84e   : > { %9919 = vst [vmem:[#allocation71_spill] sm:$0xff] %v8618_v1  ;;  %v3952_v47 = vmax.f32 %v3950_v49, %v8618_v1 }
 0x850   : > { %v8621_v3 = vpop.f32.mrb[172].mxu0 }
 0x851   : > { %v3916_v36 = vmax.f32 %v3914_v54, %v8621_v3  ;;  %v8624_v11 = vpop.f32.mrb[173].mxu0 }
 0x852   : > { %9920 = vst [vmem:[#allocation67_spill] sm:$0xff] %v8624_v11  ;;  %v3953_v33 = vmax.f32 %v3951_v57, %v8624_v11 }
 0x854   : > { %v8627_v34 = vpop.f32.mrb[174].mxu0 }
 0x855   : > { %v3917_v9 = vmax.f32 %v3915_v50, %v8627_v34  ;;  %v8630_v17 = vpop.f32.mrb[175].mxu0 }
 0x856   : > { %9921 = vst [vmem:[#allocation69_spill] sm:$0xff] %v8630_v17  ;;  %v3954_v53 = vmax.f32 %v3952_v47, %v8630_v17 }
 0x858   : > { %v8633_v32 = vpop.f32.mrb[176].mxu0 }
 0x859   : > { %v3918_v49 = vmax.f32 %v3916_v36, %v8633_v32  ;;  %v8636_v15 = vpop.f32.mrb[177].mxu0 }
 0x85a   : > { %9922 = vst [vmem:[#allocation72_spill] sm:$0xff] %v8636_v15  ;;  %v3955_v54 = vmax.f32 %v3953_v33, %v8636_v15 }
 0x85c   : > { %v8639_v42 = vpop.f32.mrb[178].mxu0 }
 0x85d   : > { %v3919_v57 = vmax.f32 %v3917_v9, %v8639_v42  ;;  %v8642_v24 = vpop.f32.mrb[179].mxu0 }
 0x85e   : > { %9923 = vst [vmem:[#allocation16_spill] sm:$0xff] %v8642_v24  ;;  %v3956_v50 = vmax.f32 %v3954_v53, %v8642_v24 }
 0x860   : > { %v8645_v40 = vpop.f32.mrb[180].mxu0 }
 0x861   : > { %v3920_v47 = vmax.f32 %v3918_v49, %v8645_v40  ;;  %v8648_v56 = vpop.f32.mrb[181].mxu0 }
 0x862   : > { %9924 = vst [vmem:[#allocation27_spill] sm:$0xff] %v8648_v56  ;;  %v3957_v36 = vmax.f32 %v3955_v54, %v8648_v56 }
 0x864   : > { %v8651_v23 = vpop.f32.mrb[182].mxu0 }
 0x865   : > { %v3921_v33 = vmax.f32 %v3919_v57, %v8651_v23  ;;  %v8654_v45 = vpop.f32.mrb[183].mxu0 }
 0x866   : > { %9925 = vst [vmem:[#allocation25_spill] sm:$0xff] %v8654_v45  ;;  %v3958_v9 = vmax.f32 %v3956_v50, %v8654_v45 }
 0x868   : > { %v8657_v44 = vpop.f32.mrb[184].mxu0 }
 0x869   : > { %v3922_v53 = vmax.f32 %v3920_v47, %v8657_v44  ;;  %v8660_v30 = vpop.f32.mrb[185].mxu0 }
 0x86a   : > { %9926 = vst [vmem:[#allocation47_spill] sm:$0xff] %v8660_v30  ;;  %v3959_v49 = vmax.f32 %v3957_v36, %v8660_v30 }
 0x86c   : > { %v8663_v5 = vpop.f32.mrb[186].mxu0 }
 0x86d   : > { %v3923_v54 = vmax.f32 %v3921_v33, %v8663_v5  ;;  %v8666_v13 = vpop.f32.mrb[187].mxu0 }
 0x86e   : > { %9927 = vst [vmem:[#allocation24_spill] sm:$0xff] %v8666_v13  ;;  %v3960_v57 = vmax.f32 %v3958_v9, %v8666_v13 }
 0x870   : > { %v8669_v61 = vpop.f32.mrb[188].mxu0 }
 0x871   : > { %v3924_v50 = vmax.f32 %v3922_v53, %v8669_v61  ;;  %v8672_v45 = vpop.f32.mrb[189].mxu0 }
 0x872   : > { %9928 = vst [vmem:[#allocation31_spill] sm:$0xff] %v8672_v45  ;;  %v3961_v47 = vmax.f32 %v3959_v49, %v8672_v45 }
 0x874   : > { %v8675_v56 = vpop.f32.mrb[190].mxu0 }
 0x875   : > { %v3925_v36 = vmax.f32 %v3923_v54, %v8675_v56  ;;  %v8678_v30 = vpop.f32.mrb[191].mxu0 }
 0x876   : > { %9929 = vst [vmem:[#allocation45_spill] sm:$0xff] %v8678_v30  ;;  %v3962_v33 = vmax.f32 %v3960_v57, %v8678_v30 }
 0x878   : > { %v8681_v24 = vpop.f32.mrb[192].mxu0 }
 0x879   : > { %v3926_v9 = vmax.f32 %v3924_v50, %v8681_v24  ;;  %v8684_v13 = vpop.f32.mrb[193].mxu0 }
 0x87a   : > { %9930 = vst [vmem:[#allocation26_spill] sm:$0xff] %v8684_v13  ;;  %v3963_v53 = vmax.f32 %v3961_v47, %v8684_v13 }
 0x87c   : > { %v8687_v15 = vpop.f32.mrb[194].mxu0 }
 0x87d   : > { %v3927_v49 = vmax.f32 %v3925_v36, %v8687_v15  ;;  %v8690_v45 = vpop.f32.mrb[195].mxu0 }
 0x87e   : > { %9931 = vst [vmem:[#allocation29_spill] sm:$0xff] %v8690_v45  ;;  %v3964_v54 = vmax.f32 %v3962_v33, %v8690_v45 }
 0x880   : > { %v8693_v17 = vpop.f32.mrb[196].mxu0 }
 0x881   : > { %v3928_v57 = vmax.f32 %v3926_v9, %v8693_v17  ;;  %v8696_v30 = vpop.f32.mrb[197].mxu0 }
 0x882   : > { %9932 = vst [vmem:[#allocation46_spill] sm:$0xff] %v8696_v30  ;;  %v3965_v50 = vmax.f32 %v3963_v53, %v8696_v30 }
 0x883   : > { %v3929_v11 = vmax.f32 %v3927_v49, %v3928_v57 }
 0x884   : > { %v3966_v1 = vmax.f32 %v3964_v54, %v3965_v50 }
 0x885   : > { %v3930_v38 = vrot.slane %v3929_v11, 4 }
 0x886   : > { %v3967_v47 = vrot.slane %v3966_v1, 4 }
 0x887   : > { %v3931_v13 = vmax.f32 %v3929_v11, %v3930_v38 }
 0x888   : > { %v3968_v14 = vmax.f32 %v3966_v1, %v3967_v47 }
 0x889   : > { %v3932_v4 = vrot.slane %v3931_v13, 2 }
 0x88a   : > { %v3969_v36 = vrot.slane %v3968_v14, 2 }
 0x88b   : > { %v3933_v29 = vmax.f32 %v3931_v13, %v3932_v4  ;;  %v9952_v4 = vld [vmem:[#allocation29_spill] sm:$0xff] }
 0x88c   : > { %v3970_v55 = vmax.f32 %v3968_v14, %v3969_v36 }
 0x88d   : > { %v3934_v31 = vrot.slane %v3933_v29, 1 }
 0x88e   : > { %v3971_v33 = vrot.slane %v3970_v55, 1 }
 0x88f   : > { %v8699_v45 = vmax.f32 %v3933_v29, %v3934_v31 }
 0x890   : > { %v8701_v8 = vmax.f32 %v3970_v55, %v3971_v33 }
 0x891   : > { %v3973_v9 = vsub.f32 %v8507_v48, %v8699_v45  ;;  %v3975_v53 = vsub.f32 %v8511_v52, %v8699_v45  ;;  %v3977_v38 = vsub.f32 %v8515_v19, %v8699_v45  ;;  %v3979_v1 = vsub.f32 %v8523_v7, %v8699_v45 }
 0x892   : > { %v3981_v13 = vsub.f32 %v8531_v16, %v8699_v45  ;;  %v3983_v31 = vsub.f32 %v8537_v25, %v8699_v45  ;;  %v3985_v55 = vsub.f32 %v8543_v6, %v8699_v45  ;;  %v3987_v48 = vsub.f32 %v8549_v35, %v8699_v45 }
 0x893   : > { %v3989_v52 = vsub.f32 %v8555_v43, %v8699_v45  ;;  %v3991_v19 = vsub.f32 %v8561_v27, %v8699_v45  ;;  %v3993_v7 = vsub.f32 %v8567_v12, %v8699_v45  ;;  %v3995_v16 = vsub.f32 %v8573_v22, %v8699_v45 }
 0x894   : > { %v3997_v25 = vsub.f32 %v8579_v2, %v8699_v45  ;;  %v3999_v6 = vsub.f32 %v8585_v10, %v8699_v45  ;;  %v4001_v35 = vsub.f32 %v8591_v63, %v8699_v45  ;;  %v4003_v43 = vsub.f32 %v8597_v20, %v8699_v45 }
 0x895   : > { %v4005_v27 = vsub.f32 %v8603_v62, %v8699_v45  ;;  %v4007_v12 = vsub.f32 %v8609_v46, %v8699_v45  ;;  %v4009_v22 = vsub.f32 %v8615_v28, %v8699_v45  ;;  %v4011_v2 = vsub.f32 %v8621_v3, %v8699_v45 }
 0x896   : > { %v4013_v10 = vsub.f32 %v8627_v34, %v8699_v45  ;;  %v4015_v63 = vsub.f32 %v8633_v32, %v8699_v45  ;;  %v4017_v29 = vsub.f32 %v8639_v42, %v8699_v45  ;;  %v4019_v20 = vsub.f32 %v8645_v40, %v8699_v45 }
 0x897   : > { %v4037_v3 = vmul.f32 1.442695, %v3973_v9  ;;  %v4041_v11 = vmul.f32 1.442695, %v3975_v53  ;;  %v4045_v34 = vmul.f32 1.442695, %v3977_v38 }
 0x898   : > { %v4049_v54 = vmul.f32 1.442695, %v3979_v1  ;;  %v4053_v50 = vmul.f32 1.442695, %v3981_v13  ;;  %v4057_v47 = vmul.f32 1.442695, %v3983_v31 }
 0x899   : > { %5520 = vpow2.f32 %v4037_v3  ;;  %v4061_v36 = vmul.f32 1.442695, %v3985_v55  ;;  %v4065_v33 = vmul.f32 1.442695, %v3987_v48  ;;  %v4069_v40 = vmul.f32 1.442695, %v3989_v52 }
 0x89a   : > { %5522 = vpow2.f32 %v4041_v11  ;;  %v4073_v28 = vmul.f32 1.442695, %v3991_v19  ;;  %v4077_v9 = vmul.f32 1.442695, %v3993_v7  ;;  %v4081_v53 = vmul.f32 1.442695, %v3995_v16 }
 0x89b   : > { %5524 = vpow2.f32 %v4045_v34  ;;  %v4085_v38 = vmul.f32 1.442695, %v3997_v25  ;;  %v4089_v49 = vmul.f32 1.442695, %v3999_v6  ;;  %v4093_v1 = vmul.f32 1.442695, %v4001_v35 }
 0x89c   : > { %5526 = vpow2.f32 %v4049_v54  ;;  %v4097_v42 = vmul.f32 1.442695, %v4003_v43  ;;  %v4101_v57 = vmul.f32 1.442695, %v4005_v27  ;;  %v4105_v3 = vmul.f32 1.442695, %v4007_v12 }
 0x89d   : > { %5528 = vpow2.f32 %v4053_v50  ;;  %v4109_v13 = vmul.f32 1.442695, %v4009_v22  ;;  %v4113_v31 = vmul.f32 1.442695, %v4011_v2  ;;  %v4117_v11 = vmul.f32 1.442695, %v4013_v10 }
 0x89e   : > { %5530 = vpow2.f32 %v4057_v47  ;;  %v8771_v55 = vmul.f32 1.442695, %v4015_v63  ;;  %v8773_v48 = vmul.f32 1.442695, %v4017_v29  ;;  %v8775_v52 = vmul.f32 1.442695, %v4019_v20 }
 0x89f   : > { %5532 = vpow2.f32 %v4061_v36  ;;  %v9933_v10 = vld [vmem:[#allocation42_spill] sm:$0xff]  ;;  %v9935_v34 = vld [vmem:[#allocation64_spill] sm:$0xff]  ;;  %v9936_v47 = vld [vmem:[#allocation65_spill] sm:$0xff] }
 0x8a0   : > { %5534 = vpow2.f32 %v4065_v33  ;;  %v9937_v33 = vld [vmem:[#allocation66_spill] sm:$0xff]  ;;  %v9940_v22 = vld [vmem:[#allocation71_spill] sm:$0xff]  ;;  %v9942_v43 = vld [vmem:[#allocation69_spill] sm:$0xff] }
 0x8a1   : > { %5536 = vpow2.f32 %v4069_v40  ;;  %v9934_v40 = vld [vmem:[#allocation63_spill] sm:$0xff]  ;;  %v9939_v2 = vld [vmem:[#allocation70_spill] sm:$0xff]  ;;  %v9943_v35 = vld [vmem:[#allocation72_spill] sm:$0xff] }
 0x8a2   : > { %5538 = vpow2.f32 %v4073_v28  ;;  %v9941_v36 = vld [vmem:[#allocation67_spill] sm:$0xff]  ;;  %v9944_v54 = vld [vmem:[#allocation16_spill] sm:$0xff] }
 0x8a3   : > { %v8785_v6 = vpop.eup %5520  ;;  %5540 = vpow2.f32 %v4077_v9  ;;  %v9945_v16 = vld [vmem:[#allocation27_spill] sm:$0xff]  ;;  %v9946_v9 = vld [vmem:[#allocation25_spill] sm:$0xff] }
 0x8a4   : > { %v8793_v12 = vpop.eup %5522  ;;  %5542 = vpow2.f32 %v4081_v53  ;;  %v9938_v53 = vld [vmem:[#allocation68_spill] sm:$0xff]  ;;  %v9947_v19 = vld [vmem:[#allocation47_spill] sm:$0xff] }
 0x8a5   : > { %v8801_v29 = vpop.eup %5524  ;;  %5544 = vpow2.f32 %v4085_v38  ;;  %v4165_v20 = vadd.f32 %v8793_v12, %v8785_v6  ;;  %v9951_v38 = vld [vmem:[#allocation26_spill] sm:$0xff] }
 0x8a6   : > { %v8809_v50 = vpop.eup %5526  ;;  %5546 = vpow2.f32 %v4089_v49  ;;  %v9949_v49 = vld [vmem:[#allocation31_spill] sm:$0xff] }
 0x8a7   : > { %v8817_v63 = vpop.eup %5528  ;;  %5548 = vpow2.f32 %v4093_v1  ;;  %v4166_v28 = vadd.f32 %v8801_v29, %v4165_v20 }
 0x8a8   : > { %v8824_v27 = vpop.eup %5530  ;;  %5550 = vpow2.f32 %v4097_v42 }
 0x8a9   : > { %v8832_v25 = vpop.eup %5532  ;;  %5552 = vpow2.f32 %v4101_v57  ;;  %v4167_v20 = vadd.f32 %v8809_v50, %v4166_v28 }
 0x8aa   : > { %v8839_v7 = vpop.eup %5534  ;;  %5554 = vpow2.f32 %v4105_v3 }
 0x8ab   : > { %v8847_v46 = vpop.eup %5536  ;;  %5556 = vpow2.f32 %v4109_v13  ;;  %v4168_v28 = vadd.f32 %v8817_v63, %v4167_v20  ;;  %v9953_v20 = vsub.f32 %v8651_v23, %v8699_v45 }
 0x8ac   : > { %v8854_v62 = vpop.eup %5538  ;;  %5558 = vpow2.f32 %v4113_v31  ;;  %v9954_v31 = vsub.f32 %v8657_v44, %v8699_v45 }
 0x8ad   : > { %v8862_v32 = vpop.eup %5540  ;;  %5560 = vpow2.f32 %v4117_v11  ;;  %v4133_v42 = vmul.f32 1.442695, %v9953_v20  ;;  %v4169_v3 = vadd.f32 %v8824_v27, %v4168_v28  ;;  %v9955_v11 = vsub.f32 %v8663_v5, %v8699_v45 }
 0x8ae   : > { %v8868_v14 = vpop.eup %5542  ;;  %5562 = vpow2.f32 %v8771_v55  ;;  %v4137_v57 = vmul.f32 1.442695, %v9954_v31  ;;  %v9956_v55 = vsub.f32 %v8669_v61, %v8699_v45  ;;  %v9960_v61 = vsub.f32 %v8687_v15, %v8699_v45 }
 0x8af   : > { %v8874_v1 = vpop.eup %5544  ;;  %5564 = vpow2.f32 %v8773_v48  ;;  %v4141_v13 = vmul.f32 1.442695, %v9955_v11  ;;  %v4170_v23 = vadd.f32 %v8832_v25, %v4169_v3  ;;  %v9957_v48 = vsub.f32 %v8675_v56, %v8699_v45 }
 0x8b0   : > { %v8881_v20 = vpop.eup %5546  ;;  %5566 = vpow2.f32 %v8775_v52  ;;  %v4145_v28 = vmul.f32 1.442695, %v9956_v55  ;;  %v9958_v3 = vsub.f32 %v8681_v24, %v8699_v45 }
 0x8b1   : > { %v8887_v44 = vpop.eup %5548  ;;  %5568 = vpow2.f32 %v4133_v42  ;;  %v4149_v31 = vmul.f32 1.442695, %v9957_v48  ;;  %v4171_v5 = vadd.f32 %v8839_v7, %v4170_v23  ;;  %v4157_v42 = vmul.f32 1.442695, %v9960_v61 }
 0x8b2   : > { %v8893_v11 = vpop.eup %5550  ;;  %5570 = vpow2.f32 %v4137_v57  ;;  %v4153_v52 = vmul.f32 1.442695, %v9958_v3  ;;  %v9961_v23 = vsub.f32 %v8693_v17, %v8699_v45  ;;  %v9964_v45 = vsub.f32 %v8519_v0, %v8701_v8 }
 0x8b3   : > { %v8898_v30 = vpop.eup %5552  ;;  %5572 = vpow2.f32 %v4141_v13  ;;  %v4172_v55 = vadd.f32 %v8847_v46, %v4171_v5  ;;  %v9962_v13 = vsub.f32 %v8509_v60, %v8701_v8  ;;  %v9963_v5 = vsub.f32 %v8513_v37, %v8701_v8 }
 0x8b4   : > { %9959 = vst [vmem:[#allocation35_spill] sm:$0xff] %v8898_v30  ;;  %v8904_v56 = vpop.eup %5554  ;;  %5574 = vpow2.f32 %v4145_v28  ;;  %v4161_v57 = vmul.f32 1.442695, %v9961_v23  ;;  %v4047_v17 = vmul.f32 1.442695, %v9964_v45  ;;  %v9965_v60 = vsub.f32 %v8527_v18, %v8701_v8 }
 0x8b5   : > { %v8909_v48 = vpop.eup %5556  ;;  %5576 = vpow2.f32 %v4149_v31  ;;  %v4173_v24 = vadd.f32 %v8854_v62, %v4172_v55  ;;  %v4039_v3 = vmul.f32 1.442695, %v9962_v13  ;;  %v4043_v28 = vmul.f32 1.442695, %v9963_v5 }
 0x8b6   : > { %v8915_v15 = vpop.eup %5558  ;;  %5578 = vpow2.f32 %v4153_v52  ;;  %v4051_v55 = vmul.f32 1.442695, %v9965_v60  ;;  %v9966_v52 = vsub.f32 %v8534_v41, %v8701_v8  ;;  %v9967_v37 = vsub.f32 %v8540_v26, %v8701_v8 }
 0x8b7   : > { %v8923_v61 = vpop.eup %5560  ;;  %5580 = vpow2.f32 %v4157_v42  ;;  %v4174_v31 = vadd.f32 %v8862_v32, %v4173_v24  ;;  %v9968_v42 = vsub.f32 %v8546_v21, %v8701_v8  ;;  %v9969_v24 = vsub.f32 %v8552_v59, %v8701_v8 }
 0x8b8   : > { %v4055_v23 = vmul.f32 1.442695, %v9966_v52  ;;  %v8932_v13 = vpop.eup %5562  ;;  %5582 = vpow2.f32 %v4161_v57  ;;  %v4059_v0 = vmul.f32 1.442695, %v9967_v37  ;;  %v9970_v57 = vsub.f32 %v8558_v39, %v8701_v8 }
 0x8b9   : > { %v4063_v5 = vmul.f32 1.442695, %v9968_v42  ;;  %v4067_v18 = vmul.f32 1.442695, %v9969_v24  ;;  %v8943_v45 = vpop.eup %5564  ;;  %v4175_v41 = vadd.f32 %v8868_v14, %v4174_v31  ;;  %5584 = vpow2.f32 %v4039_v3 }
 0x8ba   : > { %v4071_v60 = vmul.f32 1.442695, %v9970_v57  ;;  %v9971_v26 = vsub.f32 %v8564_v51, %v8701_v8  ;;  %v8952_v37 = vpop.eup %5566  ;;  %5586 = vpow2.f32 %v4043_v28 }
 0x8bb   : > { %v8960_v31 = vpop.eup %5568  ;;  %v4176_v39 = vadd.f32 %v8874_v1, %v4175_v41  ;;  %5588 = vpow2.f32 %v4047_v17 }
 0x8bc   : > { %v4075_v52 = vmul.f32 1.442695, %v9971_v26  ;;  %v8967_v42 = vpop.eup %5570  ;;  %5590 = vpow2.f32 %v4051_v55  ;;  %v9972_v55 = vsub.f32 %v8570_v58, %v8701_v8  ;;  %v9973_v26 = vsub.f32 %v9933_v10, %v8701_v8 }
 0x8bd   : > { %v8975_v41 = vpop.eup %5572  ;;  %v4177_v17 = vadd.f32 %v8881_v20, %v4176_v39  ;;  %5592 = vpow2.f32 %v4055_v23 }
 0x8be   : > { %v8982_v51 = vpop.eup %5574  ;;  %5594 = vpow2.f32 %v4059_v0  ;;  %v4079_v28 = vmul.f32 1.442695, %v9972_v55  ;;  %v4083_v57 = vmul.f32 1.442695, %v9973_v26 }
 0x8bf   : > { %v8990_v39 = vpop.eup %5576  ;;  %v4178_v23 = vadd.f32 %v8887_v44, %v4177_v17  ;;  %5596 = vpow2.f32 %v4063_v5  ;;  %v9974_v5 = vsub.f32 %v9934_v40, %v8701_v8  ;;  %v9979_v40 = vsub.f32 %v9939_v2, %v8701_v8 }
 0x8c0   : > { %v8998_v3 = vpop.eup %5578  ;;  %5598 = vpow2.f32 %v4067_v18  ;;  %v9975_v18 = vsub.f32 %v9935_v34, %v8701_v8  ;;  %v9978_v34 = vsub.f32 %v9938_v53, %v8701_v8  ;;  %v9982_v2 = vsub.f32 %v9942_v43, %v8701_v8 }
 0x8c1   : > { %v9003_v24 = vpop.eup %5580  ;;  %v4179_v59 = vadd.f32 %v8893_v11, %v4178_v23  ;;  %5600 = vpow2.f32 %v4071_v60  ;;  %v4087_v58 = vmul.f32 1.442695, %v9974_v5  ;;  %v9976_v60 = vsub.f32 %v9936_v47, %v8701_v8 }
 0x8c2   : > { %v9011_v55 = vpop.eup %5582  ;;  %5602 = vpow2.f32 %v4075_v52  ;;  %v4091_v10 = vmul.f32 1.442695, %v9975_v18  ;;  %v9977_v52 = vsub.f32 %v9937_v33, %v8701_v8  ;;  %v4103_v18 = vmul.f32 1.442695, %v9978_v34 }
 0x8c3   : > { %v5585_v26 = vpop.eup %5584  ;;  %v4180_v0 = vadd.f32 %v8898_v30, %v4179_v59  ;;  %5604 = vpow2.f32 %v4079_v28  ;;  %v4095_v23 = vmul.f32 1.442695, %v9976_v60  ;;  %v9980_v33 = vsub.f32 %v9940_v22, %v8701_v8 }
 0x8c4   : > { %v5587_v5 = vpop.eup %5586  ;;  %5606 = vpow2.f32 %v4083_v57  ;;  %v4099_v17 = vmul.f32 1.442695, %v9977_v52  ;;  %v4107_v57 = vmul.f32 1.442695, %v9979_v40  ;;  %v4119_v40 = vmul.f32 1.442695, %v9982_v2 }
 0x8c5   : > { %v5589_v21 = vpop.eup %5588  ;;  %v4181_v59 = vadd.f32 %v8904_v56, %v4180_v0  ;;  %5608 = vpow2.f32 %v4087_v58  ;;  %v4202_v28 = vadd.f32 %v5587_v5, %v5585_v26  ;;  %v4967_v47 = vpack.c.bf16 %v5587_v5, %v5585_v26 }
 0x8c6   : > { %v5591_v60 = vpop.eup %5590  ;;  %5610 = vpow2.f32 %v4091_v10  ;;  %v4111_v52 = vmul.f32 1.442695, %v9980_v33  ;;  %v9981_v10 = vsub.f32 %v9941_v36, %v8701_v8  ;;  %v9983_v22 = vpack.c.bf16 %v8793_v12, %v8785_v6 }
 0x8c7   : > { %v5593_v30 = vpop.eup %5592  ;;  %v4182_v53 = vadd.f32 %v8909_v48, %v4181_v59  ;;  %5612 = vpow2.f32 %v4095_v23  ;;  %v4203_v34 = vadd.f32 %v5589_v21, %v4202_v28  ;;  %4968 = vmatprep.subr.bf16.mxu1 %v4967_v47  ;;  %v4971_v0 = vpack.c.bf16 %v5591_v60, %v5589_v21 }
 0x8c8   : > { %v5595_v58 = vpop.eup %5594  ;;  %5614 = vpow2.f32 %v4099_v17  ;;  %v4115_v26 = vmul.f32 1.442695, %v9981_v10  ;;  %4970 = vmatpush1.bf16.msra.mxu1 %v9983_v22  ;;  %v9984_v36 = vsub.f32 %v9943_v35, %v8701_v8  ;;  %v9985_v43 = vsub.f32 %v9944_v54, %v8701_v8  ;;  %v9990_v22 = vld [vmem:[#allocation24_spill] sm:$0xff] }
 0x8c9   : > { %v5597_v5 = vpop.eup %5596  ;;  %v4183_v23 = vadd.f32 %v8915_v15, %v4182_v53  ;;  %5616 = vpow2.f32 %v4103_v18  ;;  %v4204_v59 = vadd.f32 %v5591_v60, %v4203_v34  ;;  %4972 = vmatprep.subr.bf16.mxu1 %v4971_v0  ;;  %v4975_v21 = vpack.c.bf16 %v5595_v58, %v5593_v30 }
 0x8ca   : > { %v5599_v17 = vpop.eup %5598  ;;  %5618 = vpow2.f32 %v4107_v57  ;;  %v4123_v28 = vmul.f32 1.442695, %v9984_v36  ;;  %v4127_v47 = vmul.f32 1.442695, %v9985_v43  ;;  %v9986_v60 = vsub.f32 %v9945_v16, %v8701_v8 }
 0x8cb   : > { %v5601_v33 = vpop.eup %5600  ;;  %v4184_v6 = vadd.f32 %v8923_v61, %v4183_v23  ;;  %5620 = vpow2.f32 %v4111_v52  ;;  %v4205_v12 = vadd.f32 %v5593_v30, %v4204_v59  ;;  %v4979_v53 = vpack.c.bf16 %v5599_v17, %v5597_v5 }
 0x8cc   : > { %v5603_v18 = vpop.eup %5602  ;;  %5622 = vpow2.f32 %v4115_v26  ;;  %v4131_v57 = vmul.f32 1.442695, %v9986_v60  ;;  %v9987_v35 = vsub.f32 %v9946_v9, %v8701_v8  ;;  %v9988_v54 = vpack.c.bf16 %v8809_v50, %v8801_v29 }
 0x8cd   : > { %v5605_v0 = vpop.eup %5604  ;;  %v4185_v10 = vadd.f32 %v8932_v13, %v4184_v6  ;;  %5624 = vpow2.f32 %v4119_v40  ;;  %v4206_v30 = vadd.f32 %v5595_v58, %v4205_v12  ;;  %v4983_v52 = vpack.c.bf16 %v5603_v18, %v5601_v33 }
 0x8ce   : > { %v4135_v34 = vmul.f32 1.442695, %v9987_v35  ;;  %4974 = vmatpush1.bf16.msra.mxu1 %v9988_v54  ;;  %v5607_v26 = vpop.eup %5606  ;;  %5626 = vpow2.f32 %v4123_v28  ;;  %v9989_v16 = vsub.f32 %v9947_v19, %v8701_v8  ;;  %v9991_v9 = vsub.f32 %v9990_v22, %v8701_v8  ;;  %v9993_v28 = vld [vmem:[#allocation45_spill] sm:$0xff] }
 0x8cf   : > { %4976 = vmatprep.subr.bf16.mxu1 %v4975_v21  ;;  %v5609_v59 = vpop.eup %5608  ;;  %v4186_v29 = vadd.f32 %v8943_v45, %v4185_v10  ;;  %5628 = vpow2.f32 %v4127_v47  ;;  %v4207_v50 = vadd.f32 %v5597_v5, %v4206_v30  ;;  %v4987_v36 = vpack.c.bf16 %v5607_v26, %v5605_v0 }
 0x8d0   : > { %v4139_v2 = vmul.f32 1.442695, %v9989_v16  ;;  %v4143_v23 = vmul.f32 1.442695, %v9991_v9  ;;  %v5611_v40 = vpop.eup %5610  ;;  %5630 = vpow2.f32 %v4131_v57  ;;  %v9992_v58 = vsub.f32 %v9949_v49, %v8701_v8 }
 0x8d1   : > { %v9994_v19 = vsub.f32 %v9993_v28, %v8701_v8  ;;  %v9995_v6 = vpack.c.bf16 %v8824_v27, %v8817_v63  ;;  %v5613_v12 = vpop.eup %5612  ;;  %v4187_v60 = vadd.f32 %v8952_v37, %v4186_v29  ;;  %5632 = vpow2.f32 %v4135_v34 }
 0x8d2   : > { %v4147_v21 = vmul.f32 1.442695, %v9992_v58  ;;  %v4208_v5 = vadd.f32 %v5599_v17, %v4207_v50  ;;  %v4991_v47 = vpack.c.bf16 %v5611_v40, %v5609_v59  ;;  %v5615_v57 = vpop.eup %5614  ;;  %5634 = vpow2.f32 %v4139_v2  ;;  %v9998_v17 = vld [vmem:[#allocation46_spill] sm:$0xff] }
 0x8d3   : > { %v4151_v43 = vmul.f32 1.442695, %v9994_v19  ;;  %4978 = vmatpush1.bf16.msra.mxu1 %v9995_v6  ;;  %v9996_v49 = vsub.f32 %v9951_v38, %v8701_v8  ;;  %v9997_v54 = vsub.f32 %v9952_v4, %v8701_v8  ;;  %v5617_v30 = vpop.eup %5616  ;;  %v4188_v27 = vadd.f32 %v8960_v31, %v4187_v60 }
 0x8d4   : > { %4980 = vmatprep.subr.bf16.mxu1 %v4979_v53  ;;  %5636 = vpow2.f32 %v4143_v23  ;;  %v4209_v63 = vadd.f32 %v5601_v33, %v4208_v5  ;;  %v4995_v16 = vpack.c.bf16 %v5615_v57, %v5613_v12  ;;  %v5619_v34 = vpop.eup %5618  ;;  %v9999_v53 = vsub.f32 %v9998_v17, %v8701_v8 }
 0x8d5   : > { %v4155_v35 = vmul.f32 1.442695, %v9996_v49  ;;  %v4159_v10 = vmul.f32 1.442695, %v9997_v54  ;;  %5638 = vpow2.f32 %v4147_v21  ;;  %v10000_v38 = vpack.c.bf16 %v8839_v7, %v8832_v25  ;;  %v5621_v22 = vpop.eup %5620 }
 0x8d6   : > { %v4163_v2 = vmul.f32 1.442695, %v9999_v53  ;;  %v4189_v4 = vadd.f32 %v8967_v42, %v4188_v27  ;;  %5640 = vpow2.f32 %v4151_v43  ;;  %v4210_v9 = vadd.f32 %v5603_v18, %v4209_v63  ;;  %v5623_v23 = vpop.eup %5622 }
 0x8d7   : > { %4982 = vmatpush1.bf16.msra.mxu1 %v10000_v38  ;;  %v4999_v29 = vpack.c.bf16 %v5619_v34, %v5617_v30  ;;  %5642 = vpow2.f32 %v4155_v35  ;;  %v5625_v33 = vpop.eup %5624  ;;  %v5003_v8 = vpack.c.bf16 %v5623_v23, %v5621_v22  ;;  %v10001_v7 = vpack.c.bf16 %v8854_v62, %v8847_v46 }
 0x8d8   : > { %4984 = vmatprep.subr.bf16.mxu1 %v4983_v52  ;;  %v4190_v50 = vadd.f32 %v8975_v41, %v4189_v4  ;;  %5644 = vpow2.f32 %v4159_v10  ;;  %v4211_v58 = vadd.f32 %v5605_v0, %v4210_v9  ;;  %v5627_v21 = vpop.eup %5626  ;;  %v10002_v49 = vpack.c.bf16 %v8868_v14, %v8862_v32 }
 0x8d9   : > { %5646 = vpow2.f32 %v4163_v2  ;;  %v5629_v25 = vpop.eup %5628  ;;  %v5007_v52 = vpack.c.bf16 %v5627_v21, %v5625_v33  ;;  %v10004_v4 = vpack.c.bf16 %v8893_v11, %v8887_v44  ;;  %v10008_v44 = vpack.c.bf16 %v8932_v13, %v8923_v61 }
 0x8da   : > { %v4191_v28 = vadd.f32 %v8982_v51, %v4190_v50  ;;  %v4212_v18 = vadd.f32 %v5607_v26, %v4211_v58  ;;  %v5631_v19 = vpop.eup %5630  ;;  %v10011_v61 = vpack.c.bf16 %v8982_v51, %v8975_v41  ;;  %v10018_v51 = vld [vmem:[#allocation11_spill] sm:$0xff] }
 0x8db   : > { %4986 = vmatpush1.bf16.msra.mxu1 %v10001_v7  ;;  %v5633_v43 = vpop.eup %5632  ;;  %v5011_v5 = vpack.c.bf16 %v5631_v19, %v5629_v25  ;;  %v10017_v7 = vld [vmem:[#allocation8_spill] sm:$0xff]  ;;  %v10019_v41 = vld [vmem:[#allocation59_spill] sm:$0xff] }
 0x8dc   : > { %4988 = vmatprep.subr.bf16.mxu1 %v4987_v36  ;;  %v4192_v6 = vadd.f32 %v8990_v39, %v4191_v28  ;;  %v4213_v60 = vadd.f32 %v5609_v59, %v4212_v18  ;;  %v5635_v0 = vpop.eup %5634  ;;  %v10003_v59 = vpack.c.bf16 %v8881_v20, %v8874_v1  ;;  %v10005_v1 = vld [vmem:[#allocation35_spill] sm:$0xff] }
 0x8dd   : > { %v5015_v54 = vpack.c.bf16 %v5635_v0, %v5633_v43  ;;  %v10006_v20 = vpack.c.bf16 %v8904_v56, %v10005_v1  ;;  %v10009_v56 = vpack.c.bf16 %v8952_v37, %v8943_v45  ;;  %v10012_v45 = vpack.c.bf16 %v8998_v3, %v8990_v39  ;;  %v10023_v39 = vld [vmem:[#allocation17_spill] sm:$0xff] }
 0x8de   : > { %v5637_v35 = vpop.eup %5636  ;;  %v4193_v62 = vadd.f32 %v8998_v3, %v4192_v6  ;;  %v4214_v46 = vadd.f32 %v5611_v40, %v4213_v60  ;;  %v10022_v3 = vld [vmem:[#allocation18_spill] sm:$0xff]  ;;  %v10030_v6 = vld [vmem:[#allocation61_spill] sm:$0xff]  ;;  %v10031_v60 = vld [vmem:[#allocation23_spill] sm:$0xff] }
 0x8df   : > { %4990 = vmatpush1.bf16.msra.mxu1 %v10002_v49  ;;  %v5639_v26 = vpop.eup %5638  ;;  %v10024_v18 = vpack.c.bf16 %v10022_v3, %v10023_v39  ;;  %v10034_v49 = vld [vmem:[#allocation15_spill] sm:$0xff]  ;;  %v10055_v1 = vld [vmem:[#allocation9_spill] sm:$0xff] }
 0x8e0   : > { %4992 = vmatprep.subr.bf16.mxu1 %v4991_v47  ;;  %v5641_v36 = vpop.eup %5640  ;;  %v4194_v10 = vadd.f32 %v9003_v24, %v4193_v62  ;;  %v4215_v27 = vadd.f32 %v5613_v12, %v4214_v46  ;;  %v5019_v63 = vpack.c.bf16 %v5639_v26, %v5637_v35  ;;  %v10036_v62 = vld [vmem:[#allocation62_spill] sm:$0xff] }
 0x8e1   : > { %v5643_v17 = vpop.eup %5642 }
 0x8e2   : > { %v5645_v53 = vpop.eup %5644  ;;  %v9109_v14 = vadd.f32 %v9011_v55, %v4194_v10  ;;  %v4216_v32 = vadd.f32 %v5615_v57, %v4215_v27  ;;  %v5023_v40 = vpack.c.bf16 %v5643_v17, %v5641_v36  ;;  %v10007_v57 = vpack.c.bf16 %v8915_v15, %v8909_v48  ;;  %v10041_v10 = vld [vmem:[#allocation14_spill] sm:$0xff]  ;;  %v10042_v27 = vld [vmem:[#allocation41_spill] sm:$0xff] }
 0x8e3   : > { %4994 = vmatpush1.bf16.msra.mxu1 %v10003_v59  ;;  %v5647_v47 = vpop.eup %5646  ;;  %v10010_v48 = vpack.c.bf16 %v8967_v42, %v8960_v31  ;;  %v10013_v31 = vpack.c.bf16 %v9011_v55, %v9003_v24  ;;  %v10014_v42 = vld [vmem:[#allocation44_spill] sm:$0xff]  ;;  %v10026_v24 = vld [vmem:[#allocation13_spill] sm:$0xff]  ;;  %v10045_v59 = vmov 0.0  }
 0x8e4   : > { %4996 = vmatprep.subr.bf16.mxu1 %v4995_v16  ;;  %v4217_v2 = vadd.f32 %v5617_v30, %v4216_v32  ;;  %v5027_v38 = vpack.c.bf16 %v5647_v47, %v5645_v53  ;;  %v10027_v55 = vld [vmem:[#allocation60_spill] sm:$0xff]  ;;  %v10047_v32 = vld [vmem:[#allocation30_spill] sm:$0xff] }
 0x8e6   : > { %v4218_v12 = vadd.f32 %v5619_v34, %v4217_v2  ;;  %v10050_v2 = vld [vmem:[#allocation49_spill] sm:$0xff] }
 0x8e7   : > { %4998 = vmatpush1.bf16.msra.mxu1 %v10004_v4  ;;  %v10052_v4 = vld [vmem:[#allocation43_spill] sm:$0xff] }
 0x8e8   : > { %5000 = vmatprep.subr.bf16.mxu1 %v4999_v29  ;;  %v4219_v9 = vadd.f32 %v5621_v22, %v4218_v12  ;;  %v10053_v12 = vld [vmem:[#allocation50_spill] sm:$0xff] }
 0x8ea   : > { %v4220_v50 = vadd.f32 %v5623_v23, %v4219_v9  ;;  %v10054_v9 = vpack.c.bf16 %v10052_v4, %v10053_v12 }
 0x8eb   : > { %5002 = vmatpush1.bf16.msra.mxu1 %v10006_v20  ;;  %v10056_v20 = vld [vmem:[#allocation51_spill] sm:$0xff] }
 0x8ec   : > { %5004 = vmatprep.subr.bf16.mxu1 %v5003_v8  ;;  %v4221_v58 = vadd.f32 %v5625_v33, %v4220_v50  ;;  %v10015_v8 = vld [vmem:[#allocation58_spill] sm:$0xff]  ;;  %v10057_v50 = vpack.c.bf16 %v10055_v1, %v10056_v20 }
 0x8ee   : > { %v4222_v30 = vadd.f32 %v5627_v21, %v4221_v58  ;;  %v10016_v21 = vpack.c.bf16 %v10014_v42, %v10015_v8  ;;  %v4379_v58 = vld [vmem:[%s9246_s4] sm:$0xf] }
 0x8ef   : > { %5006 = vmatpush1.bf16.msra.mxu1 %v10007_v57  ;;  %v5733_v57 = vmov 0  }
 0x8f0   : > { %5008 = vmatprep.subr.bf16.mxu1 %v5007_v52  ;;  %v4223_v16 = vadd.f32 %v5629_v25, %v4222_v30  ;;  %v10020_v25 = vld [vmem:[#allocation57_spill] sm:$0xff]  ;;  %v10025_v52 = vld [vmem:[#allocation10_spill] sm:$0xff]  ;;  %5122 = vset.pattern.permute.xlu0 %v5733_v57  ;;  %v4196_v30 = vrot.slane %v9109_v14, 4 }
 0x8f1   : > { %v10021_v28 = vpack.c.bf16 %v10019_v41, %v10020_v25  ;;  %4382 = vperm.xlu0 %5122, %v4379_v58  }
 0x8f2   : > { %v4224_v11 = vadd.f32 %v5631_v19, %v4223_v16  ;;  %v10028_v19 = vld [vmem:[#allocation19_spill] sm:$0xff] }
 0x8f3   : > { %5010 = vmatpush1.bf16.msra.mxu1 %v10008_v44  ;;  %v4197_v44 = vadd.f32 %v4196_v30, %v9109_v14 }
 0x8f4   : > { %5012 = vmatprep.subr.bf16.mxu1 %v5011_v5  ;;  %v4225_v34 = vadd.f32 %v5633_v43, %v4224_v11  ;;  %v10029_v43 = vpack.c.bf16 %v10027_v55, %v10028_v19  ;;  %v10032_v5 = vpack.c.bf16 %v10030_v6, %v10031_v60  ;;  %v4346_v6 = vld [vmem:[%s9245_s3] sm:$0xf] }
 0x8f6   : > { %v4226_v22 = vadd.f32 %v5635_v0, %v4225_v34  ;;  %v10033_v0 = vld [vmem:[#allocation12_spill] sm:$0xff]  ;;  %v4198_v34 = vrot.slane %v4197_v44, 2 }
 0x8f7   : > { %5014 = vmatpush1.bf16.msra.mxu1 %v10009_v56 }
 0x8f8   : > { %5016 = vmatprep.subr.bf16.mxu1 %v5015_v54  ;;  %v4227_v29 = vadd.f32 %v5637_v35, %v4226_v22  ;;  %v10035_v35 = vld [vmem:[#allocation21_spill] sm:$0xff]  ;;  %v10038_v54 = vld [vmem:[#allocation40_spill] sm:$0xff]  ;;  %v4199_v22 = vadd.f32 %v4198_v34, %v4197_v44 }
 0x8f9   : > { %v10037_v46 = vpack.c.bf16 %v10035_v35, %v10036_v62 }
 0x8fa   : > { %v4228_v15 = vadd.f32 %v5639_v26, %v4227_v29  ;;  %v10039_v26 = vld [vmem:[#allocation20_spill] sm:$0xff] }
 0x8fb   : > { %5018 = vmatpush1.bf16.msra.mxu1 %v10010_v48  ;;  %v4200_v48 = vrot.slane %v4199_v22, 1 }
 0x8fc   : > { %5020 = vmatprep.subr.bf16.mxu1 %v5019_v63  ;;  %v4229_v23 = vadd.f32 %v5641_v36, %v4228_v15  ;;  %v10040_v36 = vpack.c.bf16 %v10038_v54, %v10039_v26  ;;  %v10043_v63 = vld [vmem:[#allocation22_spill] sm:$0xff] }
 0x8fe   : > { %v4230_v13 = vadd.f32 %v5643_v17, %v4229_v23  ;;  %v10044_v17 = vpack.c.bf16 %v10042_v27, %v10043_v63  ;;  %v4201_v23 = vadd.f32 %v4200_v48, %v4199_v22 }
 0x8ff   : > { %5022 = vmatpush1.bf16.msra.mxu1 %v10011_v61 }
 0x900   : > { %5024 = vmatprep.subr.bf16.mxu1 %v5023_v40  ;;  %v4231_v33 = vadd.f32 %v5645_v53, %v4230_v13  ;;  %v10046_v53 = vld [vmem:[#allocation48_spill] sm:$0xff]  ;;  %5648 = vrcp.f32 %v4201_v23 }
 0x901   : > { %v10048_v40 = vpack.c.bf16 %v10046_v53, %v10047_v32 }
 0x902   : > { %v4232_v37 = vadd.f32 %v5647_v47, %v4231_v33  ;;  %v10049_v47 = vld [vmem:[#allocation28_spill] sm:$0xff] }
 0x903   : > { %5026 = vmatpush1.bf16.msra.mxu1 %v10012_v45 }
 0x904   : > { %5028 = vmatprep.subr.bf16.mxu1 %v5027_v38  ;;  %v10051_v38 = vpack.c.bf16 %v10049_v47, %v10050_v2  ;;  %v4233_v16 = vrot.slane %v4232_v37, 4 }
 0x906   : > { %v4234_v11 = vadd.f32 %v4233_v16, %v4232_v37 }
 0x907   : > { %5030 = vmatpush1.bf16.msra.mxu1 %v10013_v31 }
 0x908   : > { %5032 = vmatprep.subr.bf16.mxu1 %v10016_v21  ;;  %v4235_v56 = vrot.slane %v4234_v11, 2 }
 0x90a   : > { %4304 = vmatmul.mubr.f32.vlgmr.msra.gmra.mrb[178].mxu1 %v10017_v7  ;;  %v4236_v29 = vadd.f32 %v4235_v56, %v4234_v11  ;;  %v5649_v13 = vpop.eup %5648 }
 0x90b   : > { %4309 = vmatprep.mubr.f32.mxu1 %v10018_v51  ;;  %5034 = vmatpush1.bf16.msra.mxu1 %v10021_v28 }
 0x90c   : > { %5036 = vmatprep.subr.bf16.mxu1 %v10024_v18  ;;  %v4237_v15 = vrot.slane %v4236_v29, 1 }
 0x90e   : > { %4310 = vmatmul.mubr.f32.gmra.mrb[180].mxu1 %v10025_v52  ;;  %v4238_v61 = vadd.f32 %v4237_v15, %v4236_v29 }
 0x90f   : > { %4315 = vmatprep.mubr.f32.mxu1 %v10026_v24  ;;  %5038 = vmatpush1.bf16.msra.mxu1 %v10029_v43 }
 0x910   : > { %5040 = vmatprep.subr.bf16.mxu1 %v10032_v5  ;;  %5650 = vrcp.f32 %v4238_v61 }
 0x912   : > { %4316 = vmatmul.mubr.f32.gmra.mrb[182].mxu1 %v10033_v0 }
 0x913   : > { %4321 = vmatprep.mubr.f32.mxu1 %v10034_v49  ;;  %5042 = vmatpush1.bf16.msra.mxu1 %v10037_v46 }
 0x914   : > { %5044 = vmatprep.subr.bf16.mxu1 %v10040_v36 }
 0x916   : > { %4322 = vmatmul.mubr.f32.gmra.mrb[184].mxu1 %v10041_v10 }
 0x917   : > { %5046 = vmatpush1.bf16.msra.mxu1 %v10044_v17  ;;  %4449 = vmatprep.mubr.f32.mxu1 %v10045_v59 }
 0x918   : > { %5048 = vmatprep.subr.bf16.mxu1 %v10048_v40 }
 0x91a   : > { %v5651_v45 = vpop.eup %5650 }
 0x91b   : > { %5050 = vmatpush1.bf16.msra.mxu1 %v10051_v38 }
 0x91c   : > { %5052 = vmatprep.subr.bf16.mxu1 %v10054_v9 }
 0x91f   : > { %5054 = vmatpush1.bf16.msra.mxu1 %v10057_v50 }
 0x970   : > { %v4383_v60 = vpop.permute.xlu0 %4382 }
 0x9dd   : > { %v4305_v33 = vpop.f32.mrb[178].mxu1 }
 0x9de   : > { %v4330_v31 = vmul.f32 %v5649_v13, %v4305_v33  ;;  %v4307_v42 = vpop.f32.mrb[179].mxu1 }
 0x9df   : > { %v4331_v8 = vmul.f32 %v5651_v45, %v4307_v42 }
 0x9e1   : > { %v4311_v21 = vpop.f32.mrb[180].mxu1 }
 0x9e2   : > { %v4332_v7 = vmul.f32 %v5649_v13, %v4311_v21  ;;  %v4313_v14 = vpop.f32.mrb[181].mxu1 }
 0x9e3   : > { %v4333_v37 = vmul.f32 %v5651_v45, %v4313_v14 }
 0x9e4   : > { %v5057_v51 = vpack.c.bf16 %v4332_v7, %v4330_v31 }
 0x9e5   : > { %v5055_v41 = vpack.c.bf16 %v4333_v37, %v4331_v8  ;;  %v4317_v25 = vpop.f32.mrb[182].mxu1 }
 0x9e6   : > { %v4334_v28 = vmul.f32 %v5649_v13, %v4317_v25  ;;  %v4319_v3 = vpop.f32.mrb[183].mxu1 }
 0x9e7   : > { %v4335_v39 = vmul.f32 %v5651_v45, %v4319_v3  ;;  %5056 = vmatprep.subr.bf16.mxu1 %v5055_v41 }
 0x9e8   : > { %5058 = vmatpush1.bf16.msra.mxu1 %v5057_v51 }
 0x9e9   : > { %v4323_v18 = vpop.f32.mrb[184].mxu1 }
 0x9ea   : > { %v4336_v52 = vmul.f32 %v5649_v13, %v4323_v18  ;;  %v4325_v24 = vpop.f32.mrb[185].mxu1 }
 0x9eb   : > { %v4337_v55 = vmul.f32 %v5651_v45, %v4325_v24 }
 0x9ec   : > { %v5061_v19 = vpack.c.bf16 %v4336_v52, %v4334_v28 }
 0x9ed   : > { %v5059_v43 = vpack.c.bf16 %v4337_v55, %v4335_v39 }
 0x9ef   : > { %5060 = vmatprep.subr.bf16.mxu1 %v5059_v43 }
 0x9f0   : > { %5062 = vmatpush1.bf16.msra.mxu1 %v5061_v19 }
 0x9f3   : > { %4450 = vmatmul.mubr.f32.vlgmr.msra.gmra.mrb[186].mxu1 %v4346_v6 }
 0xac6   : > { %v4451_v5 = vpop.f32.mrb[186].mxu1 }
 0xac7   : > { %v4452_v0 = vadd.f32 %v4451_v5, %v4383_v60  ;;  %v4453_v49 = vpop.f32.mrb[187].mxu1 }
 0xac8   : > { %v4454_v35 = vadd.f32 %v4453_v49, %v4383_v60 }
 0xaca   : > { %v4458_v62 = vcombine.low %v4452_v0, %v4454_v35 }
 0xacc   : > { %4460 = vst [vmem:[%s231_s10] sm:$0xff] %v4458_v62 }
 0xacd   : > { %5665 = shalt.err (!%p5662_p5)
}
 0xace   : > { %s5666_s25 = scalar_lea.hbm %s9195_s14, 128  ;;  %s5670_s7 = scalar_lea.hbm %s9247_s5, 256 }
 0xacf   : > { %p5667_p6 = scmp.ne.s32.totalorder %s9195_s14, %s5666_s25  ;;  %p5671_p10 = scmp.lt.u32.totalorder %s9195_s14, %s9247_s5 }
 0xad0   : > { %p5672_p11 = scmp.lt.u32.totalorder %s5670_s7, %s5666_s25  ;;  %p5674_p13 = scmp.lt.u32.totalorder %s5666_s25, %s9195_s14 }
 0xad1   : > { %p5668_p7 = pnand %p5667_p6, %p5805_p4 }
 0xad2   : > { %p5673_p12 = por %p5672_p11, %p5671_p10 }
 0xad3   : > { %p5669_p9 = pneg %p5668_p7 }
 0xad4   : > { %p5675_p0 = por %p5674_p13, %p5673_p12 }
 0xad6   : > { %p5676_p1 = pnand %p5675_p0, %p5669_p9 }
 0xad8   : > { %5679 = shalt.err (!%p5676_p1)
}
 0xad9   : > { %5065 = dma.vmem_to_hbm [thread:$0]  (%p5805_p4), %s9197_s11, 128, %s9195_s14, %s4462_s15  }
 0xada PF: > { %p5071_p2 = scmp.ge.s32.totalorder %s5730_s23, 2  ;;  %s4490_s10 = sand.u32 1, %s5710_s18  }
 0xadb   : > { %s4491_s12 = scalar_lea.sflag [#allocation4], %s4490_s10 }
 0xadc   : > { %p5068_p3 = pnand %p5071_p2, %p5812_p8 }
 0xade   : > { %5705 = dma.done.wait (!%p5068_p3), %s4491_s12, 128  }
 0xadf   : > { %5707 = vsyncadd (!%p5068_p3), %s4491_s12, 4294967168  ;;  %s18_s23 = sadd.s32 1, %s5730_s23   ;;  %s10058_s18 = smov %s5714_s19 }
 0xae0   : > { %p15_p5 = scmp.ge.s32.totalorder %s18_s23, 4   ;;  %s10059_s19 = smov %s5718_s20 }
 0xae1   : > { %s10060_s20 = smov %s5818_s6  ;;  %s10061_s21 = smov %s5726_s22 }
 0xae2   : > { %s10062_s22 = smov %s10064_s26  ;;  %17 = sbr.rel (!%p15_p5) target bundleno = 4 (0x4), region = 75 }
 0xae9   :  { %4496 = vsyncpa [#allocation4], 1 }
 0xaea   :  { %4498 = vsyncpa [#allocation4 + $0x1], 1 }

</bundles_post_ra>
